<compile_context>
chip_gen: v7x
topology: tpu7x:2x2x1
jax: 0.10.0
libtpu: 0.0.40
codegen_flags: <defaults>
</compile_context>

<pallas_src>
import functools

import jax
import jax.numpy as jnp
import numpy as np
from jax.experimental import pallas as pl
from jax.experimental.pallas import tpu as pltpu

_HP = jax.lax.Precision.HIGHEST
_dot = functools.partial(jnp.dot, preferred_element_type=jnp.float32,
                         precision=_HP)


def _gat_layer(h_in, w, a_dst_sp, a_src_sp, bias, adj_bias, node_mask,
               blk_ones, ones_nn, rep, headmask, apply_relu):
    """One GATConv layer, all heads packed along the lane axis.

    Packed lane index r = j*H + k  (j = source node, k = head).
      dst_part[i, r] = <h_i^(k), a_dst^(k)>          (via h @ a_dst_sp)
      src_part[i, r] = <h_j^(k), a_src^(k)>          (via h @ a_src_sp, node
                                                       mask, ones broadcast)
      attn          = per-head masked softmax over j (denominator broadcast
                       with one matmul against a block-ones matrix)
      out           = attn @ blockdiag(h_1..h_H) + bias
    """
    h = _dot(h_in, w)                                   # [N, H*C]
    dst_part = _dot(h, a_dst_sp)                        # [N, N*H]
    src_sel = _dot(h, a_src_sp) * node_mask             # keep lane (j,k) only for row j
    src_part = _dot(ones_nn, src_sel)                   # broadcast down destination rows
    logits = dst_part + src_part
    logits = jnp.where(logits > 0.0, logits, 0.2 * logits)   # leaky_relu(0.2)
    logits = logits + adj_bias                          # additive -1e9 edge mask
    m = jnp.max(logits, axis=-1, keepdims=True)         # row max (exact per-head softmax)
    p = jnp.exp(logits - m)
    attn = p / _dot(p, blk_ones)                        # per-head denominators, broadcast
    bd = h if rep is None else _dot(rep, h) * headmask  # blockdiag(h_1..h_H)  [N*H, H*C]
    out = _dot(attn, bd) + bias                         # [N, H*C]
    return jnp.maximum(out, 0.0) if apply_relu else out


def phishing_gat_kernel(x_ref, adjp_ref, adjb_ref,
                        nm_ref, blk_ref, rep_ref, hm_ref,
                        w1_ref, ad1_ref, as1_ref, b1_ref,
                        w2_ref, ad2_ref, as2_ref, b2_ref,
                        w3_ref, ad3_ref, as3_ref, b3_ref,
                        out_ref, *, n):
    """Fused conv1+relu -> conv2+relu -> conv3 for ONE graph (one grid step)."""
    f32 = jnp.float32
    ones_nn = jnp.ones((n, n), f32)
    eye_n = (jax.lax.broadcasted_iota(jnp.int32, (n, n), 0)
             == jax.lax.broadcasted_iota(jnp.int32, (n, n), 1)).astype(f32)

    x = x_ref[...]
    adjp = adjp_ref[...]       # [N, N*heads] packed mask bias (layers 1 & 2)
    adjb = adjb_ref[...]       # [N, N]       plain mask bias  (layer 3, 1 head)
    nm = nm_ref[...]
    blk = blk_ref[...]
    rep = rep_ref[...]
    hm = hm_ref[...]

    h = _gat_layer(x, w1_ref[...], ad1_ref[...], as1_ref[...], b1_ref[...],
                   adjp, nm, blk, ones_nn, rep, hm, True)
    # F.dropout(p=0.2) is the identity in eval mode.
    # TODO(synk): training-mode dropout via pltpu.prng_seed / prng_random_bits.
    h = _gat_layer(h, w2_ref[...], ad2_ref[...], as2_ref[...], b2_ref[...],
                   adjp, nm, blk, ones_nn, rep, hm, True)
    # Layer 3 has a single head -> degenerate structural matrices.
    h = _gat_layer(h, w3_ref[...], ad3_ref[...], as3_ref[...], b3_ref[...],
                   adjb, eye_n, ones_nn, ones_nn, None, None, False)

    # [N, out_ch] store; out_ch=4 is lane-sparse but a single tiny masked store.
    out_ref[...] = h


# ----------------------------- host-side packing ------------------------------
def _spread_attn(avec, n):
    """[H, C] attention vector -> [H*C, N*H] so that (h @ out)[i, j*H+k] gives
    the head-k score of node i, replicated across all source lanes j."""
    avec = np.asarray(avec, np.float32)
    heads, c = avec.shape
    out = np.zeros((heads * c, n * heads), np.float32)
    for k in range(heads):
        out[k * c:(k + 1) * c, k::heads] = avec[k][:, None]
    return out


def pack_params(params, *, n, heads):
    """Precompute (once) all weight / selection matrices consumed by the kernel."""
    hid = np.asarray(params["as1"]).shape[1]
    nh = n * heads
    jj = np.arange(nh) // heads            # source node of packed index r
    kk = np.arange(nh) % heads             # head of packed index r
    node_mask = (jj[None, :] == np.arange(n)[:, None]).astype(np.float32)   # [N, NH]
    blk_ones = (kk[:, None] == kk[None, :]).astype(np.float32)              # [NH, NH]
    rep = (jj[:, None] == np.arange(n)[None, :]).astype(np.float32)         # [NH, N]
    col_head = np.arange(heads * hid) // hid
    headmask = (kk[:, None] == col_head[None, :]).astype(np.float32)        # [NH, H*hid]

    return {
        "node_mask": jnp.asarray(node_mask),
        "blk_ones": jnp.asarray(blk_ones),
        "rep": jnp.asarray(rep),
        "headmask": jnp.asarray(headmask),
        "w1": jnp.asarray(params["w1"]),
        "adst1": jnp.asarray(_spread_attn(params["ad1"], n)),
        "asrc1": jnp.asarray(_spread_attn(params["as1"], n)),
        "b1": jnp.asarray(params["b1"]).reshape(1, -1),
        "w2": jnp.asarray(params["w2"]),
        "adst2": jnp.asarray(_spread_attn(params["ad2"], n)),
        "asrc2": jnp.asarray(_spread_attn(params["as2"], n)),
        "b2": jnp.asarray(params["b2"]).reshape(1, -1),
        "w3": jnp.asarray(params["w3"]),
        "adst3": jnp.asarray(_spread_attn(params["ad3"], n)),
        "asrc3": jnp.asarray(_spread_attn(params["as3"], n)),
        "b3": jnp.asarray(params["b3"]).reshape(1, -1),
    }


def preprocess_adj(adj, heads):
    """adj [B,N,N] (1 = edge j->i, incl. self-loops) -> additive mask biases."""
    adj_bias = (adj - 1.0) * 1e9                           # 0 on edges, -1e9 otherwise
    adj_bias_packed = jnp.repeat(adj_bias, heads, axis=-1)  # lane order j*heads + k
    return adj_bias, adj_bias_packed


def phishing_gat_forward(x, adj_bias, adj_bias_packed, pp):
    b, n, _ = x.shape
    out_ch = pp["b3"].shape[-1]

    def batched(tail):
        return pl.BlockSpec((None,) + tail, lambda i: (i, 0, 0))

    def replicated(arr):
        zeros = (0,) * arr.ndim
        return pl.BlockSpec(arr.shape, lambda i, _z=zeros: _z)

    operands = (x, adj_bias_packed, adj_bias,
                pp["node_mask"], pp["blk_ones"], pp["rep"], pp["headmask"],
                pp["w1"], pp["adst1"], pp["asrc1"], pp["b1"],
                pp["w2"], pp["adst2"], pp["asrc2"], pp["b2"],
                pp["w3"], pp["adst3"], pp["asrc3"], pp["b3"])
    in_specs = ([batched(x.shape[1:]),
                 batched(adj_bias_packed.shape[1:]),
                 batched(adj_bias.shape[1:])]
                + [replicated(a) for a in operands[3:]])

    return pl.pallas_call(
        functools.partial(phishing_gat_kernel, n=n),
        out_shape=jax.ShapeDtypeStruct((b, n, out_ch), jnp.float32),
        grid=(b,),
        in_specs=in_specs,
        out_specs=pl.BlockSpec((None, n, out_ch), lambda i: (i, 0, 0)),
        compiler_params=pltpu.CompilerParams(
            dimension_semantics=("parallel",),   # independent graphs -> 2nd TC on v7x
        ),
    )(*operands)


# -------------------- pure-JAX reference (sanity check) ----------------------
def _ref_layer(x, w, asrc, adst, bias, adj, apply_relu):
    heads, out_c = asrc.shape
    n = x.shape[0]
    h = jnp.dot(x, w, precision=_HP)                       # [N, heads*C]
    hh = h.reshape(n, heads, out_c)
    a_s = jnp.einsum("nhc,hc->nh", hh, asrc, precision=_HP)
    a_d = jnp.einsum("nhc,hc->nh", hh, adst, precision=_HP)
    logits = a_d[:, None, :] + a_s[None, :, :]             # [N_dst, N_src, H]
    logits = jnp.where(logits > 0, logits, 0.2 * logits)
    logits = jnp.where(adj[:, :, None] > 0, logits, -1e9)
    logits = logits - jnp.max(logits, axis=1, keepdims=True)
    p = jnp.exp(logits)
    attn = p / jnp.sum(p, axis=1, keepdims=True)
    out = jnp.einsum("ijh,jhc->ihc", attn, hh, precision=_HP)
    out = out.reshape(n, heads * out_c) + bias
    return jnp.maximum(out, 0.0) if apply_relu else out


def _ref_forward(x, adj, p, heads):
    h = _ref_layer(x, p["w1"], p["as1"], p["ad1"], p["b1"], adj, True)
    h = _ref_layer(h, p["w2"], p["as2"], p["ad2"], p["b2"], adj, True)
    h = _ref_layer(h, p["w3"], p["as3"], p["ad3"], p["b3"], adj, False)
    return h


if __name__ == "__main__":
    B, N, E = 2, 16, 40                      # graphs, nodes/graph, edges/graph
    in_ch, hid, out_ch, heads = 8, 8, 4, 4

    key = jax.random.PRNGKey(0)
    ks = jax.random.split(key, 20)

    # graph inputs (batch of B independent graphs sharing the same model)
    x = jax.random.normal(ks[0], (B, N, in_ch), jnp.float32)
    src = jax.random.randint(ks[1], (B, E), 0, N)
    dst = jax.random.randint(ks[2], (B, E), 0, N)
    edge_index = jnp.stack([src, dst], axis=1)                      # [B, 2, E]
    edge_attr = jax.random.normal(ks[3], (B, E, 3), jnp.float32)    # unused (no edge_dim)

    # dense adjacency with self-loops: adj[b, i, j] = 1 iff edge j -> i
    batch_idx = jnp.repeat(jnp.arange(B), E)
    adj = jnp.zeros((B, N, N), jnp.float32)
    adj = adj.at[batch_idx, dst.reshape(-1), src.reshape(-1)].set(1.0)
    adj = jnp.maximum(adj, jnp.eye(N, dtype=jnp.float32)[None])

    # deterministic parameter init (PyG GATConv shapes)
    def rnd(k, shape):
        return 0.3 * jax.random.normal(k, shape, jnp.float32)

    params = {
        # conv1: in_ch -> hid, heads=4, concat
        "w1": rnd(ks[4], (in_ch, heads * hid)),
        "as1": rnd(ks[5], (heads, hid)),
        "ad1": rnd(ks[6], (heads, hid)),
        "b1": rnd(ks[7], (heads * hid,)),
        # conv2: heads*hid -> hid, heads=4, concat
        "w2": rnd(ks[8], (heads * hid, heads * hid)),
        "as2": rnd(ks[9], (heads, hid)),
        "ad2": rnd(ks[10], (heads, hid)),
        "b2": rnd(ks[11], (heads * hid,)),
        # conv3: heads*hid -> out_ch, heads=1
        "w3": rnd(ks[12], (heads * hid, out_ch)),
        "as3": rnd(ks[13], (1, out_ch)),
        "ad3": rnd(ks[14], (1, out_ch)),
        "b3": rnd(ks[15], (out_ch,)),
    }

    # ---- precompute ONCE (cached device arrays), then run the fused kernel ----
    packed = pack_params(params, n=N, heads=heads)
    adjb, adjp = preprocess_adj(adj, heads)
    forward = jax.jit(phishing_gat_forward)

    out = forward(x, adjb, adjp, packed)
    out = jax.block_until_ready(out)

    ref = jax.vmap(lambda xx, aa: _ref_forward(xx, aa, params, heads))(x, adj)
    np.testing.assert_allclose(np.asarray(out), np.asarray(ref),
                               rtol=1e-3, atol=1e-3)
    assert out.shape == (B, N, out_ch)
    print("KERNEL_OK")
</pallas_src>

<mosaic_0001>
module attributes {stable_mosaic.version = 11 : i64} {
  func.func @phishing_gat_kernel(%arg0: i32, %arg1: memref<1x16x8xf32, #tpu.memory_space<vmem>>, %arg2: memref<1x16x64xf32, #tpu.memory_space<vmem>>, %arg3: memref<1x16x16xf32, #tpu.memory_space<vmem>>, %arg4: memref<16x64xf32, #tpu.memory_space<vmem>>, %arg5: memref<64x64xf32, #tpu.memory_space<vmem>>, %arg6: memref<64x16xf32, #tpu.memory_space<vmem>>, %arg7: memref<64x32xf32, #tpu.memory_space<vmem>>, %arg8: memref<8x32xf32, #tpu.memory_space<vmem>>, %arg9: memref<32x64xf32, #tpu.memory_space<vmem>>, %arg10: memref<32x64xf32, #tpu.memory_space<vmem>>, %arg11: memref<1x32xf32, #tpu.memory_space<vmem>>, %arg12: memref<32x32xf32, #tpu.memory_space<vmem>>, %arg13: memref<32x64xf32, #tpu.memory_space<vmem>>, %arg14: memref<32x64xf32, #tpu.memory_space<vmem>>, %arg15: memref<1x32xf32, #tpu.memory_space<vmem>>, %arg16: memref<32x4xf32, #tpu.memory_space<vmem>>, %arg17: memref<4x16xf32, #tpu.memory_space<vmem>>, %arg18: memref<4x16xf32, #tpu.memory_space<vmem>>, %arg19: memref<1x4xf32, #tpu.memory_space<vmem>>, %arg20: memref<1x16x4xf32, #tpu.memory_space<vmem>>) attributes {dimension_semantics = [#tpu.dimension_semantics<parallel>], iteration_bounds = array<i64: 2>, scalar_prefetch = 0 : i64, scratch_operands = 0 : i64, tpu.core_type = #tpu.core_type<tc>, window_params = [{transform_indices = @transform_0, window_bounds = array<i64: 1, 16, 8>}, {transform_indices = @transform_1, window_bounds = array<i64: 1, 16, 64>}, {transform_indices = @transform_2, window_bounds = array<i64: 1, 16, 16>}, {pipeline_mode = #tpu.pipeline_mode<synchronous>, transform_indices = @transform_3, window_bounds = array<i64: 16, 64>}, {pipeline_mode = #tpu.pipeline_mode<synchronous>, transform_indices = @transform_4, window_bounds = array<i64: 64, 64>}, {pipeline_mode = #tpu.pipeline_mode<synchronous>, transform_indices = @transform_5, window_bounds = array<i64: 64, 16>}, {pipeline_mode = #tpu.pipeline_mode<synchronous>, transform_indices = @transform_6, window_bounds = array<i64: 64, 32>}, {pipeline_mode = #tpu.pipeline_mode<synchronous>, transform_indices = @transform_7, window_bounds = array<i64: 8, 32>}, {pipeline_mode = #tpu.pipeline_mode<synchronous>, transform_indices = @transform_8, window_bounds = array<i64: 32, 64>}, {pipeline_mode = #tpu.pipeline_mode<synchronous>, transform_indices = @transform_9, window_bounds = array<i64: 32, 64>}, {pipeline_mode = #tpu.pipeline_mode<synchronous>, transform_indices = @transform_10, window_bounds = array<i64: 1, 32>}, {pipeline_mode = #tpu.pipeline_mode<synchronous>, transform_indices = @transform_11, window_bounds = array<i64: 32, 32>}, {pipeline_mode = #tpu.pipeline_mode<synchronous>, transform_indices = @transform_12, window_bounds = array<i64: 32, 64>}, {pipeline_mode = #tpu.pipeline_mode<synchronous>, transform_indices = @transform_13, window_bounds = array<i64: 32, 64>}, {pipeline_mode = #tpu.pipeline_mode<synchronous>, transform_indices = @transform_14, window_bounds = array<i64: 1, 32>}, {pipeline_mode = #tpu.pipeline_mode<synchronous>, transform_indices = @transform_15, window_bounds = array<i64: 32, 4>}, {pipeline_mode = #tpu.pipeline_mode<synchronous>, transform_indices = @transform_16, window_bounds = array<i64: 4, 16>}, {pipeline_mode = #tpu.pipeline_mode<synchronous>, transform_indices = @transform_17, window_bounds = array<i64: 4, 16>}, {pipeline_mode = #tpu.pipeline_mode<synchronous>, transform_indices = @transform_18, window_bounds = array<i64: 1, 4>}, {transform_indices = @transform_19, window_bounds = array<i64: 1, 16, 4>}]} {
    %cst = arith.constant 1.000000e+00 : f32
    %0 = vector.broadcast %cst : f32 to vector<16x16xf32>
    %1 = tpu.iota {dimensions = array<i32: 0>} : vector<16x16xi32>
    %2 = tpu.iota {dimensions = array<i32: 1>} : vector<16x16xi32>
    %3 = arith.cmpi eq, %1, %2 : vector<16x16xi32>
    %4 = arith.extui %3 : vector<16x16xi1> to vector<16x16xi32>
    %5 = arith.sitofp %4 : vector<16x16xi32> to vector<16x16xf32>
    %c0 = arith.constant 0 : index
    %c0_0 = arith.constant 0 : index
    %c0_1 = arith.constant 0 : index
    %6 = vector.load %arg1[%c0, %c0_0, %c0_1] : memref<1x16x8xf32, #tpu.memory_space<vmem>>, vector<1x16x8xf32>
    %7 = vector.shape_cast %6 : vector<1x16x8xf32> to vector<16x8xf32>
    %c0_2 = arith.constant 0 : index
    %c0_3 = arith.constant 0 : index
    %c0_4 = arith.constant 0 : index
    %8 = vector.load %arg2[%c0_2, %c0_3, %c0_4] : memref<1x16x64xf32, #tpu.memory_space<vmem>>, vector<1x16x64xf32>
    %9 = vector.shape_cast %8 : vector<1x16x64xf32> to vector<16x64xf32>
    %c0_5 = arith.constant 0 : index
    %c0_6 = arith.constant 0 : index
    %c0_7 = arith.constant 0 : index
    %10 = vector.load %arg3[%c0_5, %c0_6, %c0_7] : memref<1x16x16xf32, #tpu.memory_space<vmem>>, vector<1x16x16xf32>
    %11 = vector.shape_cast %10 : vector<1x16x16xf32> to vector<16x16xf32>
    %c0_8 = arith.constant 0 : index
    %c0_9 = arith.constant 0 : index
    %12 = vector.load %arg4[%c0_8, %c0_9] : memref<16x64xf32, #tpu.memory_space<vmem>>, vector<16x64xf32>
    %c0_10 = arith.constant 0 : index
    %c0_11 = arith.constant 0 : index
    %13 = vector.load %arg5[%c0_10, %c0_11] : memref<64x64xf32, #tpu.memory_space<vmem>>, vector<64x64xf32>
    %c0_12 = arith.constant 0 : index
    %c0_13 = arith.constant 0 : index
    %14 = vector.load %arg6[%c0_12, %c0_13] : memref<64x16xf32, #tpu.memory_space<vmem>>, vector<64x16xf32>
    %c0_14 = arith.constant 0 : index
    %c0_15 = arith.constant 0 : index
    %15 = vector.load %arg7[%c0_14, %c0_15] : memref<64x32xf32, #tpu.memory_space<vmem>>, vector<64x32xf32>
    %c0_16 = arith.constant 0 : index
    %c0_17 = arith.constant 0 : index
    %16 = vector.load %arg8[%c0_16, %c0_17] : memref<8x32xf32, #tpu.memory_space<vmem>>, vector<8x32xf32>
    %c0_18 = arith.constant 0 : index
    %c0_19 = arith.constant 0 : index
    %17 = vector.load %arg9[%c0_18, %c0_19] : memref<32x64xf32, #tpu.memory_space<vmem>>, vector<32x64xf32>
    %c0_20 = arith.constant 0 : index
    %c0_21 = arith.constant 0 : index
    %18 = vector.load %arg10[%c0_20, %c0_21] : memref<32x64xf32, #tpu.memory_space<vmem>>, vector<32x64xf32>
    %c0_22 = arith.constant 0 : index
    %c0_23 = arith.constant 0 : index
    %19 = vector.load %arg11[%c0_22, %c0_23] : memref<1x32xf32, #tpu.memory_space<vmem>>, vector<1x32xf32>
    %cst_24 = arith.constant dense<0.000000e+00> : vector<16x32xf32>
    %20 = tpu.matmul %7, %16, %cst_24 {dimension_numbers = #tpu.dot_dimension_numbers<[1], [0], [0], [1], [0, 0, 1, 1], [], []>, precision = #tpu.contract_precision<fp32>} : vector<16x8xf32>, vector<8x32xf32>, vector<16x32xf32> -> vector<16x32xf32>
    %cst_25 = arith.constant dense<0.000000e+00> : vector<16x64xf32>
    %21 = tpu.matmul %20, %17, %cst_25 {dimension_numbers = #tpu.dot_dimension_numbers<[1], [0], [0], [1], [0, 0, 1, 1], [], []>, precision = #tpu.contract_precision<fp32>} : vector<16x32xf32>, vector<32x64xf32>, vector<16x64xf32> -> vector<16x64xf32>
    %cst_26 = arith.constant dense<0.000000e+00> : vector<16x64xf32>
    %22 = tpu.matmul %20, %18, %cst_26 {dimension_numbers = #tpu.dot_dimension_numbers<[1], [0], [0], [1], [0, 0, 1, 1], [], []>, precision = #tpu.contract_precision<fp32>} : vector<16x32xf32>, vector<32x64xf32>, vector<16x64xf32> -> vector<16x64xf32>
    %23 = arith.mulf %22, %12 : vector<16x64xf32>
    %cst_27 = arith.constant dense<0.000000e+00> : vector<16x64xf32>
    %24 = tpu.matmul %0, %23, %cst_27 {dimension_numbers = #tpu.dot_dimension_numbers<[1], [0], [0], [1], [0, 0, 1, 1], [], []>, precision = #tpu.contract_precision<fp32>} : vector<16x16xf32>, vector<16x64xf32>, vector<16x64xf32> -> vector<16x64xf32>
    %25 = arith.addf %21, %24 : vector<16x64xf32>
    %cst_28 = arith.constant 0.000000e+00 : f32
    %26 = vector.broadcast %cst_28 : f32 to vector<16x64xf32>
    %27 = arith.cmpf ogt, %25, %26 : vector<16x64xf32>
    %cst_29 = arith.constant 2.000000e-01 : f32
    %28 = vector.broadcast %cst_29 : f32 to vector<16x64xf32>
    %29 = arith.mulf %28, %25 : vector<16x64xf32>
    %30 = arith.select %27, %25, %29 : vector<16x64xi1>, vector<16x64xf32>
    %31 = arith.addf %30, %9 : vector<16x64xf32>
    %cst_30 = arith.constant dense<0xFF800000> : vector<16xf32>
    %32 = vector.multi_reduction <maximumf>, %31, %cst_30 [1] : vector<16x64xf32> to vector<16xf32>
    %33 = vector.shape_cast %32 : vector<16xf32> to vector<16x1xf32>
    %34 = vector.broadcast %33 : vector<16x1xf32> to vector<16x64xf32>
    %35 = arith.subf %31, %34 : vector<16x64xf32>
    %36 = math.exp %35 : vector<16x64xf32>
    %cst_31 = arith.constant dense<0.000000e+00> : vector<16x64xf32>
    %37 = tpu.matmul %36, %13, %cst_31 {dimension_numbers = #tpu.dot_dimension_numbers<[1], [0], [0], [1], [0, 0, 1, 1], [], []>, precision = #tpu.contract_precision<fp32>} : vector<16x64xf32>, vector<64x64xf32>, vector<16x64xf32> -> vector<16x64xf32>
    %38 = arith.divf %36, %37 : vector<16x64xf32>
    %cst_32 = arith.constant dense<0.000000e+00> : vector<64x32xf32>
    %39 = tpu.matmul %14, %20, %cst_32 {dimension_numbers = #tpu.dot_dimension_numbers<[1], [0], [0], [1], [0, 0, 1, 1], [], []>, precision = #tpu.contract_precision<fp32>} : vector<64x16xf32>, vector<16x32xf32>, vector<64x32xf32> -> vector<64x32xf32>
    %40 = arith.mulf %39, %15 : vector<64x32xf32>
    %cst_33 = arith.constant dense<0.000000e+00> : vector<16x32xf32>
    %41 = tpu.matmul %38, %40, %cst_33 {dimension_numbers = #tpu.dot_dimension_numbers<[1], [0], [0], [1], [0, 0, 1, 1], [], []>, precision = #tpu.contract_precision<fp32>} : vector<16x64xf32>, vector<64x32xf32>, vector<16x32xf32> -> vector<16x32xf32>
    %42 = vector.broadcast %19 : vector<1x32xf32> to vector<16x32xf32>
    %43 = arith.addf %41, %42 : vector<16x32xf32>
    %cst_34 = arith.constant 0.000000e+00 : f32
    %44 = vector.broadcast %cst_34 : f32 to vector<16x32xf32>
    %45 = arith.maximumf %43, %44 : vector<16x32xf32>
    %c0_35 = arith.constant 0 : index
    %c0_36 = arith.constant 0 : index
    %46 = vector.load %arg12[%c0_35, %c0_36] : memref<32x32xf32, #tpu.memory_space<vmem>>, vector<32x32xf32>
    %c0_37 = arith.constant 0 : index
    %c0_38 = arith.constant 0 : index
    %47 = vector.load %arg13[%c0_37, %c0_38] : memref<32x64xf32, #tpu.memory_space<vmem>>, vector<32x64xf32>
    %c0_39 = arith.constant 0 : index
    %c0_40 = arith.constant 0 : index
    %48 = vector.load %arg14[%c0_39, %c0_40] : memref<32x64xf32, #tpu.memory_space<vmem>>, vector<32x64xf32>
    %c0_41 = arith.constant 0 : index
    %c0_42 = arith.constant 0 : index
    %49 = vector.load %arg15[%c0_41, %c0_42] : memref<1x32xf32, #tpu.memory_space<vmem>>, vector<1x32xf32>
    %cst_43 = arith.constant dense<0.000000e+00> : vector<16x32xf32>
    %50 = tpu.matmul %45, %46, %cst_43 {dimension_numbers = #tpu.dot_dimension_numbers<[1], [0], [0], [1], [0, 0, 1, 1], [], []>, precision = #tpu.contract_precision<fp32>} : vector<16x32xf32>, vector<32x32xf32>, vector<16x32xf32> -> vector<16x32xf32>
    %cst_44 = arith.constant dense<0.000000e+00> : vector<16x64xf32>
    %51 = tpu.matmul %50, %47, %cst_44 {dimension_numbers = #tpu.dot_dimension_numbers<[1], [0], [0], [1], [0, 0, 1, 1], [], []>, precision = #tpu.contract_precision<fp32>} : vector<16x32xf32>, vector<32x64xf32>, vector<16x64xf32> -> vector<16x64xf32>
    %cst_45 = arith.constant dense<0.000000e+00> : vector<16x64xf32>
    %52 = tpu.matmul %50, %48, %cst_45 {dimension_numbers = #tpu.dot_dimension_numbers<[1], [0], [0], [1], [0, 0, 1, 1], [], []>, precision = #tpu.contract_precision<fp32>} : vector<16x32xf32>, vector<32x64xf32>, vector<16x64xf32> -> vector<16x64xf32>
    %53 = arith.mulf %52, %12 : vector<16x64xf32>
    %cst_46 = arith.constant dense<0.000000e+00> : vector<16x64xf32>
    %54 = tpu.matmul %0, %53, %cst_46 {dimension_numbers = #tpu.dot_dimension_numbers<[1], [0], [0], [1], [0, 0, 1, 1], [], []>, precision = #tpu.contract_precision<fp32>} : vector<16x16xf32>, vector<16x64xf32>, vector<16x64xf32> -> vector<16x64xf32>
    %55 = arith.addf %51, %54 : vector<16x64xf32>
    %cst_47 = arith.constant 0.000000e+00 : f32
    %56 = vector.broadcast %cst_47 : f32 to vector<16x64xf32>
    %57 = arith.cmpf ogt, %55, %56 : vector<16x64xf32>
    %cst_48 = arith.constant 2.000000e-01 : f32
    %58 = vector.broadcast %cst_48 : f32 to vector<16x64xf32>
    %59 = arith.mulf %58, %55 : vector<16x64xf32>
    %60 = arith.select %57, %55, %59 : vector<16x64xi1>, vector<16x64xf32>
    %61 = arith.addf %60, %9 : vector<16x64xf32>
    %cst_49 = arith.constant dense<0xFF800000> : vector<16xf32>
    %62 = vector.multi_reduction <maximumf>, %61, %cst_49 [1] : vector<16x64xf32> to vector<16xf32>
    %63 = vector.shape_cast %62 : vector<16xf32> to vector<16x1xf32>
    %64 = vector.broadcast %63 : vector<16x1xf32> to vector<16x64xf32>
    %65 = arith.subf %61, %64 : vector<16x64xf32>
    %66 = math.exp %65 : vector<16x64xf32>
    %cst_50 = arith.constant dense<0.000000e+00> : vector<16x64xf32>
    %67 = tpu.matmul %66, %13, %cst_50 {dimension_numbers = #tpu.dot_dimension_numbers<[1], [0], [0], [1], [0, 0, 1, 1], [], []>, precision = #tpu.contract_precision<fp32>} : vector<16x64xf32>, vector<64x64xf32>, vector<16x64xf32> -> vector<16x64xf32>
    %68 = arith.divf %66, %67 : vector<16x64xf32>
    %cst_51 = arith.constant dense<0.000000e+00> : vector<64x32xf32>
    %69 = tpu.matmul %14, %50, %cst_51 {dimension_numbers = #tpu.dot_dimension_numbers<[1], [0], [0], [1], [0, 0, 1, 1], [], []>, precision = #tpu.contract_precision<fp32>} : vector<64x16xf32>, vector<16x32xf32>, vector<64x32xf32> -> vector<64x32xf32>
    %70 = arith.mulf %69, %15 : vector<64x32xf32>
    %cst_52 = arith.constant dense<0.000000e+00> : vector<16x32xf32>
    %71 = tpu.matmul %68, %70, %cst_52 {dimension_numbers = #tpu.dot_dimension_numbers<[1], [0], [0], [1], [0, 0, 1, 1], [], []>, precision = #tpu.contract_precision<fp32>} : vector<16x64xf32>, vector<64x32xf32>, vector<16x32xf32> -> vector<16x32xf32>
    %72 = vector.broadcast %49 : vector<1x32xf32> to vector<16x32xf32>
    %73 = arith.addf %71, %72 : vector<16x32xf32>
    %cst_53 = arith.constant 0.000000e+00 : f32
    %74 = vector.broadcast %cst_53 : f32 to vector<16x32xf32>
    %75 = arith.maximumf %73, %74 : vector<16x32xf32>
    %c0_54 = arith.constant 0 : index
    %c0_55 = arith.constant 0 : index
    %76 = vector.load %arg16[%c0_54, %c0_55] : memref<32x4xf32, #tpu.memory_space<vmem>>, vector<32x4xf32>
    %c0_56 = arith.constant 0 : index
    %c0_57 = arith.constant 0 : index
    %77 = vector.load %arg17[%c0_56, %c0_57] : memref<4x16xf32, #tpu.memory_space<vmem>>, vector<4x16xf32>
    %c0_58 = arith.constant 0 : index
    %c0_59 = arith.constant 0 : index
    %78 = vector.load %arg18[%c0_58, %c0_59] : memref<4x16xf32, #tpu.memory_space<vmem>>, vector<4x16xf32>
    %c0_60 = arith.constant 0 : index
    %c0_61 = arith.constant 0 : index
    %79 = vector.load %arg19[%c0_60, %c0_61] : memref<1x4xf32, #tpu.memory_space<vmem>>, vector<1x4xf32>
    %cst_62 = arith.constant dense<0.000000e+00> : vector<16x4xf32>
    %80 = tpu.matmul %75, %76, %cst_62 {dimension_numbers = #tpu.dot_dimension_numbers<[1], [0], [0], [1], [0, 0, 1, 1], [], []>, precision = #tpu.contract_precision<fp32>} : vector<16x32xf32>, vector<32x4xf32>, vector<16x4xf32> -> vector<16x4xf32>
    %cst_63 = arith.constant dense<0.000000e+00> : vector<16x16xf32>
    %81 = tpu.matmul %80, %77, %cst_63 {dimension_numbers = #tpu.dot_dimension_numbers<[1], [0], [0], [1], [0, 0, 1, 1], [], []>, precision = #tpu.contract_precision<fp32>} : vector<16x4xf32>, vector<4x16xf32>, vector<16x16xf32> -> vector<16x16xf32>
    %cst_64 = arith.constant dense<0.000000e+00> : vector<16x16xf32>
    %82 = tpu.matmul %80, %78, %cst_64 {dimension_numbers = #tpu.dot_dimension_numbers<[1], [0], [0], [1], [0, 0, 1, 1], [], []>, precision = #tpu.contract_precision<fp32>} : vector<16x4xf32>, vector<4x16xf32>, vector<16x16xf32> -> vector<16x16xf32>
    %83 = arith.mulf %82, %5 : vector<16x16xf32>
    %cst_65 = arith.constant dense<0.000000e+00> : vector<16x16xf32>
    %84 = tpu.matmul %0, %83, %cst_65 {dimension_numbers = #tpu.dot_dimension_numbers<[1], [0], [0], [1], [0, 0, 1, 1], [], []>, precision = #tpu.contract_precision<fp32>} : vector<16x16xf32>, vector<16x16xf32>, vector<16x16xf32> -> vector<16x16xf32>
    %85 = arith.addf %81, %84 : vector<16x16xf32>
    %cst_66 = arith.constant 0.000000e+00 : f32
    %86 = vector.broadcast %cst_66 : f32 to vector<16x16xf32>
    %87 = arith.cmpf ogt, %85, %86 : vector<16x16xf32>
    %cst_67 = arith.constant 2.000000e-01 : f32
    %88 = vector.broadcast %cst_67 : f32 to vector<16x16xf32>
    %89 = arith.mulf %88, %85 : vector<16x16xf32>
    %90 = arith.select %87, %85, %89 : vector<16x16xi1>, vector<16x16xf32>
    %91 = arith.addf %90, %11 : vector<16x16xf32>
    %cst_68 = arith.constant dense<0xFF800000> : vector<16xf32>
    %92 = vector.multi_reduction <maximumf>, %91, %cst_68 [1] : vector<16x16xf32> to vector<16xf32>
    %93 = vector.shape_cast %92 : vector<16xf32> to vector<16x1xf32>
    %94 = vector.broadcast %93 : vector<16x1xf32> to vector<16x16xf32>
    %95 = arith.subf %91, %94 : vector<16x16xf32>
    %96 = math.exp %95 : vector<16x16xf32>
    %cst_69 = arith.constant dense<0.000000e+00> : vector<16x16xf32>
    %97 = tpu.matmul %96, %0, %cst_69 {dimension_numbers = #tpu.dot_dimension_numbers<[1], [0], [0], [1], [0, 0, 1, 1], [], []>, precision = #tpu.contract_precision<fp32>} : vector<16x16xf32>, vector<16x16xf32>, vector<16x16xf32> -> vector<16x16xf32>
    %98 = arith.divf %96, %97 : vector<16x16xf32>
    %cst_70 = arith.constant dense<0.000000e+00> : vector<16x4xf32>
    %99 = tpu.matmul %98, %80, %cst_70 {dimension_numbers = #tpu.dot_dimension_numbers<[1], [0], [0], [1], [0, 0, 1, 1], [], []>, precision = #tpu.contract_precision<fp32>} : vector<16x16xf32>, vector<16x4xf32>, vector<16x4xf32> -> vector<16x4xf32>
    %100 = vector.broadcast %79 : vector<1x4xf32> to vector<16x4xf32>
    %101 = arith.addf %99, %100 : vector<16x4xf32>
    %c0_71 = arith.constant 0 : index
    %c0_72 = arith.constant 0 : index
    %c0_73 = arith.constant 0 : index
    %102 = vector.load %arg20[%c0_71, %c0_72, %c0_73] : memref<1x16x4xf32, #tpu.memory_space<vmem>>, vector<1x16x4xf32>
    %103 = vector.shape_cast %102 : vector<1x16x4xf32> to vector<16x4xf32>
    %104 = vector.shape_cast %101 : vector<16x4xf32> to vector<1x16x4xf32>
    tpu.vector_store %arg20[%c0_71, %c0_72, %c0_73], %104 {strides = array<i32>} : memref<1x16x4xf32, #tpu.memory_space<vmem>>, vector<1x16x4xf32>,
    return
  }
  func.func @transform_0(%arg0: i32) -> (i32, i32, i32) {
    %c0_i32 = arith.constant 0 : i32
    %c0_i32_0 = arith.constant 0 : i32
    %c0_i32_1 = arith.constant 0 : i32
    return %arg0, %c0_i32, %c0_i32_0 : i32, i32, i32
  }
  func.func @transform_1(%arg0: i32) -> (i32, i32, i32) {
    %c0_i32 = arith.constant 0 : i32
    %c0_i32_0 = arith.constant 0 : i32
    %c0_i32_1 = arith.constant 0 : i32
    return %arg0, %c0_i32, %c0_i32_0 : i32, i32, i32
  }
  func.func @transform_2(%arg0: i32) -> (i32, i32, i32) {
    %c0_i32 = arith.constant 0 : i32
    %c0_i32_0 = arith.constant 0 : i32
    %c0_i32_1 = arith.constant 0 : i32
    return %arg0, %c0_i32, %c0_i32_0 : i32, i32, i32
  }
  func.func @transform_3(%arg0: i32) -> (i32, i32) {
    %c0_i32 = arith.constant 0 : i32
    %c0_i32_0 = arith.constant 0 : i32
    %c0_i32_1 = arith.constant 0 : i32
    return %c0_i32, %c0_i32_0 : i32, i32
  }
  func.func @transform_4(%arg0: i32) -> (i32, i32) {
    %c0_i32 = arith.constant 0 : i32
    %c0_i32_0 = arith.constant 0 : i32
    %c0_i32_1 = arith.constant 0 : i32
    return %c0_i32, %c0_i32_0 : i32, i32
  }
  func.func @transform_5(%arg0: i32) -> (i32, i32) {
    %c0_i32 = arith.constant 0 : i32
    %c0_i32_0 = arith.constant 0 : i32
    %c0_i32_1 = arith.constant 0 : i32
    return %c0_i32, %c0_i32_0 : i32, i32
  }
  func.func @transform_6(%arg0: i32) -> (i32, i32) {
    %c0_i32 = arith.constant 0 : i32
    %c0_i32_0 = arith.constant 0 : i32
    %c0_i32_1 = arith.constant 0 : i32
    return %c0_i32, %c0_i32_0 : i32, i32
  }
  func.func @transform_7(%arg0: i32) -> (i32, i32) {
    %c0_i32 = arith.constant 0 : i32
    %c0_i32_0 = arith.constant 0 : i32
    %c0_i32_1 = arith.constant 0 : i32
    return %c0_i32, %c0_i32_0 : i32, i32
  }
  func.func @transform_8(%arg0: i32) -> (i32, i32) {
    %c0_i32 = arith.constant 0 : i32
    %c0_i32_0 = arith.constant 0 : i32
    %c0_i32_1 = arith.constant 0 : i32
    return %c0_i32, %c0_i32_0 : i32, i32
  }
  func.func @transform_9(%arg0: i32) -> (i32, i32) {
    %c0_i32 = arith.constant 0 : i32
    %c0_i32_0 = arith.constant 0 : i32
    %c0_i32_1 = arith.constant 0 : i32
    return %c0_i32, %c0_i32_0 : i32, i32
  }
  func.func @transform_10(%arg0: i32) -> (i32, i32) {
    %c0_i32 = arith.constant 0 : i32
    %c0_i32_0 = arith.constant 0 : i32
    %c0_i32_1 = arith.constant 0 : i32
    return %c0_i32, %c0_i32_0 : i32, i32
  }
  func.func @transform_11(%arg0: i32) -> (i32, i32) {
    %c0_i32 = arith.constant 0 : i32
    %c0_i32_0 = arith.constant 0 : i32
    %c0_i32_1 = arith.constant 0 : i32
    return %c0_i32, %c0_i32_0 : i32, i32
  }
  func.func @transform_12(%arg0: i32) -> (i32, i32) {
    %c0_i32 = arith.constant 0 : i32
    %c0_i32_0 = arith.constant 0 : i32
    %c0_i32_1 = arith.constant 0 : i32
    return %c0_i32, %c0_i32_0 : i32, i32
  }
  func.func @transform_13(%arg0: i32) -> (i32, i32) {
    %c0_i32 = arith.constant 0 : i32
    %c0_i32_0 = arith.constant 0 : i32
    %c0_i32_1 = arith.constant 0 : i32
    return %c0_i32, %c0_i32_0 : i32, i32
  }
  func.func @transform_14(%arg0: i32) -> (i32, i32) {
    %c0_i32 = arith.constant 0 : i32
    %c0_i32_0 = arith.constant 0 : i32
    %c0_i32_1 = arith.constant 0 : i32
    return %c0_i32, %c0_i32_0 : i32, i32
  }
  func.func @transform_15(%arg0: i32) -> (i32, i32) {
    %c0_i32 = arith.constant 0 : i32
    %c0_i32_0 = arith.constant 0 : i32
    %c0_i32_1 = arith.constant 0 : i32
    return %c0_i32, %c0_i32_0 : i32, i32
  }
  func.func @transform_16(%arg0: i32) -> (i32, i32) {
    %c0_i32 = arith.constant 0 : i32
    %c0_i32_0 = arith.constant 0 : i32
    %c0_i32_1 = arith.constant 0 : i32
    return %c0_i32, %c0_i32_0 : i32, i32
  }
  func.func @transform_17(%arg0: i32) -> (i32, i32) {
    %c0_i32 = arith.constant 0 : i32
    %c0_i32_0 = arith.constant 0 : i32
    %c0_i32_1 = arith.constant 0 : i32
    return %c0_i32, %c0_i32_0 : i32, i32
  }
  func.func @transform_18(%arg0: i32) -> (i32, i32) {
    %c0_i32 = arith.constant 0 : i32
    %c0_i32_0 = arith.constant 0 : i32
    %c0_i32_1 = arith.constant 0 : i32
    return %c0_i32, %c0_i32_0 : i32, i32
  }
  func.func @transform_19(%arg0: i32) -> (i32, i32, i32) {
    %c0_i32 = arith.constant 0 : i32
    %c0_i32_0 = arith.constant 0 : i32
    %c0_i32_1 = arith.constant 0 : i32
    return %arg0, %c0_i32, %c0_i32_0 : i32, i32, i32
  }
}

</mosaic_0001>

<bundles_post_ra>
// kernel: phishing_gat_forward.1
= control target key start
LH: loop header
LB: loop body
LE: loop exit
PB: predicated region body
PF: predicated region fallthrough
CT: control target
= control target key end

     0   :  { %s17095_s0 = inlined_call_operand.vmem [shape: f32[2,16,8], index: 0, kind: input, shape index: {}]   ;;  %s17096_s1 = inlined_call_operand.vmem [shape: f32[2,16,64], index: 1, kind: input, shape index: {}]   ;;  %s17097_s2 = inlined_call_operand.vmem [shape: f32[2,16,16], index: 2, kind: input, shape index: {}]   ;;  %s17098_s3 = inlined_call_operand.vmem [shape: f32[16,64], index: 3, kind: input, shape index: {}]   ;;  %s17099_s4 = inlined_call_operand.vmem [shape: f32[64,64], index: 4, kind: input, shape index: {}]   ;;  %s17100_s5 = inlined_call_operand.vmem [shape: f32[64,16], index: 5, kind: input, shape index: {}]   ;;  %s17101_s6 = inlined_call_operand.vmem [shape: f32[64,32], index: 6, kind: input, shape index: {}]   ;;  %s17102_s7 = inlined_call_operand.vmem [shape: f32[8,32], index: 7, kind: input, shape index: {}]   ;;  %s17103_s8 = inlined_call_operand.vmem [shape: f32[32,64], index: 8, kind: input, shape index: {}]   ;;  %s17104_s9 = inlined_call_operand.vmem [shape: f32[32,64], index: 9, kind: input, shape index: {}]   ;;  %s17105_s10 = inlined_call_operand.vmem [shape: f32[1,32], index: 10, kind: input, shape index: {}]   ;;  %s17106_s11 = inlined_call_operand.vmem [shape: f32[32,32], index: 11, kind: input, shape index: {}]   ;;  %s17107_s12 = inlined_call_operand.hbm [shape: f32[32,64], index: 12, kind: input, shape index: {}]   ;;  %s17108_s13 = inlined_call_operand.hbm [shape: f32[32,64], index: 13, kind: input, shape index: {}]   ;;  %s17109_s14 = inlined_call_operand.hbm [shape: f32[1,32], index: 14, kind: input, shape index: {}]   ;;  %s17110_s15 = inlined_call_operand.vmem [shape: f32[32,4], index: 15, kind: input, shape index: {}]   ;;  %s17111_s16 = inlined_call_operand.hbm [shape: f32[4,16], index: 16, kind: input, shape index: {}]   ;;  %s17112_s17 = inlined_call_operand.hbm [shape: f32[4,16], index: 17, kind: input, shape index: {}]   ;;  %s17113_s18 = inlined_call_operand.hbm [shape: f32[1,4], index: 18, kind: input, shape index: {}]   ;;  %s17114_s19 = inlined_call_operand.vmem [shape: f32[2,16,4], index: 19, kind: output, shape index: {}]  }
   0x1   :  { %17158 = sst [smem:[#allocation40_spill]] %s17095_s0 }
   0x2   :  { %17159 = sst [smem:[#allocation41_spill]] %s17096_s1 }
   0x3   :  { %17160 = sst [smem:[#allocation42_spill]] %s17097_s2 }
   0x4   :  { %17161 = sst [smem:[#allocation43_spill]] %s17098_s3 }
   0x5   :  { %17162 = sst [smem:[#allocation44_spill]] %s17105_s10 }
   0x6   :  { %17163 = sst [smem:[#allocation45_spill]] %s17106_s11 }
   0x7   :  { %17164 = sst [smem:[#allocation46_spill]] %s17110_s15 }
   0x8   :  { %17165 = sst [smem:[#allocation47_spill]] %s17114_s19 }
   0x9   :  { %24 = vsyncpa [#allocation3], 0 }
   0xa   :  { %25 = vsyncpa [#allocation5], 0 }
   0xb   :  { %26 = vsyncpa [#allocation8], 0 }
   0xc   :  { %27 = vsyncpa [#allocation11], 0  ;;  %s15771_s0 = smov 0  }
   0xd LB: > { %17166 = sst [smem:[#allocation16_spill]] %s15657_s0  ;;  %s15777_s30 = sadd.s32 4294967295, %s15657_s0   ;;  %s15657_s0 = sphi %s15771_s0, %s33_s0  }
   0xe   : > { %p12125_p0 = scmp.ge.s32.totalorder %s15657_s0, 1  ;;  %p478_p1 = scmp.lt.s32.totalorder %s15657_s0, 3 }
   0xf   : > { %p17119_p2 = scmp.eq.s32.totalorder %s15777_s30, 0  ;;  %s15659_s21 = smov [#allocation4]  }
  0x10   : > { %p15782_p3 = pnand %p12125_p0, %p478_p1  ;;  %s530_s1 = sshll.u32 %s15659_s21, 4  ;;  %s15786_s1 = int_to_ptr.vmem [resolvable:$true] %s530_s1 }
  0x11   : > { %s15660_s22 = smov [#allocation7]   ;;  %s15661_s24 = smov [#allocation2]  }
  0x12   : > { %s17167_s20 = scalar_select %p15782_p3, 1, 0 }
  0x13   : > { %p15380_p4 = pneg %p15782_p3  ;;  %s558_s2 = sshll.u32 %s15660_s22, 4  ;;  %s15790_s2 = int_to_ptr.vmem [resolvable:$true] %s558_s2 }
  0x14   : > { %s517_s25 = sshll.u32 %s15661_s24, 4  ;;  %s15662_s3 = smov [#allocation6]   ;;  %s15798_s25 = int_to_ptr.vmem [resolvable:$true] %s517_s25 }
  0x15   : > { %p15794_p5 = pnand %p17119_p2, %p15380_p4  ;;  %s15800_s26 = sshll.u32 %s15662_s3, 4  ;;  %s545_s26 = int_to_ptr.vmem [resolvable:$true] %s15800_s26 }
  0x16   : > { %s15467_s29 = scalar_lea.hbm %s17108_s13, 512 }
  0x17   : > { %p15468_p6 = scmp.ne.s32.totalorder %s17108_s13, %s15467_s29  ;;  %p15810_p7 = pneg %p15794_p5 }
  0x18   : > { %p15474_p10 = scmp.lt.u32.totalorder %s15467_s29, %s17108_s13 }
  0x19   : > { %p15470_p8 = pnand %p15810_p7, %p15468_p6 }
  0x1b   : > { %p15471_p9 = pneg %p15470_p8 }
  0x1d   : > { %p15476_p11 = pnand %p15474_p10, %p15471_p9 }
  0x1f   : > { %15479 = shalt.err (!%p15476_p11)
}
  0x20   : > { %s15480_s27 = scalar_lea.vmem %s15786_s1, 512  ;;  %p15488_p1 = scmp.lt.s32.totalorder %s15786_s1, %s15786_s1 }
  0x21   : > { %p15481_p12 = scmp.ne.s32.totalorder %s15786_s1, %s15480_s27  ;;  %p15489_p4 = scmp.lt.s32.totalorder %s15480_s27, %s15480_s27 }
  0x23   : > { %p15483_p13 = pnand %p15481_p12, %p15810_p7  ;;  %p15490_p6 = por %p15489_p4, %p15488_p1 }
  0x25   : > { %p15484_p0 = pneg %p15483_p13 }
  0x27   : > { %p15491_p8 = pnand %p15490_p6, %p15484_p0 }
  0x29   : > { %15494 = shalt.err (!%p15491_p8)
}
  0x2a   : > { %s15663_s28 = smov 128   ;;  %s15664_s29 = smov 8  }
  0x2b   : > { %15386 = dma.hbm_to_vmem [thread:$0]  (!%p15794_p5), %s17108_s13, 512, %s15786_s1, [#allocation5], %s15663_s28, %s15663_s28, %s15664_s29  }
  0x2c   : > { %s15495_s27 = scalar_lea.hbm %s17111_s16, 64 }
  0x2d   : > { %p15496_p9 = scmp.ne.s32.totalorder %s17111_s16, %s15495_s27  ;;  %p15502_p12 = scmp.lt.u32.totalorder %s15495_s27, %s17111_s16 }
  0x2f   : > { %p15498_p10 = pnand %p15496_p9, %p15810_p7 }
  0x31   : > { %p15499_p11 = pneg %p15498_p10 }
  0x33   : > { %p15504_p13 = pnand %p15502_p12, %p15499_p11 }
  0x35   : > { %15507 = shalt.err (!%p15504_p13)
}
  0x36   : > { %s15508_s1 = scalar_lea.vmem %s15790_s2, 64  ;;  %p15516_p6 = scmp.lt.s32.totalorder %s15790_s2, %s15790_s2 }
  0x37   : > { %p15509_p0 = scmp.ne.s32.totalorder %s15790_s2, %s15508_s1  ;;  %p15517_p8 = scmp.lt.s32.totalorder %s15508_s1, %s15508_s1 }
  0x39   : > { %p15511_p1 = pnand %p15509_p0, %p15810_p7  ;;  %p15518_p9 = por %p15517_p8, %p15516_p6 }
  0x3b   : > { %p15512_p4 = pneg %p15511_p1 }
  0x3d   : > { %p15519_p10 = pnand %p15518_p9, %p15512_p4 }
  0x3f   : > { %15522 = shalt.err (!%p15519_p10)
}
  0x40   : > { %15392 = dma.hbm_to_vmem [thread:$0]  (!%p15794_p5), %s17111_s16, 64, %s15790_s2, [#allocation8]  }
  0x41   : > { %s15523_s21 = scalar_lea.hbm %s17107_s12, 512 }
  0x42   : > { %p15524_p11 = scmp.ne.s32.totalorder %s17107_s12, %s15523_s21  ;;  %p15530_p0 = scmp.lt.u32.totalorder %s15523_s21, %s17107_s12 }
  0x44   : > { %p15526_p12 = pnand %p15524_p11, %p15810_p7 }
  0x46   : > { %p15527_p13 = pneg %p15526_p12 }
  0x48   : > { %p15532_p1 = pnand %p15530_p0, %p15527_p13 }
  0x4a   : > { %15535 = shalt.err (!%p15532_p1)
}
  0x4b   : > { %s15536_s2 = scalar_lea.vmem %s15798_s25, 512  ;;  %p15544_p9 = scmp.lt.s32.totalorder %s15798_s25, %s15798_s25 }
  0x4c   : > { %p15537_p4 = scmp.ne.s32.totalorder %s15798_s25, %s15536_s2  ;;  %p15545_p10 = scmp.lt.s32.totalorder %s15536_s2, %s15536_s2 }
  0x4e   : > { %p15539_p6 = pnand %p15537_p4, %p15810_p7  ;;  %p15546_p11 = por %p15545_p10, %p15544_p9 }
  0x50   : > { %p15540_p8 = pneg %p15539_p6 }
  0x52   : > { %p15547_p12 = pnand %p15546_p11, %p15540_p8 }
  0x54   : > { %15550 = shalt.err (!%p15547_p12)
}
  0x55   : > { %15383 = dma.hbm_to_vmem [thread:$0]  (!%p15794_p5), %s17107_s12, 512, %s15798_s25, [#allocation3], %s15663_s28, %s15663_s28, %s15664_s29  }
  0x56   : > { %s15551_s19 = scalar_lea.hbm %s17109_s14, 16 }
  0x57   : > { %p15552_p13 = scmp.ne.s32.totalorder %s17109_s14, %s15551_s19  ;;  %p15558_p4 = scmp.lt.u32.totalorder %s15551_s19, %s17109_s14 }
  0x59   : > { %p15554_p0 = pnand %p15552_p13, %p15810_p7 }
  0x5b   : > { %p15555_p1 = pneg %p15554_p0 }
  0x5d   : > { %p15560_p6 = pnand %p15558_p4, %p15555_p1 }
  0x5f   : > { %15563 = shalt.err (!%p15560_p6)
}
  0x60   : > { %s15564_s27 = scalar_lea.vmem %s545_s26, 16  ;;  %s15571_s25 = scalar_lea.vmem %s545_s26, 32 }
  0x61   : > { %p15565_p8 = scmp.ne.s32.totalorder %s545_s26, %s15564_s27  ;;  %p15572_p11 = scmp.lt.s32.totalorder %s545_s26, %s545_s26 }
  0x62   : > { %p15573_p12 = scmp.lt.s32.totalorder %s15571_s25, %s15564_s27 }
  0x63   : > { %p15567_p9 = pnand %p15565_p8, %p15810_p7 }
  0x64   : > { %p15574_p2 = por %p15573_p12, %p15572_p11 }
  0x65   : > { %p15568_p10 = pneg %p15567_p9 }
  0x67   : > { %p15575_p3 = pnand %p15574_p2, %p15568_p10 }
  0x69   : > { %15578 = shalt.err (!%p15575_p3)
}
  0x6a   : > { %15389 = dma.hbm_to_vmem [thread:$0]  (!%p15794_p5), %s17109_s14, 16, %s545_s26, [#allocation5]  }
  0x6b   : > { %s15665_s2 = smov [#allocation9]   ;;  %s15666_s10 = smov [#allocation10]  }
  0x6c   : > { %s569_s1 = sshll.u32 %s15665_s2, 4  ;;  %s580_s11 = sshll.u32 %s15666_s10, 4  ;;  %s570_s1 = int_to_ptr.vmem [resolvable:$true] %s569_s1  ;;  %s581_s11 = int_to_ptr.vmem [resolvable:$true] %s580_s11 }
  0x6d   : > { %s15579_s21 = scalar_lea.hbm %s17112_s17, 64 }
  0x6e   : > { %p15580_p2 = scmp.ne.s32.totalorder %s17112_s17, %s15579_s21  ;;  %p15586_p0 = scmp.lt.u32.totalorder %s15579_s21, %s17112_s17 }
  0x70   : > { %p15582_p3 = pnand %p15580_p2, %p15810_p7 }
  0x72   : > { %p15583_p13 = pneg %p15582_p3 }
  0x74   : > { %p15588_p1 = pnand %p15586_p0, %p15583_p13 }
  0x76   : > { %15591 = shalt.err (!%p15588_p1)
}
  0x77   : > { %s15592_s26 = scalar_lea.vmem %s570_s1, 64  ;;  %p15600_p9 = scmp.lt.s32.totalorder %s570_s1, %s570_s1 }
  0x78   : > { %p15593_p4 = scmp.ne.s32.totalorder %s570_s1, %s15592_s26  ;;  %p15601_p10 = scmp.lt.s32.totalorder %s15592_s26, %s15592_s26 }
  0x7a   : > { %p15595_p6 = pnand %p15593_p4, %p15810_p7  ;;  %p15602_p11 = por %p15601_p10, %p15600_p9 }
  0x7c   : > { %p15596_p8 = pneg %p15595_p6 }
  0x7e   : > { %p15603_p12 = pnand %p15602_p11, %p15596_p8 }
  0x80   : > { %15606 = shalt.err (!%p15603_p12)
}
  0x81   : > { %15395 = dma.hbm_to_vmem [thread:$0]  (!%p15794_p5), %s17112_s17, 64, %s570_s1, [#allocation8]  }
  0x82   : > { %s15607_s10 = scalar_lea.hbm %s17113_s18, 16 }
  0x83   : > { %p15608_p2 = scmp.ne.s32.totalorder %s17113_s18, %s15607_s10  ;;  %p15614_p0 = scmp.lt.u32.totalorder %s15607_s10, %s17113_s18 }
  0x85   : > { %p15610_p3 = pnand %p15608_p2, %p15810_p7 }
  0x87   : > { %p15611_p13 = pneg %p15610_p3 }
  0x89   : > { %p15616_p1 = pnand %p15614_p0, %p15611_p13 }
  0x8b   : > { %15619 = shalt.err (!%p15616_p1)
}
  0x8c   : > { %s15620_s24 = scalar_lea.vmem %s581_s11, 16  ;;  %s15627_s1 = scalar_lea.vmem %s581_s11, 32 }
  0x8d   : > { %p15621_p4 = scmp.ne.s32.totalorder %s581_s11, %s15620_s24  ;;  %p15628_p9 = scmp.lt.s32.totalorder %s581_s11, %s581_s11 }
  0x8e   : > { %p15629_p10 = scmp.lt.s32.totalorder %s15627_s1, %s15620_s24 }
  0x8f   : > { %p15623_p6 = pnand %p15621_p4, %p15810_p7 }
  0x90   : > { %p15630_p11 = por %p15629_p10, %p15628_p9 }
  0x91   : > { %p15624_p8 = pneg %p15623_p6 }
  0x93   : > { %p15631_p12 = pnand %p15630_p11, %p15624_p8 }
  0x95   : > { %15634 = shalt.err (!%p15631_p12)
}
  0x96   : > { %15398 = dma.hbm_to_vmem [thread:$0]  (!%p15794_p5), %s17113_s18, 16, %s581_s11, [#allocation11]  }
  0x97   : > { %p17170_p2 = scmp.ne.s32.totalorder %s17167_s20, 0 }
  0x99   : > { %617 = sbr.rel (%p17170_p2) target bundleno = 4999 (0x1387), region = 96 }
  0xa0   : > { %p17171_p3 = scmp.eq.s32.totalorder %s15777_s30, 0 }
  0xa2   : > { %15640 = dma.done.wait (%p17171_p3), [#allocation3], 512   ;;  %p17172_p7 = pmov %p17171_p3 }
  0xa3   : > { %p17173_p13 = pmov %p17171_p3 }
  0xa4   : > { %15642 = vsyncadd (%p17172_p7), [#allocation3], 4294966784 }
  0xa5   : > { %15644 = dma.done.wait (%p17173_p13), [#allocation5], 528   ;;  %p17174_p0 = pmov %p17171_p3 }
  0xa7   : > { %15646 = vsyncadd (%p17174_p0), [#allocation5], 4294966768  ;;  %p17175_p1 = pmov %p17174_p0 }
  0xa8   : > { %p17176_p5 = pmov %p17174_p0 }
  0xa9   : > { %15648 = dma.done.wait (%p17175_p1), [#allocation8], 128  }
  0xaa   : > { %15650 = vsyncadd (%p17176_p5), [#allocation8], 4294967168  ;;  %p17177_p4 = pmov %p17174_p0 }
  0xab   : > { %p17178_p6 = pmov %p17174_p0 }
  0xac   : > { %15652 = dma.done.wait (%p17177_p4), [#allocation11], 16  }
  0xad   : > { %15654 = vsyncadd (%p17178_p6), [#allocation11], 4294967280  ;;  %p703_p8 = scmp.lt.s32.totalorder %s15777_s30, 1  ;;  %s17179_s11 = sld [smem:[#allocation40_spill]]  ;;  %vm776_vm0 = vcmask 64512   ;;  %v766_v0 = vld [vmem:[%s17102_s7] sm:$0xff] }
  0xae   : > { %v784_v3 = vand.u32 4294901760, %v766_v0  ;;  %v771_v20 = vld [vmem:[%s17104_s9] sm:$0xff]  ;;  %v772_v21 = vld [vmem:[%s17104_s9 + $0x8] sm:$0xff]  ;;  %v773_v27 = vld [vmem:[%s17104_s9 + $0x10] sm:$0xff]  ;;  %vm1272_vm1 = vcmask 261120   ;;  %vm1809_vm2 = vcmask 130048  }
  0xaf   : > { %s17240_s30 = smov (!%p703_p8, %s15777_s30), 1  ;;  %v1280_v22 = vand.u32 4294901760, %v771_v20  ;;  %v1283_v23 = vand.u32 4294901760, %v772_v21  ;;  %v774_v28 = vld [vmem:[%s17104_s9 + $0x18] sm:$0xff]  ;;  %v1286_v29 = vand.u32 4294901760, %v773_v27  ;;  %s17180_s3 = sld [smem:[#allocation43_spill]] }
  0xb0   : > { %s15958_s0 = sshll.u32 %s17240_s30, 4  ;;  %12924 = vmatprep.subr.mxu0 %v784_v3  ;;  %v871_v8 = vsub.f32 %v766_v0, %v784_v3  ;;  %v1289_v30 = vand.u32 4294901760, %v774_v28  ;;  %s17196_s15 = sld [smem:[#allocation41_spill]]  ;;  %vm2851_vm5 = vcmask 523264   ;;  %vm9473_vm8 = vcmask 1043456  }
  0xb1   : > { %12925 = vmatpush3.msra.mxu0 %v784_v3  ;;  %v15973_v24 = vpack.c.bf16 %v1283_v23, %v1280_v22  ;;  %v1370_v25 = vsub.f32 %v771_v20, %v1280_v22  ;;  %v1377_v26 = vsub.f32 %v772_v21, %v1283_v23  ;;  %v1384_v36 = vsub.f32 %v773_v27, %v1286_v29  ;;  %s17209_s24 = sld [smem:[#allocation45_spill]]  ;;  %s17210_s30 = sld [smem:[#allocation44_spill]] }
  0xb2   : > { %v872_v11 = vand.u32 4294901760, %v871_v8  ;;  %v15983_v33 = vpack.c.bf16 %v1289_v30, %v1286_v29  ;;  %v1391_v37 = vsub.f32 %v774_v28, %v1289_v30  ;;  %s17235_s1 = sld [smem:[#allocation46_spill]]  ;;  %vm9466_vm9 = vcmask 31744  }
  0xb3   : > { %s707_s26 = scalar_lea.vmem %s17179_s11, %s15958_s0  ;;  %14263 = vmatprep.subr.bf16.mxu1 %v15973_v24  ;;  %v1371_v31 = vand.u32 4294901760, %v1370_v25  ;;  %v1378_v32 = vand.u32 4294901760, %v1377_v26  ;;  %v1385_v40 = vand.u32 4294901760, %v1384_v36  ;;  %v14278_v48 = vpack.c.bf16 %v1377_v26, %v1370_v25 }
  0xb4   : > { %v734_v1 = vld [vmem:[%s707_s26] sm:$0xff]  ;;  %v735_v2 = vld [vmem:[%s707_s26 + $0x8] sm:$0xff]  ;;  %v873_v14 = vsub.f32 %v871_v8, %v872_v11  ;;  %14265 = vmatpush3.bf16.msra.mxu1 %v15973_v24  ;;  %v1392_v41 = vand.u32 4294901760, %v1391_v37  ;;  %v14282_v49 = vpack.c.bf16 %v1391_v37, %v1384_v36 }
  0xb5   : > { %v778_v4 = vsel %vm776_vm0, %v734_v1, 0  ;;  %v781_v5 = vsel %vm776_vm0, %v735_v2, 0  ;;  %v1372_v34 = vsub.f32 %v1370_v25, %v1371_v31  ;;  %v1379_v35 = vsub.f32 %v1377_v26, %v1378_v32  ;;  %14267 = vmatprep.subr.bf16.mxu1 %v15983_v33  ;;  %v741_v22 = vld [vmem:[%s17180_s3 + $0x8] sm:$0xff]  ;;  %v740_v23 = vld [vmem:[%s17180_s3] sm:$0xff] }
  0xb6   : > { %v849_v6 = vand.u32 4294901760, %v778_v4  ;;  %v859_v7 = vand.u32 4294901760, %v781_v5  ;;  %v874_v17 = vand.u32 4294901760, %v873_v14  ;;  %v1386_v43 = vsub.f32 %v1384_v36, %v1385_v40  ;;  %s16307_s19 = scalar_lea.vmem %s17196_s15, %s15958_s0  ;;  %s17237_s15 = sld [smem:[#allocation47_spill]] }
  0xb7   : > { %v1373_v38 = vand.u32 4294901760, %v1372_v34  ;;  %v1380_v39 = vand.u32 4294901760, %v1379_v35  ;;  %v1393_v44 = vsub.f32 %v1391_v37, %v1392_v41  ;;  %v14294_v50 = vpack.c.bf16 %v1378_v32, %v1371_v31 }
  0xb8   : > { %v850_v9 = vsub.f32 %v778_v4, %v849_v6  ;;  %v860_v10 = vsub.f32 %v781_v5, %v859_v7  ;;  %12929 = vmatprep.subr.mxu0 %v874_v17  ;;  %14269 = vmatpush3.bf16.msra.mxu1 %v15983_v33  ;;  %v1387_v45 = vand.u32 4294901760, %v1386_v43  ;;  %v14298_v51 = vpack.c.bf16 %v1392_v41, %v1385_v40  ;;  %v767_v43 = vld [vmem:[%s17103_s8] sm:$0xff] }
  0xb9   : > { %v14270_v42 = vpack.c.bf16 %v1380_v39, %v1373_v38  ;;  %v1394_v46 = vand.u32 4294901760, %v1393_v44  ;;  %v17121_v41 = vmov 1.0   ;;  %v768_v44 = vld [vmem:[%s17103_s8 + $0x8] sm:$0xff] }
  0xba   : > { %v851_v12 = vand.u32 4294901760, %v850_v9  ;;  %v861_v13 = vand.u32 4294901760, %v860_v10 }
  0xbb   : > { %14271 = vmatprep.subr.bf16.mxu1 %v14270_v42  ;;  %v14274_v47 = vpack.c.bf16 %v1394_v46, %v1387_v45  ;;  %v2316_v45 = vand.u32 4294901760, %v767_v43  ;;  %v2319_v46 = vand.u32 4294901760, %v768_v44 }
  0xbc   : > { %v852_v15 = vsub.f32 %v850_v9, %v851_v12  ;;  %v862_v16 = vsub.f32 %v860_v10, %v861_v13  ;;  %s722_s21 = scalar_lea.vmem %s17237_s15, %s15958_s0 }
  0xbe   : > { %v853_v18 = vand.u32 4294901760, %v852_v15  ;;  %v863_v19 = vand.u32 4294901760, %v862_v16  ;;  %v15667_v16 = vmov 0  }
  0xc0   : > { %12926 = vmatprep.mubr.f32.mxu0 %v853_v18 }
  0xc1   : > { %12927 = vmatmul.mubr.f32.vlgmr.msra.gmra.mrb[0].mxu0 %v863_v19 }
  0xc2   : > { %12930 = vmatpush3.msra.mxu0 %v874_v17  ;;  %12931 = vmatprep.mubr.f32.mxu0 %v849_v6  ;;  %v1811_v17 = vsel %vm1809_vm2, 1.0, %v15667_v16 }
  0xc3   : > { %12934 = vmatprep.subr.mxu0 %v871_v8  ;;  %v16042_v18 = vsub.f32 %v1811_v17, %v1811_v17 }
  0xc5   : > { %v16045_v19 = vand.u32 4294901760, %v16042_v18 }
  0xc7   : > { %v1883_v20 = vsub.f32 %v16042_v18, %v16045_v19 }
  0xc9   : > { %12932 = vmatmul.mubr.f32.vlgmr.msra.gmra.mrb[0].mxu0 %v859_v7  ;;  %v16049_v21 = vand.u32 4294901760, %v1883_v20 }
  0xca   : > { %12935 = vmatpush3.msra.mxu0 %v871_v8  ;;  %12936 = vmatprep.mubr.f32.mxu0 %v850_v9 }
  0xcb   : > { %12939 = vmatprep.subr.mxu0 %v784_v3 }
  0xd1   : > { %12937 = vmatmul.mubr.f32.vlgmr.msra.gmra.mrb[0].mxu0 %v860_v10 }
  0xd2   : > { %12940 = vmatpush3.msra.mxu0 %v784_v3  ;;  %12941 = vmatprep.mubr.f32.mxu0 %v851_v12 }
  0xd3   : > { %12944 = vmatprep.subr.mxu0 %v872_v11 }
  0xd9   : > { %12942 = vmatmul.mubr.f32.vlgmr.msra.gmra.mrb[0].mxu0 %v861_v13 }
  0xda   : > { %12945 = vmatpush3.msra.mxu0 %v872_v11  ;;  %12946 = vmatprep.mubr.f32.mxu0 %v849_v6 }
  0xdb   : > { %12949 = vmatprep.subr.mxu0 %v784_v3 }
  0xe1   : > { %12947 = vmatmul.mubr.f32.vlgmr.msra.gmra.mrb[0].mxu0 %v859_v7 }
  0xe2   : > { %12950 = vmatpush3.msra.mxu0 %v784_v3  ;;  %12951 = vmatprep.mubr.f32.mxu0 %v849_v6 }
  0xe9   : > { %12952 = vmatmul.mubr.f32.vlgmr.msra.gmra.mrb[0].mxu0 %v859_v7 }
  0xea   : > { %13024 = vmatprep.mubr.f32.mxu0 %v16049_v21 }
 0x1bc   : > { %v12953_v52 = vpop.f32.mrb[0].mxu0 }
 0x1bd   : > { %v1277_v53 = vsel %vm1272_vm1, %v12953_v52, 0  ;;  %v3482_v54 = vand.u32 4294901760, %v12953_v52  ;;  %v1262_v55 = vpop.f32.mrb[1].mxu0 }
 0x1be   : > { %v15988_v56 = vand.u32 4294901760, %v1277_v53  ;;  %v1274_v57 = vsel %vm1272_vm1, %v1262_v55, 0  ;;  %v3479_v58 = vand.u32 4294901760, %v1262_v55 }
 0x1bf   : > { %v3634_v59 = vsub.f32 %v12953_v52, %v3482_v54  ;;  %v15991_v60 = vand.u32 4294901760, %v1274_v57  ;;  %v2413_v52 = vsub.f32 %v768_v44, %v2319_v46  ;;  %v757_v44 = vld [vmem:[%s17100_s5 + $0x38] sm:$0xff] }
 0x1c0   : > { %v15994_v61 = vsub.f32 %v1277_v53, %v15988_v56  ;;  %v15996_v62 = vpack.c.bf16 %v3482_v54, %v3479_v58  ;;  %v3627_v63 = vsub.f32 %v1262_v55, %v3479_v58  ;;  %v16081_v53 = vpack.c.bf16 %v2319_v46, %v2316_v45 }
 0x1c1   : > { %v3635_v0 = vand.u32 4294901760, %v3634_v59  ;;  %v15999_v1 = vsub.f32 %v1274_v57, %v15991_v60  ;;  %v2414_v55 = vand.u32 4294901760, %v2413_v52 }
 0x1c2   : > { %v3628_v2 = vand.u32 4294901760, %v3627_v63  ;;  %v16002_v3 = vand.u32 4294901760, %v15994_v61  ;;  %v16004_v4 = vpack.c.bf16 %v3634_v59, %v3627_v63 }
 0x1c3   : > { %v16007_v5 = vand.u32 4294901760, %v15999_v1  ;;  %v3636_v6 = vsub.f32 %v3634_v59, %v3635_v0 }
 0x1c4   : > { %v1361_v7 = vsub.f32 %v15994_v61, %v16002_v3  ;;  %v3629_v8 = vsub.f32 %v3627_v63, %v3628_v2  ;;  %v16011_v9 = vpack.c.bf16 %v3635_v0, %v3628_v2  ;;  %v2415_v63 = vsub.f32 %v2413_v52, %v2414_v55 }
 0x1c5   : > { %v1351_v10 = vsub.f32 %v15999_v1, %v16007_v5  ;;  %v3637_v11 = vand.u32 4294901760, %v3636_v6 }
 0x1c6   : > { %v3630_v12 = vand.u32 4294901760, %v3629_v8  ;;  %v16017_v14 = vand.u32 4294901760, %v1361_v7  ;;  %v2416_v8 = vand.u32 4294901760, %v2415_v63 }
 0x1c7   : > { %v16015_v13 = vand.u32 4294901760, %v1351_v10 }
 0x1c8   : > { %v16019_v15 = vpack.c.bf16 %v3637_v11, %v3630_v12 }
 0x1c9   : > { %12962 = vmatprep.mubr.f32.mxu1 %v16015_v13 }
 0x1ca   : > { %12963 = vmatmul.mubr.f32.vlgmr.msra.gmra.mrb[0].mxu1 %v16017_v14 }
 0x1cb   : > { %14273 = vmatpush3.bf16.msra.mxu1 %v14270_v42  ;;  %12973 = vmatprep.mubr.f32.mxu1 %v15991_v60 }
 0x1cc   : > { %14275 = vmatprep.subr.bf16.mxu1 %v14274_v47 }
 0x1cf   : > { %14277 = vmatpush3.bf16.msra.mxu1 %v14274_v47  ;;  %v769_v47 = vld [vmem:[%s17103_s8 + $0x10] sm:$0xff] }
 0x1d0   : > { %14279 = vmatprep.subr.bf16.mxu1 %v14278_v48 }
 0x1d2   : > { %12974 = vmatmul.mubr.f32.vlgmr.msra.gmra.mrb[0].mxu1 %v15988_v56 }
 0x1d3   : > { %14281 = vmatpush3.bf16.msra.mxu1 %v14278_v48  ;;  %12984 = vmatprep.mubr.f32.mxu1 %v15999_v1  ;;  %v770_v48 = vld [vmem:[%s17103_s8 + $0x18] sm:$0xff] }
 0x1d4   : > { %14283 = vmatprep.subr.bf16.mxu1 %v14282_v49 }
 0x1d7   : > { %14285 = vmatpush3.bf16.msra.mxu1 %v14282_v49  ;;  %v2322_v49 = vand.u32 4294901760, %v769_v47 }
 0x1d8   : > { %14287 = vmatprep.subr.bf16.mxu1 %v15973_v24 }
 0x1d9   : > { %v2420_v57 = vsub.f32 %v769_v47, %v2322_v49 }
 0x1da   : > { %12985 = vmatmul.mubr.f32.vlgmr.msra.gmra.mrb[0].mxu1 %v15994_v61 }
 0x1db   : > { %14289 = vmatpush3.bf16.msra.mxu1 %v15973_v24  ;;  %12995 = vmatprep.mubr.f32.mxu1 %v16007_v5  ;;  %v2421_v0 = vand.u32 4294901760, %v2420_v57 }
 0x1dc   : > { %14291 = vmatprep.subr.bf16.mxu1 %v15983_v33 }
 0x1dd   : > { %v2422_v10 = vsub.f32 %v2420_v57, %v2421_v0 }
 0x1df   : > { %14293 = vmatpush3.bf16.msra.mxu1 %v15983_v33  ;;  %v2423_v16 = vand.u32 4294901760, %v2422_v10 }
 0x1e0   : > { %14295 = vmatprep.subr.bf16.mxu1 %v14294_v50 }
 0x1e2   : > { %12996 = vmatmul.mubr.f32.vlgmr.msra.gmra.mrb[0].mxu1 %v16002_v3 }
 0x1e3   : > { %14297 = vmatpush3.bf16.msra.mxu1 %v14294_v50  ;;  %13006 = vmatprep.mubr.f32.mxu1 %v15991_v60  ;;  %v2325_v50 = vand.u32 4294901760, %v770_v48 }
 0x1e4   : > { %14299 = vmatprep.subr.bf16.mxu1 %v14298_v51 }
 0x1e5   : > { %v2427_v58 = vsub.f32 %v770_v48, %v2325_v50  ;;  %v16088_v6 = vpack.c.bf16 %v2325_v50, %v2322_v49 }
 0x1e7   : > { %14301 = vmatpush3.bf16.msra.mxu1 %v14298_v51  ;;  %v2406_v51 = vsub.f32 %v767_v43, %v2316_v45  ;;  %v2428_v2 = vand.u32 4294901760, %v2427_v58 }
 0x1e8   : > { %14303 = vmatprep.subr.bf16.mxu1 %v15973_v24 }
 0x1e9   : > { %v2407_v54 = vand.u32 4294901760, %v2406_v51  ;;  %v2429_v11 = vsub.f32 %v2427_v58, %v2428_v2 }
 0x1ea   : > { %13007 = vmatmul.mubr.f32.vlgmr.msra.gmra.mrb[0].mxu1 %v15988_v56 }
 0x1eb   : > { %14305 = vmatpush3.bf16.msra.mxu1 %v15973_v24  ;;  %13017 = vmatprep.mubr.f32.mxu1 %v15991_v60  ;;  %v2408_v59 = vsub.f32 %v2406_v51, %v2407_v54  ;;  %v2430_v17 = vand.u32 4294901760, %v2429_v11 }
 0x1ec   : > { %14307 = vmatprep.subr.bf16.mxu1 %v15983_v33 }
 0x1ed   : > { %v2409_v7 = vand.u32 4294901760, %v2408_v59  ;;  %v14346_v20 = vpack.c.bf16 %v2430_v17, %v2423_v16 }
 0x1ef   : > { %14309 = vmatpush3.bf16.msra.mxu1 %v15983_v33  ;;  %v14342_v12 = vpack.c.bf16 %v2416_v8, %v2409_v7 }
 0x1f2   : > { %13018 = vmatmul.mubr.f32.vlgmr.msra.gmra.mrb[0].mxu1 %v15988_v56 }
 0x2c5   : > { %v13019_v24 = vpop.f32.mrb[0].mxu1 }
 0x2c6   : > { %v1808_v25 = vmul.f32 %v13019_v24, %v741_v22  ;;  %v1797_v26 = vpop.f32.mrb[1].mxu1  ;;  %v14350_v22 = vpack.c.bf16 %v2413_v52, %v2406_v51  ;;  %v14366_v24 = vpack.c.bf16 %v2414_v55, %v2407_v54  ;;  %v3476_v52 = vsel %vm1809_vm2, %v757_v44, 0  ;;  %v745_v44 = vld [vmem:[%s17099_s4 + $0x18] sm:$0xff] }
 0x2c7   : > { %v1807_v27 = vmul.f32 %v1797_v26, %v740_v23  ;;  %v14354_v23 = vpack.c.bf16 %v2427_v58, %v2420_v57 }
 0x2c8   : > { %v1817_v28 = vand.u32 4294901760, %v1808_v25 }
 0x2c9   : > { %v1814_v29 = vand.u32 4294901760, %v1807_v27 }
 0x2ca   : > { %v1909_v30 = vsub.f32 %v1808_v25, %v1817_v28  ;;  %v752_v25 = vld [vmem:[%s17100_s5 + $0x10] sm:$0xff] }
 0x2cb   : > { %v14310_v31 = vpack.c.bf16 %v1817_v28, %v1814_v29  ;;  %v1902_v32 = vsub.f32 %v1807_v27, %v1814_v29  ;;  %v3461_v27 = vsel %vm1809_vm2, %v752_v25, 0  ;;  %v753_v28 = vld [vmem:[%s17100_s5 + $0x18] sm:$0xff]  ;;  %v754_v29 = vld [vmem:[%s17100_s5 + $0x20] sm:$0xff]  ;;  %v737_v25 = vld [vmem:[%s16307_s19 + $0x8] sm:$0xff] }
 0x2cc   : > { %v1910_v33 = vand.u32 4294901760, %v1909_v30 }
 0x2cd   : > { %v1903_v34 = vand.u32 4294901760, %v1902_v32  ;;  %14311 = vmatprep.subr.bf16.mxu0 %v14310_v31  ;;  %v14318_v35 = vpack.c.bf16 %v1909_v30, %v1902_v32 }
 0x2ce   : > { %14313 = vmatpush3.bf16.msra.mxu0 %v14310_v31  ;;  %v1911_v36 = vsub.f32 %v1909_v30, %v1910_v33 }
 0x2cf   : > { %v1904_v37 = vsub.f32 %v1902_v32, %v1903_v34  ;;  %v14326_v38 = vpack.c.bf16 %v1910_v33, %v1903_v34  ;;  %v16133_v32 = vand.u32 4294901760, %v3461_v27  ;;  %v3464_v33 = vsel %vm1809_vm2, %v753_v28, 0 }
 0x2d0   : > { %v1912_v39 = vand.u32 4294901760, %v1911_v36  ;;  %v3467_v34 = vsel %vm1809_vm2, %v754_v29, 0 }
 0x2d1   : > { %13025 = vmatmul.mubr.f32.vlgmr.msra.gmra.mrb[2].mxu0 %v16049_v21  ;;  %v1905_v40 = vand.u32 4294901760, %v1904_v37 }
 0x2d2   : > { %13031 = vmatprep.mubr.msk.f32.mxu0 %vm1809_vm2, %v17121_v41 }
 0x2d3   : > { %v14314_v42 = vpack.c.bf16 %v1912_v39, %v1905_v40  ;;  %v16152_v39 = vsub.f32 %v3461_v27, %v16133_v32  ;;  %v16154_v40 = vand.u32 4294901760, %v3467_v34 }
 0x2d5   : > { %14315 = vmatprep.subr.bf16.mxu0 %v14314_v42  ;;  %17183 = vst [vmem:[#allocation19_spill] sm:$0xff] %v16152_v39  ;;  %v16176_v49 = vand.u32 4294901760, %v16152_v39  ;;  %v16179_v50 = vsub.f32 %v3467_v34, %v16154_v40  ;;  %v743_v34 = vld [vmem:[%s17099_s4 + $0x8] sm:$0xff] }
 0x2d6   : > { %14317 = vmatpush3.bf16.msra.mxu0 %v14314_v42 }
 0x2d7   : > { %14319 = vmatprep.subr.bf16.mxu0 %v14318_v35  ;;  %17186 = vst [vmem:[#allocation22_spill] sm:$0xff] %v16176_v49  ;;  %17187 = vst [vmem:[#allocation23_spill] sm:$0xff] %v16179_v50  ;;  %v3568_v58 = vsub.f32 %v16152_v39, %v16176_v49  ;;  %v16201_v59 = vand.u32 4294901760, %v16179_v50 }
 0x2d9   : > { %13032 = vmatmul.mubr.msk.f32.vlgmr.msra.gmra.mrb[2].mxu0 %vm1809_vm2, %v17121_v41  ;;  %17190 = vst [vmem:[#allocation26_spill] sm:$0xff] %v16201_v59  ;;  %v16220_v8 = vand.u32 4294901760, %v3568_v58  ;;  %v746_v58 = vld [vmem:[%s17099_s4 + $0x20] sm:$0xff] }
 0x2da   : > { %14321 = vmatpush3.bf16.msra.mxu0 %v14318_v35  ;;  %13038 = vmatprep.mubr.f32.mxu0 %v16042_v18  ;;  %v755_v35 = vld [vmem:[%s17100_s5 + $0x28] sm:$0xff] }
 0x2db   : > { %14323 = vmatprep.subr.bf16.mxu0 %v14310_v31  ;;  %v3470_v42 = vsel %vm1809_vm2, %v755_v35, 0 }
 0x2dc   : > { %v16171_v48 = vand.u32 4294901760, %v3470_v42 }
 0x2e1   : > { %13039 = vmatmul.mubr.f32.vlgmr.msra.gmra.mrb[2].mxu0 %v16042_v18 }
 0x2e2   : > { %14325 = vmatpush3.bf16.msra.mxu0 %v14310_v31  ;;  %13045 = vmatprep.mubr.f32.mxu0 %v16045_v19 }
 0x2e3   : > { %14327 = vmatprep.subr.bf16.mxu0 %v14326_v38 }
 0x2e9   : > { %13046 = vmatmul.mubr.f32.vlgmr.msra.gmra.mrb[2].mxu0 %v16045_v19 }
 0x2ea   : > { %14329 = vmatpush3.bf16.msra.mxu0 %v14326_v38  ;;  %13052 = vmatprep.mubr.msk.f32.mxu0 %vm1809_vm2, %v17121_v41  ;;  %v16149_v38 = vand.u32 4294901760, %v3464_v33 }
 0x2eb   : > { %14331 = vmatprep.subr.bf16.mxu0 %v14310_v31 }
 0x2ec   : > { %v16169_v47 = vsub.f32 %v3464_v33, %v16149_v38  ;;  %v742_v33 = vld [vmem:[%s17099_s4] sm:$0xff] }
 0x2ed   : > { %v2871_v35 = vand.u32 4294901760, %v742_v33 }
 0x2ee   : > { %17185 = vst [vmem:[#allocation21_spill] sm:$0xff] %v16169_v47  ;;  %v16188_v55 = vand.u32 4294901760, %v16169_v47 }
 0x2f0   : > { %17188 = vst [vmem:[#allocation24_spill] sm:$0xff] %v16188_v55 }
 0x2f1   : > { %13053 = vmatmul.mubr.msk.f32.vlgmr.msra.gmra.mrb[2].mxu0 %vm1809_vm2, %v17121_v41 }
 0x2f2   : > { %14333 = vmatpush3.bf16.msra.mxu0 %v14310_v31  ;;  %13059 = vmatprep.mubr.msk.f32.mxu0 %vm1809_vm2, %v17121_v41 }
 0x2f3   : > { %14335 = vmatprep.subr.bf16.mxu0 %v16081_v53 }
 0x2f9   : > { %13060 = vmatmul.mubr.msk.f32.vlgmr.msra.gmra.mrb[2].mxu0 %vm1809_vm2, %v17121_v41 }
 0x2fa   : > { %14337 = vmatpush3.bf16.msra.mxu0 %v16081_v53  ;;  %13070 = vmatprep.mubr.f32.mxu0 %v16015_v13  ;;  %v750_v13 = vld [vmem:[%s17100_s5] sm:$0xff] }
 0x2fb   : > { %14339 = vmatprep.subr.bf16.mxu0 %v16088_v6 }
 0x2fe   : > { %14341 = vmatpush3.bf16.msra.mxu0 %v16088_v6 }
 0x2ff   : > { %14343 = vmatprep.subr.bf16.mxu0 %v14342_v12 }
 0x301   : > { %13071 = vmatmul.mubr.f32.vlgmr.msra.gmra.mrb[2].mxu0 %v16017_v14  ;;  %v3455_v14 = vsel %vm1809_vm2, %v750_v13, 0 }
 0x302   : > { %14345 = vmatpush3.bf16.msra.mxu0 %v14342_v12  ;;  %13081 = vmatprep.mubr.f32.mxu0 %v15991_v60  ;;  %v16115_v26 = vand.u32 4294901760, %v3455_v14 }
 0x303   : > { %14347 = vmatprep.subr.bf16.mxu0 %v14346_v20 }
 0x304   : > { %v16128_v30 = vsub.f32 %v3455_v14, %v16115_v26 }
 0x306   : > { %14349 = vmatpush3.bf16.msra.mxu0 %v14346_v20  ;;  %v16144_v36 = vand.u32 4294901760, %v16128_v30 }
 0x307   : > { %14351 = vmatprep.subr.bf16.mxu0 %v14350_v22 }
 0x308   : > { %17181 = vst [vmem:[#allocation17_spill] sm:$0xff] %v16144_v36  ;;  %v3548_v45 = vsub.f32 %v16128_v30, %v16144_v36 }
 0x309   : > { %13082 = vmatmul.mubr.f32.vlgmr.msra.gmra.mrb[2].mxu0 %v15988_v56 }
 0x30a   : > { %14353 = vmatpush3.bf16.msra.mxu0 %v14350_v22  ;;  %13092 = vmatprep.mubr.f32.mxu0 %v15999_v1  ;;  %v751_v1 = vld [vmem:[%s17100_s5 + $0x8] sm:$0xff]  ;;  %v16196_v57 = vand.u32 4294901760, %v3548_v45 }
 0x30b   : > { %14355 = vmatprep.subr.bf16.mxu0 %v14354_v23 }
 0x30e   : > { %14357 = vmatpush3.bf16.msra.mxu0 %v14354_v23 }
 0x30f   : > { %14359 = vmatprep.subr.bf16.mxu0 %v16081_v53 }
 0x311   : > { %13093 = vmatmul.mubr.f32.vlgmr.msra.gmra.mrb[2].mxu0 %v15994_v61  ;;  %v3458_v61 = vsel %vm1809_vm2, %v751_v1, 0 }
 0x312   : > { %14361 = vmatpush3.bf16.msra.mxu0 %v16081_v53  ;;  %13103 = vmatprep.mubr.f32.mxu0 %v16007_v5  ;;  %v14370_v5 = vpack.c.bf16 %v2428_v2, %v2421_v0  ;;  %v16130_v31 = vand.u32 4294901760, %v3458_v61  ;;  %v3578_v2 = vsub.f32 %v16169_v47, %v16188_v55 }
 0x313   : > { %14363 = vmatprep.subr.bf16.mxu0 %v16088_v6 }
 0x314   : > { %v16147_v37 = vsub.f32 %v3458_v61, %v16130_v31  ;;  %v16229_v11 = vand.u32 4294901760, %v3578_v2  ;;  %v747_v2 = vld [vmem:[%s17099_s4 + $0x28] sm:$0xff] }
 0x316   : > { %14365 = vmatpush3.bf16.msra.mxu0 %v16088_v6  ;;  %17182 = vst [vmem:[#allocation18_spill] sm:$0xff] %v16147_v37  ;;  %v16166_v46 = vand.u32 4294901760, %v16147_v37 }
 0x317   : > { %14367 = vmatprep.subr.bf16.mxu0 %v14366_v24 }
 0x318   : > { %17184 = vst [vmem:[#allocation20_spill] sm:$0xff] %v16166_v46  ;;  %v3558_v54 = vsub.f32 %v16147_v37, %v16166_v46 }
 0x319   : > { %13104 = vmatmul.mubr.f32.vlgmr.msra.gmra.mrb[2].mxu0 %v16002_v3  ;;  %v756_v3 = vld [vmem:[%s17100_s5 + $0x30] sm:$0xff] }
 0x31a   : > { %14369 = vmatpush3.bf16.msra.mxu0 %v14366_v24  ;;  %13114 = vmatprep.mubr.f32.mxu0 %v15991_v60  ;;  %v3473_v43 = vsel %vm1809_vm2, %v756_v3, 0  ;;  %v16208_v0 = vand.u32 4294901760, %v3558_v54  ;;  %v736_v24 = vld [vmem:[%s16307_s19] sm:$0xff]  ;;  %v2874_v3 = vand.u32 4294901760, %v743_v34 }
 0x31b   : > { %14371 = vmatprep.subr.bf16.mxu0 %v14370_v5  ;;  %v16181_v51 = vand.u32 4294901760, %v3473_v43 }
 0x31d   : > { %v16204_v63 = vsub.f32 %v3473_v43, %v16181_v51  ;;  %v744_v43 = vld [vmem:[%s17099_s4 + $0x10] sm:$0xff] }
 0x31e   : > { %14373 = vmatpush3.bf16.msra.mxu0 %v14370_v5  ;;  %v2877_v45 = vand.u32 4294901760, %v744_v43 }
 0x31f   : > { %14375 = vmatprep.subr.bf16.mxu0 %v16081_v53  ;;  %17191 = vst [vmem:[#allocation27_spill] sm:$0xff] %v16204_v63  ;;  %v16225_v10 = vand.u32 4294901760, %v16204_v63 }
 0x320   : > { %v2979_v41 = vsub.f32 %v744_v43, %v2877_v45 }
 0x321   : > { %13115 = vmatmul.mubr.f32.vlgmr.msra.gmra.mrb[2].mxu0 %v15988_v56  ;;  %17194 = vst [vmem:[#allocation30_spill] sm:$0xff] %v16225_v10  ;;  %v3608_v20 = vsub.f32 %v16204_v63, %v16225_v10 }
 0x322   : > { %14377 = vmatpush3.bf16.msra.mxu0 %v16081_v53  ;;  %13125 = vmatprep.mubr.f32.mxu0 %v15991_v60  ;;  %v16191_v60 = vsub.f32 %v3470_v42, %v16171_v48  ;;  %v16193_v53 = vand.u32 4294901760, %v3476_v52  ;;  %v16325_v42 = vpack.c.bf16 %v2874_v3, %v2871_v35 }
 0x323   : > { %14379 = vmatprep.subr.bf16.mxu0 %v16088_v6  ;;  %v16249_v13 = vand.u32 4294901760, %v3608_v20 }
 0x324   : > { %17189 = vst [vmem:[#allocation25_spill] sm:$0xff] %v16191_v60  ;;  %v16216_v7 = vsub.f32 %v3476_v52, %v16193_v53  ;;  %14383 = vmatprep.subr.bf16.mxu1 %v16325_v42  ;;  %v2880_v52 = vand.u32 4294901760, %v745_v44 }
 0x325   : > { %14385 = vmatpush3.bf16.msra.mxu1 %v16325_v42 }
 0x326   : > { %14381 = vmatpush3.bf16.msra.mxu0 %v16088_v6  ;;  %v16213_v6 = vand.u32 4294901760, %v16191_v60  ;;  %17193 = vst [vmem:[#allocation29_spill] sm:$0xff] %v16216_v7  ;;  %v16234_v16 = vand.u32 4294901760, %v16216_v7  ;;  %v16335_v54 = vpack.c.bf16 %v2880_v52, %v2877_v45 }
 0x327   : > { %14479 = vmatprep.subr.bf16.mxu0 %v15996_v62 }
 0x328   : > { %17192 = vst [vmem:[#allocation28_spill] sm:$0xff] %v16213_v6  ;;  %v3598_v12 = vsub.f32 %v16191_v60, %v16213_v6  ;;  %17195 = vst [vmem:[#allocation31_spill] sm:$0xff] %v16234_v16  ;;  %v3618_v23 = vsub.f32 %v16216_v7, %v16234_v16  ;;  %14387 = vmatprep.subr.bf16.mxu1 %v16335_v54 }
 0x329   : > { %13126 = vmatmul.mubr.f32.vlgmr.msra.gmra.mrb[2].mxu0 %v15988_v56  ;;  %v3588_v56 = vsub.f32 %v16179_v50, %v16201_v59  ;;  %14389 = vmatpush3.bf16.msra.mxu1 %v16335_v54 }
 0x32a   : > { %14481 = vmatpush3.bf16.msra.mxu0 %v15996_v62  ;;  %13246 = vmatprep.mubr.f32.mxu0 %v16196_v57  ;;  %v16244_v22 = vand.u32 4294901760, %v3598_v12  ;;  %v2886_v12 = vand.u32 4294901760, %v747_v2 }
 0x32b   : > { %14483 = vmatprep.subr.bf16.mxu0 %v16019_v15  ;;  %v16238_v17 = vand.u32 4294901760, %v3588_v56  ;;  %v2883_v56 = vand.u32 4294901760, %v746_v58 }
 0x32d   : > { %13247 = vmatmul.mubr.f32.vlgmr.msra.gmra.mrb[4].mxu0 %v16208_v0  ;;  %v16345_v20 = vpack.c.bf16 %v2886_v12, %v2883_v56 }
 0x32e   : > { %14485 = vmatpush3.bf16.msra.mxu0 %v16019_v15  ;;  %13249 = vmatprep.mubr.f32.mxu0 %v16220_v8  ;;  %v16252_v15 = vand.u32 4294901760, %v3618_v23  ;;  %v748_v23 = vld [vmem:[%s17099_s4 + $0x30] sm:$0xff] }
 0x32f   : > { %14487 = vmatprep.subr.bf16.mxu0 %v16004_v4  ;;  %14391 = vmatprep.subr.bf16.mxu1 %v16345_v20 }
 0x330   : > { %14393 = vmatpush3.bf16.msra.mxu1 %v16345_v20 }
 0x331   : > { %13250 = vmatmul.mubr.f32.gmra.mrb[6].mxu0 %v16229_v11 }
 0x332   : > { %13252 = vmatprep.mubr.f32.mxu0 %v16238_v17 }
 0x335   : > { %13253 = vmatmul.mubr.f32.gmra.mrb[8].mxu0 %v16244_v22 }
 0x336   : > { %13255 = vmatprep.mubr.f32.mxu0 %v16249_v13 }
 0x339   : > { %13256 = vmatmul.mubr.f32.gmra.mrb[10].mxu0 %v16252_v15 }
 0x33a   : > { %13262 = vmatprep.mubr.f32.mxu0 %v16115_v26 }
 0x33d   : > { %13263 = vmatmul.mubr.f32.vlgmr.msra.gmra.mrb[4].mxu0 %v16130_v31 }
 0x33e   : > { %14489 = vmatpush3.bf16.msra.mxu0 %v16004_v4  ;;  %13265 = vmatprep.mubr.f32.mxu0 %v16133_v32 }
 0x33f   : > { %14491 = vmatprep.subr.bf16.mxu0 %v15996_v62 }
 0x341   : > { %13266 = vmatmul.mubr.f32.gmra.mrb[6].mxu0 %v16149_v38 }
 0x342   : > { %13268 = vmatprep.mubr.f32.mxu0 %v16154_v40 }
 0x345   : > { %13269 = vmatmul.mubr.f32.gmra.mrb[8].mxu0 %v16171_v48 }
 0x346   : > { %13271 = vmatprep.mubr.f32.mxu0 %v16181_v51 }
 0x349   : > { %13272 = vmatmul.mubr.f32.gmra.mrb[10].mxu0 %v16193_v53 }
 0x34a   : > { %13278 = vmatprep.mubr.f32.mxu0 %v16128_v30 }
 0x34d   : > { %13279 = vmatmul.mubr.f32.vlgmr.msra.gmra.mrb[4].mxu0 %v16147_v37 }
 0x34e   : > { %14493 = vmatpush3.bf16.msra.mxu0 %v15996_v62  ;;  %13281 = vmatprep.mubr.f32.mxu0 %v16152_v39 }
 0x34f   : > { %14495 = vmatprep.subr.bf16.mxu0 %v16011_v9 }
 0x351   : > { %13282 = vmatmul.mubr.f32.gmra.mrb[6].mxu0 %v16169_v47 }
 0x352   : > { %13284 = vmatprep.mubr.f32.mxu0 %v16179_v50 }
 0x355   : > { %13285 = vmatmul.mubr.f32.gmra.mrb[8].mxu0 %v16191_v60 }
 0x356   : > { %13287 = vmatprep.mubr.f32.mxu0 %v16204_v63 }
 0x359   : > { %13288 = vmatmul.mubr.f32.gmra.mrb[10].mxu0 %v16216_v7 }
 0x35a   : > { %13294 = vmatprep.mubr.f32.mxu0 %v16144_v36 }
 0x35d   : > { %13295 = vmatmul.mubr.f32.vlgmr.msra.gmra.mrb[4].mxu0 %v16166_v46 }
 0x35e   : > { %14497 = vmatpush3.bf16.msra.mxu0 %v16011_v9  ;;  %13297 = vmatprep.mubr.f32.mxu0 %v16176_v49  ;;  %v3000_v49 = vsub.f32 %v747_v2, %v2886_v12 }
 0x35f   : > { %14499 = vmatprep.subr.bf16.mxu0 %v15996_v62 }
 0x361   : > { %13298 = vmatmul.mubr.f32.gmra.mrb[6].mxu0 %v16188_v55  ;;  %v2993_v55 = vsub.f32 %v746_v58, %v2883_v56 }
 0x362   : > { %13300 = vmatprep.mubr.f32.mxu0 %v16201_v59 }
 0x363   : > { %v2994_v43 = vand.u32 4294901760, %v2993_v55 }
 0x365   : > { %13301 = vmatmul.mubr.f32.gmra.mrb[8].mxu0 %v16213_v6 }
 0x366   : > { %13303 = vmatprep.mubr.f32.mxu0 %v16225_v10 }
 0x369   : > { %13304 = vmatmul.mubr.f32.gmra.mrb[10].mxu0 %v16234_v16  ;;  %v2986_v16 = vsub.f32 %v745_v44, %v2880_v52  ;;  %v3001_v44 = vand.u32 4294901760, %v3000_v49  ;;  %v2995_v52 = vsub.f32 %v2993_v55, %v2994_v43 }
 0x36a   : > { %13310 = vmatprep.mubr.f32.mxu0 %v16115_v26 }
 0x36b   : > { %v3002_v7 = vsub.f32 %v3000_v49, %v3001_v44  ;;  %v2996_v63 = vand.u32 4294901760, %v2995_v52  ;;  %v765_v52 = vld [vmem:[%s17101_s6 + $0x38] sm:$0xff] }
 0x36d   : > { %13311 = vmatmul.mubr.f32.vlgmr.msra.gmra.mrb[4].mxu0 %v16130_v31 }
 0x36e   : > { %14501 = vmatpush3.bf16.msra.mxu0 %v15996_v62  ;;  %13313 = vmatprep.mubr.f32.mxu0 %v16133_v32 }
 0x371   : > { %13314 = vmatmul.mubr.f32.gmra.mrb[6].mxu0 %v16149_v38 }
 0x372   : > { %13316 = vmatprep.mubr.f32.mxu0 %v16154_v40 }
 0x375   : > { %13317 = vmatmul.mubr.f32.gmra.mrb[8].mxu0 %v16171_v48 }
 0x376   : > { %13319 = vmatprep.mubr.f32.mxu0 %v16181_v51 }
 0x379   : > { %13320 = vmatmul.mubr.f32.gmra.mrb[10].mxu0 %v16193_v53 }
 0x37a   : > { %13326 = vmatprep.mubr.f32.mxu0 %v16115_v26 }
 0x37d   : > { %13327 = vmatmul.mubr.f32.vlgmr.msra.gmra.mrb[4].mxu0 %v16130_v31 }
 0x37e   : > { %13329 = vmatprep.mubr.f32.mxu0 %v16133_v32 }
 0x381   : > { %13330 = vmatmul.mubr.f32.gmra.mrb[6].mxu0 %v16149_v38 }
 0x382   : > { %13332 = vmatprep.mubr.f32.mxu0 %v16154_v40 }
 0x385   : > { %13333 = vmatmul.mubr.f32.gmra.mrb[8].mxu0 %v16171_v48 }
 0x386   : > { %13335 = vmatprep.mubr.f32.mxu0 %v16181_v51 }
 0x389   : > { %13336 = vmatmul.mubr.f32.gmra.mrb[10].mxu0 %v16193_v53 }
 0x3fc   : > { %v13127_v62 = vpop.f32.mrb[2].mxu0 }
 0x3fd   : > { %vm2844_vm3 = vcmp.gt.f32.partialorder %v13127_v62, 0.0  ;;  %v2846_v4 = vmul.f32 0.2, %v13127_v62  ;;  %v2833_v9 = vpop.f32.mrb[3].mxu0 }
 0x3fe   : > { %vm2843_vm4 = vcmp.gt.f32.partialorder %v2833_v9, 0.0  ;;  %v2845_v14 = vmul.f32 0.2, %v2833_v9 }
 0x3ff   : > { %v2848_v61 = vsel %vm2844_vm3, %v13127_v62, %v2846_v4  ;;  %v749_v62 = vld [vmem:[%s17099_s4 + $0x38] sm:$0xff]  ;;  %v2965_v4 = vsub.f32 %v742_v33, %v2871_v35  ;;  %v2980_v33 = vand.u32 4294901760, %v2979_v41 }
 0x400   : > { %v2847_v1 = vsel %vm2843_vm4, %v2833_v9, %v2845_v14  ;;  %v16315_v28 = vadd.f32 %v2848_v61, %v737_v25  ;;  %v2972_v9 = vsub.f32 %v743_v34, %v2874_v3  ;;  %v2889_v14 = vand.u32 4294901760, %v748_v23 }
 0x401   : > { %v16311_v5 = vadd.f32 %v2847_v1, %v736_v24  ;;  %v2892_v24 = vand.u32 4294901760, %v749_v62  ;;  %v2966_v1 = vand.u32 4294901760, %v2965_v4  ;;  %v2987_v34 = vand.u32 4294901760, %v2986_v16 }
 0x402   : > { %v2855_v29 = vsel %vm2851_vm5, %v16315_v28, -inf  ;;  %v2973_v25 = vand.u32 4294901760, %v2972_v9  ;;  %v2981_v3 = vsub.f32 %v2979_v41, %v2980_v33 }
 0x403   : > { %v2852_v27 = vsel %vm2851_vm5, %v16311_v5, -inf  ;;  %v16355_v61 = vpack.c.bf16 %v2892_v24, %v2889_v14  ;;  %v2988_v59 = vsub.f32 %v2986_v16, %v2987_v34 }
 0x404   : > { %2853 = vmax.xlane.f32.xlu0 %v2852_v27  ;;  %v2967_v27 = vsub.f32 %v2965_v4, %v2966_v1  ;;  %v2982_v46 = vand.u32 4294901760, %v2981_v3 }
 0x405   : > { %14395 = vmatprep.subr.bf16.mxu1 %v16355_v61  ;;  %v2989_v36 = vand.u32 4294901760, %v2988_v59  ;;  %v16368_v59 = vpack.c.bf16 %v2972_v9, %v2965_v4 }
 0x406   : > { %v2968_v10 = vand.u32 4294901760, %v2967_v27  ;;  %14397 = vmatpush3.bf16.msra.mxu1 %v16355_v61  ;;  %v3007_v27 = vsub.f32 %v748_v23, %v2889_v14  ;;  %v16378_v14 = vpack.c.bf16 %v2987_v34, %v2980_v33  ;;  %v762_v34 = vld [vmem:[%s17101_s6 + $0x20] sm:$0xff] }
 0x407   : > { %v16362_v45 = vpack.c.bf16 %v2989_v36, %v2982_v46  ;;  %17197 = vst [vmem:[#allocation32_spill] sm:$0xff] %v16368_v59  ;;  %v16370_v36 = vpack.c.bf16 %v2986_v16, %v2979_v41  ;;  %v16372_v46 = vpack.c.bf16 %v3000_v49, %v2993_v55  ;;  %v758_v41 = vld [vmem:[%s17101_s6] sm:$0xff]  ;;  %v761_v49 = vld [vmem:[%s17101_s6 + $0x18] sm:$0xff] }
 0x408   : > { %2856 = vmax.xlane.f32.xlu0 %v2855_v29  ;;  %v2974_v29 = vsub.f32 %v2972_v9, %v2973_v25  ;;  %v3008_v60 = vand.u32 4294901760, %v3007_v27  ;;  %17202 = vst [vmem:[#allocation37_spill] sm:$0xff] %v16378_v14 }
 0x409   : > { %17198 = vst [vmem:[#allocation33_spill] sm:$0xff] %v16370_v36  ;;  %17199 = vst [vmem:[#allocation34_spill] sm:$0xff] %v16372_v46 }
 0x40a   : > { %v2975_v6 = vand.u32 4294901760, %v2974_v29  ;;  %v3014_v29 = vsub.f32 %v749_v62, %v2892_v24  ;;  %v3009_v50 = vsub.f32 %v3007_v27, %v3008_v60  ;;  %v16376_v62 = vpack.c.bf16 %v2973_v25, %v2966_v1  ;;  %v763_v24 = vld [vmem:[%s17101_s6 + $0x28] sm:$0xff] }
 0x40c   : > { %v16359_v35 = vpack.c.bf16 %v2975_v6, %v2968_v10  ;;  %v3015_v6 = vand.u32 4294901760, %v3014_v29  ;;  %v3003_v10 = vand.u32 4294901760, %v3002_v7  ;;  %v3010_v2 = vand.u32 4294901760, %v3009_v50  ;;  %17201 = vst [vmem:[#allocation36_spill] sm:$0xff] %v16376_v62 }
 0x40d   : > { %v16374_v23 = vpack.c.bf16 %v3014_v29, %v3007_v27  ;;  %v16380_v7 = vpack.c.bf16 %v3001_v44, %v2994_v43 }
 0x40e   : > { %14399 = vmatprep.subr.bf16.mxu1 %v16359_v35  ;;  %v3016_v47 = vsub.f32 %v3014_v29, %v3015_v6  ;;  %v16364_v58 = vpack.c.bf16 %v3003_v10, %v2996_v63  ;;  %v16382_v63 = vpack.c.bf16 %v3015_v6, %v3008_v60  ;;  %v760_v60 = vld [vmem:[%s17101_s6 + $0x10] sm:$0xff] }
 0x40f   : > { %17200 = vst [vmem:[#allocation35_spill] sm:$0xff] %v16374_v23  ;;  %17203 = vst [vmem:[#allocation38_spill] sm:$0xff] %v16380_v7 }
 0x410   : > { %v3017_v56 = vand.u32 4294901760, %v3016_v47  ;;  %17204 = vst [vmem:[#allocation39_spill] sm:$0xff] %v16382_v63  ;;  %v759_v47 = vld [vmem:[%s17101_s6 + $0x8] sm:$0xff] }
 0x412   : > { %v16366_v12 = vpack.c.bf16 %v3017_v56, %v3010_v2 }
 0x450   : > { %v13328_v50 = vpop.f32.mrb[4].mxu0 }
 0x451   : > { %v16393_v55 = vmul.f32 %v13328_v50, %v759_v47  ;;  %v4192_v16 = vpop.f32.mrb[5].mxu0  ;;  %v764_v50 = vld [vmem:[%s17101_s6 + $0x30] sm:$0xff] }
 0x452   : > { %v16398_v4 = vmul.f32 %v4192_v16, %v758_v41 }
 0x453   : > { %v17137_v1 = vand.u32 4294901760, %v16393_v55 }
 0x454   : > { %v13331_v9 = vpop.f32.mrb[6].mxu0  ;;  %v17136_v3 = vand.u32 4294901760, %v16398_v4 }
 0x455   : > { %v4241_v25 = vmul.f32 %v13331_v9, %v761_v49  ;;  %v4204_v33 = vpop.f32.mrb[7].mxu0 }
 0x456   : > { %v4240_v43 = vmul.f32 %v4204_v33, %v760_v60  ;;  %v16415_v10 = vpack.c.bf16 %v17137_v1, %v17136_v3 }
 0x457   : > { %v4268_v27 = vand.u32 4294901760, %v4241_v25 }
 0x458   : > { %v13334_v44 = vpop.f32.mrb[8].mxu0  ;;  %v4265_v2 = vand.u32 4294901760, %v4240_v43 }
 0x459   : > { %v4243_v29 = vmul.f32 %v13334_v44, %v763_v24  ;;  %v4216_v6 = vpop.f32.mrb[9].mxu0  ;;  %v16420_v41 = vsub.f32 %v4241_v25, %v4268_v27 }
 0x45a   : > { %v4242_v56 = vmul.f32 %v4216_v6, %v762_v34  ;;  %v16422_v9 = vpack.c.bf16 %v4268_v27, %v4265_v2  ;;  %v16424_v24 = vsub.f32 %v4240_v43, %v4265_v2 }
 0x45b   : > { %v4274_v49 = vand.u32 4294901760, %v4243_v29 }
 0x45c   : > { %v13337_v47 = vpop.f32.mrb[10].mxu0  ;;  %v4271_v33 = vand.u32 4294901760, %v4242_v56 }
 0x45d   : > { %v4245_v16 = vmul.f32 %v13337_v47, %v765_v52  ;;  %v4228_v60 = vpop.f32.mrb[11].mxu0  ;;  %v16426_v44 = vsub.f32 %v4243_v29, %v4274_v49 }
 0x45e   : > { %v4244_v1 = vmul.f32 %v4228_v60, %v764_v50  ;;  %v16428_v34 = vpack.c.bf16 %v4274_v49, %v4271_v33  ;;  %v16430_v6 = vsub.f32 %v4242_v56, %v4271_v33 }
 0x45f   : > { %v4280_v3 = vand.u32 4294901760, %v4245_v16 }
 0x460   : > { %v4277_v25 = vand.u32 4294901760, %v4244_v1 }
 0x461   : > { %v16432_v39 = vsub.f32 %v4245_v16, %v4280_v3 }
 0x462   : > { %v16434_v37 = vpack.c.bf16 %v4280_v3, %v4277_v25  ;;  %v16436_v52 = vsub.f32 %v4244_v1, %v4277_v25 }
 0x491   : > { %v2854_v27 = vpop.xlane.xlu0 %2853 }
 0x492   : > { %v2858_v43 = vsub.f32 %v16311_v5, %v2854_v27 }
 0x494   : > { %v2860_v2 = vmul.f32 1.442695, %v2858_v43 }
 0x495   : > { %v2857_v47 = vpop.xlane.xlu0 %2856 }
 0x496   : > { %15431 = vpow2.f32 %v2860_v2  ;;  %v2859_v29 = vsub.f32 %v16315_v28, %v2857_v47 }
 0x498   : > { %v2862_v50 = vmul.f32 1.442695, %v2859_v29  ;;  %v17205_v29 = vand.u32 4294901760, %v16393_v55 }
 0x49a   : > { %15433 = vpow2.f32 %v2862_v50  ;;  %v16489_v50 = vsub.f32 %v16393_v55, %v17205_v29 }
 0x4a0   : > { %v16440_v49 = vpop.eup %15431 }
 0x4a1   : > { %v2865_v56 = vsel %vm2851_vm5, %v16440_v49, 0 }
 0x4a2   : > { %v2943_v16 = vand.u32 4294901760, %v2865_v56 }
 0x4a4   : > { %v16444_v3 = vpop.eup %15433  ;;  %v2944_v1 = vsub.f32 %v2865_v56, %v2943_v16  ;;  %v17206_v56 = vand.u32 4294901760, %v16398_v4 }
 0x4a5   : > { %v2868_v60 = vsel %vm2851_vm5, %v16444_v3, 0 }
 0x4a6   : > { %v2953_v5 = vand.u32 4294901760, %v2868_v60  ;;  %v2945_v33 = vand.u32 4294901760, %v2944_v1 }
 0x4a8   : > { %v2946_v25 = vsub.f32 %v2944_v1, %v2945_v33  ;;  %v2954_v27 = vsub.f32 %v2868_v60, %v2953_v5 }
 0x4aa   : > { %v2947_v43 = vand.u32 4294901760, %v2946_v25  ;;  %v2955_v28 = vand.u32 4294901760, %v2954_v27 }
 0x4ac   : > { %13144 = vmatprep.mubr.f32.mxu1 %v2947_v43  ;;  %v2956_v2 = vsub.f32 %v2954_v27, %v2955_v28  ;;  %v4368_v43 = vand.u32 4294901760, %v16424_v24 }
 0x4ae   : > { %v2957_v47 = vand.u32 4294901760, %v2956_v2  ;;  %v4382_v2 = vand.u32 4294901760, %v16430_v6 }
 0x4b0   : > { %13145 = vmatmul.mubr.f32.vlgmr.msra.gmra.mrb[2].mxu1 %v2957_v47  ;;  %v4369_v47 = vsub.f32 %v16424_v24, %v4368_v43 }
 0x4b1   : > { %14401 = vmatpush3.bf16.msra.mxu1 %v16359_v35  ;;  %13163 = vmatprep.mubr.f32.mxu1 %v2943_v16 }
 0x4b2   : > { %14403 = vmatprep.subr.bf16.mxu1 %v16362_v45 }
 0x4b5   : > { %14405 = vmatpush3.bf16.msra.mxu1 %v16362_v45 }
 0x4b6   : > { %14407 = vmatprep.subr.bf16.mxu1 %v16364_v58 }
 0x4b9   : > { %14409 = vmatpush3.bf16.msra.mxu1 %v16364_v58 }
 0x4ba   : > { %14411 = vmatprep.subr.bf16.mxu1 %v16366_v12 }
 0x4bd   : > { %14413 = vmatpush3.bf16.msra.mxu1 %v16366_v12 }
 0x4be   : > { %14415 = vmatprep.subr.bf16.mxu1 %v16368_v59 }
 0x4c0   : > { %13164 = vmatmul.mubr.f32.vlgmr.msra.gmra.mrb[2].mxu1 %v2953_v5 }
 0x4c1   : > { %14417 = vmatpush3.bf16.msra.mxu1 %v16368_v59  ;;  %13182 = vmatprep.mubr.f32.mxu1 %v2944_v1  ;;  %v16494_v1 = vsub.f32 %v16398_v4, %v17206_v56  ;;  %v14538_v56 = vpack.c.bf16 %v16420_v41, %v16424_v24 }
 0x4c2   : > { %14419 = vmatprep.subr.bf16.mxu1 %v16370_v36 }
 0x4c3   : > { %v17141_v60 = vand.u32 4294901760, %v16494_v1 }
 0x4c5   : > { %14421 = vmatpush3.bf16.msra.mxu1 %v16370_v36  ;;  %v4355_v55 = vsub.f32 %v16494_v1, %v17141_v60 }
 0x4c6   : > { %14423 = vmatprep.subr.bf16.mxu1 %v16372_v46 }
 0x4c9   : > { %14425 = vmatpush3.bf16.msra.mxu1 %v16372_v46 }
 0x4ca   : > { %14427 = vmatprep.subr.bf16.mxu1 %v16374_v23 }
 0x4cd   : > { %14429 = vmatpush3.bf16.msra.mxu1 %v16374_v23 }
 0x4ce   : > { %14431 = vmatprep.subr.bf16.mxu1 %v16325_v42 }
 0x4d0   : > { %13183 = vmatmul.mubr.f32.vlgmr.msra.gmra.mrb[2].mxu1 %v2954_v27  ;;  %v4375_v27 = vand.u32 4294901760, %v16420_v41 }
 0x4d1   : > { %14433 = vmatpush3.bf16.msra.mxu1 %v16325_v42  ;;  %13201 = vmatprep.mubr.f32.mxu1 %v2945_v33  ;;  %v4356_v33 = vand.u32 4294901760, %v4355_v55  ;;  %v4370_v55 = vand.u32 4294901760, %v4369_v47 }
 0x4d2   : > { %14435 = vmatprep.subr.bf16.mxu1 %v16335_v54  ;;  %v4376_v29 = vsub.f32 %v16420_v41, %v4375_v27 }
 0x4d5   : > { %14437 = vmatpush3.bf16.msra.mxu1 %v16335_v54 }
 0x4d6   : > { %14439 = vmatprep.subr.bf16.mxu1 %v16345_v20 }
 0x4d9   : > { %14441 = vmatpush3.bf16.msra.mxu1 %v16345_v20 }
 0x4da   : > { %14443 = vmatprep.subr.bf16.mxu1 %v16355_v61 }
 0x4dd   : > { %14445 = vmatpush3.bf16.msra.mxu1 %v16355_v61 }
 0x4de   : > { %14447 = vmatprep.subr.bf16.mxu1 %v16376_v62 }
 0x4e0   : > { %13202 = vmatmul.mubr.f32.vlgmr.msra.gmra.mrb[2].mxu1 %v2955_v28  ;;  %v4389_v28 = vand.u32 4294901760, %v16426_v44 }
 0x4e1   : > { %14449 = vmatpush3.bf16.msra.mxu1 %v16376_v62  ;;  %13220 = vmatprep.mubr.f32.mxu1 %v2943_v16 }
 0x4e2   : > { %14451 = vmatprep.subr.bf16.mxu1 %v16378_v14  ;;  %v16529_v46 = vpack.c.bf16 %v4389_v28, %v4382_v2 }
 0x4e5   : > { %14453 = vmatpush3.bf16.msra.mxu1 %v16378_v14  ;;  %v14542_v14 = vpack.c.bf16 %v16426_v44, %v16430_v6 }
 0x4e6   : > { %14455 = vmatprep.subr.bf16.mxu1 %v16380_v7 }
 0x4e9   : > { %14457 = vmatpush3.bf16.msra.mxu1 %v16380_v7  ;;  %v4390_v7 = vsub.f32 %v16426_v44, %v4389_v28 }
 0x4ea   : > { %14459 = vmatprep.subr.bf16.mxu1 %v16382_v63 }
 0x4eb   : > { %v4391_v23 = vand.u32 4294901760, %v4390_v7 }
 0x4ed   : > { %14461 = vmatpush3.bf16.msra.mxu1 %v16382_v63  ;;  %v4383_v63 = vsub.f32 %v16430_v6, %v4382_v2 }
 0x4ee   : > { %14463 = vmatprep.subr.bf16.mxu1 %v16325_v42 }
 0x4ef   : > { %v4384_v62 = vand.u32 4294901760, %v4383_v63 }
 0x4f0   : > { %13221 = vmatmul.mubr.f32.vlgmr.msra.gmra.mrb[2].mxu1 %v2953_v5 }
 0x4f1   : > { %14465 = vmatpush3.bf16.msra.mxu1 %v16325_v42  ;;  %13239 = vmatprep.mubr.f32.mxu1 %v2943_v16  ;;  %v17140_v16 = vand.u32 4294901760, %v16489_v50  ;;  %v14526_v41 = vpack.c.bf16 %v4391_v23, %v4384_v62 }
 0x4f2   : > { %14467 = vmatprep.subr.bf16.mxu1 %v16335_v54 }
 0x4f3   : > { %v4362_v4 = vsub.f32 %v16489_v50, %v17140_v16  ;;  %v4396_v16 = vand.u32 4294901760, %v16436_v52 }
 0x4f5   : > { %14469 = vmatpush3.bf16.msra.mxu1 %v16335_v54  ;;  %v4363_v25 = vand.u32 4294901760, %v4362_v4  ;;  %v4377_v4 = vand.u32 4294901760, %v4376_v29  ;;  %v4397_v24 = vsub.f32 %v16436_v52, %v4396_v16 }
 0x4f6   : > { %14471 = vmatprep.subr.bf16.mxu1 %v16345_v20 }
 0x4f7   : > { %v14522_v60 = vpack.c.bf16 %v4377_v4, %v4370_v55  ;;  %v4398_v47 = vand.u32 4294901760, %v4397_v24 }
 0x4f9   : > { %14473 = vmatpush3.bf16.msra.mxu1 %v16345_v20 }
 0x4fa   : > { %14475 = vmatprep.subr.bf16.mxu1 %v16355_v61 }
 0x4fd   : > { %14477 = vmatpush3.bf16.msra.mxu1 %v16355_v61 }
 0x4fe   : > { %14503 = vmatprep.subr.bf16.mxu1 %v16415_v10 }
 0x500   : > { %13240 = vmatmul.mubr.f32.vlgmr.msra.gmra.mrb[2].mxu1 %v2953_v5  ;;  %v14518_v5 = vpack.c.bf16 %v4363_v25, %v4356_v33  ;;  %v16521_v33 = vpack.c.bf16 %v4375_v27, %v4368_v43  ;;  %v4403_v25 = vand.u32 4294901760, %v16432_v39  ;;  %v14546_v43 = vpack.c.bf16 %v16432_v39, %v16436_v52 }
 0x501   : > { %14505 = vmatpush3.bf16.msra.mxu1 %v16415_v10 }
 0x502   : > { %14507 = vmatprep.subr.bf16.mxu1 %v16422_v9  ;;  %v4404_v27 = vsub.f32 %v16432_v39, %v4403_v25  ;;  %v14578_v55 = vpack.c.bf16 %v4403_v25, %v4396_v16 }
 0x504   : > { %v4405_v29 = vand.u32 4294901760, %v4404_v27 }
 0x505   : > { %14509 = vmatpush3.bf16.msra.mxu1 %v16422_v9 }
 0x506   : > { %14511 = vmatprep.subr.bf16.mxu1 %v16428_v34  ;;  %v14530_v4 = vpack.c.bf16 %v4405_v29, %v4398_v47 }
 0x509   : > { %14513 = vmatpush3.bf16.msra.mxu1 %v16428_v34 }
 0x50a   : > { %14515 = vmatprep.subr.bf16.mxu1 %v16434_v37 }
 0x50d   : > { %14517 = vmatpush3.bf16.msra.mxu1 %v16434_v37 }
 0x50e   : > { %14519 = vmatprep.subr.bf16.mxu1 %v14518_v5 }
 0x5d3   : > { %v13241_v36 = vpop.f32.mrb[2].mxu1 }
 0x5d4   : > { %15435 = vrcp.f32 %v13241_v36  ;;  %v3440_v59 = vpop.f32.mrb[3].mxu1 }
 0x5d5   : > { %15437 = vrcp.f32 %v3440_v59 }
 0x5de   : > { %v15436_v63 = vpop.eup %15435 }
 0x5df   : > { %v15438_v7 = vpop.eup %15437  ;;  %v3453_v44 = vmul.f32 %v15436_v63, %v16444_v3  ;;  %v17208_v3 = vand.u32 4294901760, %v16489_v50 }
 0x5e0   : > { %v3451_v23 = vmul.f32 %v15438_v7, %v16440_v49  ;;  %v14534_v49 = vpack.c.bf16 %v16489_v50, %v16494_v1 }
 0x5e1   : > { %v4256_v62 = vsel %vm2851_vm5, %v3453_v44, 0 }
 0x5e2   : > { %v4253_v6 = vsel %vm2851_vm5, %v3451_v23, 0  ;;  %v4341_v28 = vand.u32 4294901760, %v4256_v62 }
 0x5e3   : > { %v4331_v39 = vand.u32 4294901760, %v4253_v6 }
 0x5e4   : > { %v4342_v52 = vsub.f32 %v4256_v62, %v4341_v28 }
 0x5e5   : > { %v4332_v2 = vsub.f32 %v4253_v6, %v4331_v39 }
 0x5e6   : > { %v4343_v16 = vand.u32 4294901760, %v4342_v52 }
 0x5e7   : > { %v4333_v25 = vand.u32 4294901760, %v4332_v2 }
 0x5e8   : > { %v4344_v24 = vsub.f32 %v4342_v52, %v4343_v16 }
 0x5e9   : > { %v4334_v36 = vsub.f32 %v4332_v2, %v4333_v25 }
 0x5ea   : > { %v4345_v59 = vand.u32 4294901760, %v4344_v24 }
 0x5eb   : > { %v4335_v27 = vand.u32 4294901760, %v4334_v36 }
 0x5ed   : > { %13354 = vmatprep.mubr.f32.mxu1 %v4335_v27 }
 0x5ee   : > { %13355 = vmatmul.mubr.f32.vlgmr.msra.gmra.mrb[4].mxu1 %v4345_v59 }
 0x5ef   : > { %14521 = vmatpush3.bf16.msra.mxu1 %v14518_v5  ;;  %13373 = vmatprep.mubr.f32.mxu1 %v4331_v39 }
 0x5f0   : > { %14523 = vmatprep.subr.bf16.mxu1 %v14522_v60 }
 0x5f3   : > { %14525 = vmatpush3.bf16.msra.mxu1 %v14522_v60 }
 0x5f4   : > { %14527 = vmatprep.subr.bf16.mxu1 %v14526_v41 }
 0x5f7   : > { %14529 = vmatpush3.bf16.msra.mxu1 %v14526_v41 }
 0x5f8   : > { %14531 = vmatprep.subr.bf16.mxu1 %v14530_v4 }
 0x5fb   : > { %14533 = vmatpush3.bf16.msra.mxu1 %v14530_v4 }
 0x5fc   : > { %14535 = vmatprep.subr.bf16.mxu1 %v14534_v49 }
 0x5fe   : > { %13374 = vmatmul.mubr.f32.vlgmr.msra.gmra.mrb[4].mxu1 %v4341_v28 }
 0x5ff   : > { %14537 = vmatpush3.bf16.msra.mxu1 %v14534_v49  ;;  %13392 = vmatprep.mubr.f32.mxu1 %v4332_v2  ;;  %v12156_v49 = vld [vmem:[%s17210_s30] ss:$0 sm:$0xff]  ;;  %s17236_s30 = sld [smem:[#allocation42_spill]] }
 0x600   : > { %14539 = vmatprep.subr.bf16.mxu1 %v14538_v56 }
 0x603   : > { %14541 = vmatpush3.bf16.msra.mxu1 %v14538_v56  ;;  %v4843_v56 = vld [vmem:[%s17209_s24 + $0x18] sm:$0xff] }
 0x604   : > { %14543 = vmatprep.subr.bf16.mxu1 %v14542_v14  ;;  %v4869_v41 = vand.u32 4294901760, %v4843_v56 }
 0x605   : > { %s717_s29 = scalar_lea.vmem %s17236_s30, %s15958_s0 }
 0x606   : > { %v4971_v7 = vsub.f32 %v4843_v56, %v4869_v41 }
 0x607   : > { %14545 = vmatpush3.bf16.msra.mxu1 %v14542_v14  ;;  %v17207_v14 = vand.u32 4294901760, %v16494_v1 }
 0x608   : > { %14547 = vmatprep.subr.bf16.mxu1 %v14546_v43  ;;  %v4972_v6 = vand.u32 4294901760, %v4971_v7 }
 0x609   : > { %v14566_v60 = vpack.c.bf16 %v17208_v3, %v17207_v14 }
 0x60b   : > { %14549 = vmatpush3.bf16.msra.mxu1 %v14546_v43 }
 0x60c   : > { %14551 = vmatprep.subr.bf16.mxu1 %v16415_v10 }
 0x60e   : > { %13393 = vmatmul.mubr.f32.vlgmr.msra.gmra.mrb[4].mxu1 %v4342_v52  ;;  %v4973_v52 = vsub.f32 %v4971_v7, %v4972_v6 }
 0x60f   : > { %14553 = vmatpush3.bf16.msra.mxu1 %v16415_v10  ;;  %13411 = vmatprep.mubr.f32.mxu1 %v4333_v25 }
 0x610   : > { %14555 = vmatprep.subr.bf16.mxu1 %v16422_v9 }
 0x613   : > { %14557 = vmatpush3.bf16.msra.mxu1 %v16422_v9 }
 0x614   : > { %14559 = vmatprep.subr.bf16.mxu1 %v16428_v34 }
 0x617   : > { %14561 = vmatpush3.bf16.msra.mxu1 %v16428_v34 }
 0x618   : > { %14563 = vmatprep.subr.bf16.mxu1 %v16434_v37 }
 0x61b   : > { %14565 = vmatpush3.bf16.msra.mxu1 %v16434_v37 }
 0x61c   : > { %14567 = vmatprep.subr.bf16.mxu1 %v14566_v60 }
 0x61e   : > { %13412 = vmatmul.mubr.f32.vlgmr.msra.gmra.mrb[4].mxu1 %v4343_v16  ;;  %v4974_v16 = vand.u32 4294901760, %v4973_v52  ;;  %v4850_v52 = vld [vmem:[#allocation4 + $0x10] sm:$0xff] }
 0x61f   : > { %14569 = vmatpush3.bf16.msra.mxu1 %v14566_v60  ;;  %13430 = vmatprep.mubr.f32.mxu1 %v4331_v39 }
 0x620   : > { %14571 = vmatprep.subr.bf16.mxu1 %v16521_v33 }
 0x623   : > { %14573 = vmatpush3.bf16.msra.mxu1 %v16521_v33 }
 0x624   : > { %14575 = vmatprep.subr.bf16.mxu1 %v16529_v46 }
 0x627   : > { %14577 = vmatpush3.bf16.msra.mxu1 %v16529_v46  ;;  %v4840_v46 = vld [vmem:[%s17209_s24] sm:$0xff] }
 0x628   : > { %14579 = vmatprep.subr.bf16.mxu1 %v14578_v55 }
 0x62b   : > { %14581 = vmatpush3.bf16.msra.mxu1 %v14578_v55 }
 0x62c   : > { %14583 = vmatprep.subr.bf16.mxu1 %v16415_v10 }
 0x62e   : > { %13431 = vmatmul.mubr.f32.vlgmr.msra.gmra.mrb[4].mxu1 %v4341_v28 }
 0x62f   : > { %14585 = vmatpush3.bf16.msra.mxu1 %v16415_v10  ;;  %13449 = vmatprep.mubr.f32.mxu1 %v4331_v39  ;;  %v4841_v10 = vld [vmem:[%s17209_s24 + $0x8] sm:$0xff] }
 0x630   : > { %14587 = vmatprep.subr.bf16.mxu1 %v16422_v9  ;;  %v4863_v50 = vand.u32 4294901760, %v4841_v10 }
 0x632   : > { %v4957_v5 = vsub.f32 %v4841_v10, %v4863_v50 }
 0x633   : > { %14589 = vmatpush3.bf16.msra.mxu1 %v16422_v9  ;;  %v4860_v9 = vand.u32 4294901760, %v4840_v46 }
 0x634   : > { %14591 = vmatprep.subr.bf16.mxu1 %v16428_v34  ;;  %v4958_v47 = vand.u32 4294901760, %v4957_v5 }
 0x635   : > { %v16572_v1 = vpack.c.bf16 %v4863_v50, %v4860_v9 }
 0x636   : > { %v4959_v4 = vsub.f32 %v4957_v5, %v4958_v47 }
 0x637   : > { %14593 = vmatpush3.bf16.msra.mxu1 %v16428_v34  ;;  %v4950_v34 = vsub.f32 %v4840_v46, %v4860_v9  ;;  %14599 = vmatprep.subr.bf16.mxu0 %v16572_v1 }
 0x638   : > { %14595 = vmatprep.subr.bf16.mxu1 %v16434_v37  ;;  %14601 = vmatpush3.bf16.msra.mxu0 %v16572_v1  ;;  %v4960_v23 = vand.u32 4294901760, %v4959_v4 }
 0x639   : > { %v4951_v43 = vand.u32 4294901760, %v4950_v34  ;;  %v14614_v24 = vpack.c.bf16 %v4957_v5, %v4950_v34 }
 0x63b   : > { %14597 = vmatpush3.bf16.msra.mxu1 %v16434_v37  ;;  %v4842_v37 = vld [vmem:[%s17209_s24 + $0x10] sm:$0xff]  ;;  %v4952_v55 = vsub.f32 %v4950_v34, %v4951_v43  ;;  %v14630_v27 = vpack.c.bf16 %v4958_v47, %v4951_v43 }
 0x63c   : > { %v4866_v33 = vand.u32 4294901760, %v4842_v37 }
 0x63d   : > { %v4953_v44 = vand.u32 4294901760, %v4952_v55 }
 0x63e   : > { %13450 = vmatmul.mubr.f32.vlgmr.msra.gmra.mrb[4].mxu1 %v4341_v28  ;;  %v16582_v29 = vpack.c.bf16 %v4869_v41, %v4866_v33  ;;  %v4964_v63 = vsub.f32 %v4842_v37, %v4866_v33 }
 0x63f   : > { %13588 = vmatprep.mubr.f32.mxu1 %v16049_v21  ;;  %v14606_v28 = vpack.c.bf16 %v4960_v23, %v4953_v44  ;;  %v4849_v44 = vld [vmem:[#allocation4 + $0x8] sm:$0xff] }
 0x640   : > { %14603 = vmatprep.subr.bf16.mxu0 %v16582_v29  ;;  %v4965_v62 = vand.u32 4294901760, %v4964_v63  ;;  %v14618_v36 = vpack.c.bf16 %v4971_v7, %v4964_v63  ;;  %v4848_v7 = vld [vmem:[#allocation4] sm:$0xff] }
 0x641   : > { %14605 = vmatpush3.bf16.msra.mxu0 %v16582_v29  ;;  %v5394_v23 = vand.u32 4294901760, %v4848_v7 }
 0x642   : > { %v4966_v39 = vsub.f32 %v4964_v63, %v4965_v62  ;;  %14607 = vmatprep.subr.bf16.mxu0 %v14606_v28  ;;  %v14634_v59 = vpack.c.bf16 %v4972_v6, %v4965_v62  ;;  %v5397_v62 = vand.u32 4294901760, %v4849_v44 }
 0x644   : > { %v4967_v2 = vand.u32 4294901760, %v4966_v39  ;;  %v16599_v6 = vpack.c.bf16 %v5397_v62, %v5394_v23  ;;  %v5491_v39 = vsub.f32 %v4849_v44, %v5397_v62 }
 0x646   : > { %v14610_v25 = vpack.c.bf16 %v4974_v16, %v4967_v2  ;;  %v4851_v2 = vld [vmem:[#allocation4 + $0x18] sm:$0xff]  ;;  %v5400_v16 = vand.u32 4294901760, %v4850_v52 }
 0x711   : > { %v13451_v14 = vpop.f32.mrb[4].mxu1 }
 0x712   : > { %v15084_v3 = vadd.f32 %v13451_v14, %v12156_v49  ;;  %v4828_v60 = vpop.f32.mrb[5].mxu1 }
 0x713   : > { %v15085_v46 = vadd.f32 %v12156_v49, %v4828_v60 }
 0x714   : > { %v4839_v10 = vmax.f32 %v15084_v3, 0.0 }
 0x715   : > { %v4838_v9 = vmax.f32 %v15085_v46, 0.0 }
 0x716   : > { %v4857_v50 = vsel %vm1272_vm1, %v4839_v10, 0 }
 0x717   : > { %v4938_v37 = vand.u32 4294901760, %v4857_v50  ;;  %v4854_v56 = vsel %vm1272_vm1, %v4838_v9, 0 }
 0x718   : > { %v4928_v33 = vand.u32 4294901760, %v4854_v56 }
 0x719   : > { %v4939_v34 = vsub.f32 %v4857_v50, %v4938_v37 }
 0x71a   : > { %v4929_v5 = vsub.f32 %v4854_v56, %v4928_v33 }
 0x71b   : > { %v4940_v41 = vand.u32 4294901760, %v4939_v34 }
 0x71c   : > { %v4930_v43 = vand.u32 4294901760, %v4929_v5 }
 0x71d   : > { %v4941_v47 = vsub.f32 %v4939_v34, %v4940_v41 }
 0x71e   : > { %v4931_v55 = vsub.f32 %v4929_v5, %v4930_v43 }
 0x71f   : > { %v4942_v63 = vand.u32 4294901760, %v4941_v47 }
 0x720   : > { %v4932_v4 = vand.u32 4294901760, %v4931_v55 }
 0x722   : > { %13460 = vmatprep.mubr.f32.mxu0 %v4932_v4 }
 0x723   : > { %13461 = vmatmul.mubr.f32.vlgmr.msra.gmra.mrb[12].mxu0 %v4942_v63 }
 0x724   : > { %14609 = vmatpush3.bf16.msra.mxu0 %v14606_v28  ;;  %13471 = vmatprep.mubr.f32.mxu0 %v4928_v33  ;;  %v5484_v28 = vsub.f32 %v4848_v7, %v5394_v23 }
 0x725   : > { %14611 = vmatprep.subr.bf16.mxu0 %v14610_v25 }
 0x728   : > { %14613 = vmatpush3.bf16.msra.mxu0 %v14610_v25  ;;  %v5485_v25 = vand.u32 4294901760, %v5484_v28 }
 0x729   : > { %14615 = vmatprep.subr.bf16.mxu0 %v14614_v24 }
 0x72b   : > { %13472 = vmatmul.mubr.f32.vlgmr.msra.gmra.mrb[12].mxu0 %v4938_v37 }
 0x72c   : > { %14617 = vmatpush3.bf16.msra.mxu0 %v14614_v24  ;;  %13482 = vmatprep.mubr.f32.mxu0 %v4929_v5  ;;  %v5492_v24 = vand.u32 4294901760, %v5491_v39 }
 0x72d   : > { %14619 = vmatprep.subr.bf16.mxu0 %v14618_v36 }
 0x730   : > { %14621 = vmatpush3.bf16.msra.mxu0 %v14618_v36  ;;  %v5486_v36 = vsub.f32 %v5484_v28, %v5485_v25 }
 0x731   : > { %14623 = vmatprep.subr.bf16.mxu0 %v16572_v1 }
 0x732   : > { %v5487_v14 = vand.u32 4294901760, %v5486_v36 }
 0x733   : > { %13483 = vmatmul.mubr.f32.vlgmr.msra.gmra.mrb[12].mxu0 %v4939_v34  ;;  %v14662_v34 = vpack.c.bf16 %v5491_v39, %v5484_v28 }
 0x734   : > { %14625 = vmatpush3.bf16.msra.mxu0 %v16572_v1  ;;  %13493 = vmatprep.mubr.f32.mxu0 %v4930_v43 }
 0x735   : > { %14627 = vmatprep.subr.bf16.mxu0 %v16582_v29 }
 0x738   : > { %14629 = vmatpush3.bf16.msra.mxu0 %v16582_v29 }
 0x739   : > { %14631 = vmatprep.subr.bf16.mxu0 %v14630_v27 }
 0x73b   : > { %13494 = vmatmul.mubr.f32.vlgmr.msra.gmra.mrb[12].mxu0 %v4940_v41  ;;  %v14678_v41 = vpack.c.bf16 %v5492_v24, %v5485_v25 }
 0x73c   : > { %14633 = vmatpush3.bf16.msra.mxu0 %v14630_v27  ;;  %13504 = vmatprep.mubr.f32.mxu0 %v4928_v33  ;;  %v5493_v27 = vsub.f32 %v5491_v39, %v5492_v24 }
 0x73d   : > { %14635 = vmatprep.subr.bf16.mxu0 %v14634_v59 }
 0x73e   : > { %v5494_v3 = vand.u32 4294901760, %v5493_v27 }
 0x740   : > { %14637 = vmatpush3.bf16.msra.mxu0 %v14634_v59  ;;  %v5498_v59 = vsub.f32 %v4850_v52, %v5400_v16  ;;  %v14654_v10 = vpack.c.bf16 %v5494_v3, %v5487_v14 }
 0x741   : > { %14639 = vmatprep.subr.bf16.mxu0 %v16572_v1 }
 0x742   : > { %v5499_v60 = vand.u32 4294901760, %v5498_v59 }
 0x743   : > { %13505 = vmatmul.mubr.f32.vlgmr.msra.gmra.mrb[12].mxu0 %v4938_v37 }
 0x744   : > { %14641 = vmatpush3.bf16.msra.mxu0 %v16572_v1  ;;  %13515 = vmatprep.mubr.f32.mxu0 %v4928_v33  ;;  %v5403_v1 = vand.u32 4294901760, %v4851_v2  ;;  %v5500_v9 = vsub.f32 %v5498_v59, %v5499_v60 }
 0x745   : > { %14643 = vmatprep.subr.bf16.mxu0 %v16582_v29 }
 0x746   : > { %v5505_v49 = vsub.f32 %v4851_v2, %v5403_v1 }
 0x748   : > { %14645 = vmatpush3.bf16.msra.mxu0 %v16582_v29  ;;  %v16603_v29 = vpack.c.bf16 %v5403_v1, %v5400_v16  ;;  %v5506_v46 = vand.u32 4294901760, %v5505_v49  ;;  %v14666_v5 = vpack.c.bf16 %v5505_v49, %v5498_v59 }
 0x749   : > { %14647 = vmatprep.subr.bf16.mxu0 %v16599_v6 }
 0x74a   : > { %v5507_v50 = vsub.f32 %v5505_v49, %v5506_v46  ;;  %v14682_v43 = vpack.c.bf16 %v5506_v46, %v5499_v60 }
 0x74b   : > { %13516 = vmatmul.mubr.f32.vlgmr.msra.gmra.mrb[12].mxu0 %v4938_v37  ;;  %v5501_v37 = vand.u32 4294901760, %v5500_v9 }
 0x74c   : > { %14649 = vmatpush3.bf16.msra.mxu0 %v16599_v6  ;;  %v5508_v56 = vand.u32 4294901760, %v5507_v50 }
 0x74d   : > { %14651 = vmatprep.subr.bf16.mxu0 %v16603_v29 }
 0x74e   : > { %v14658_v33 = vpack.c.bf16 %v5508_v56, %v5501_v37 }
 0x750   : > { %14653 = vmatpush3.bf16.msra.mxu0 %v16603_v29 }
 0x751   : > { %14655 = vmatprep.subr.bf16.mxu0 %v14654_v10 }
 0x81e   : > { %v13517_v47 = vpop.f32.mrb[12].mxu0 }
 0x81f   : > { %v5391_v55 = vsel %vm1272_vm1, %v13517_v47, 0  ;;  %v7567_v4 = vand.u32 4294901760, %v13517_v47  ;;  %v5377_v63 = vpop.f32.mrb[13].mxu0 }
 0x820   : > { %v16608_v7 = vand.u32 4294901760, %v5391_v55  ;;  %v5388_v44 = vsel %vm1272_vm1, %v5377_v63, 0  ;;  %v7564_v23 = vand.u32 4294901760, %v5377_v63 }
 0x821   : > { %v7719_v62 = vsub.f32 %v13517_v47, %v7567_v4  ;;  %v16611_v52 = vand.u32 4294901760, %v5388_v44 }
 0x822   : > { %v16614_v2 = vsub.f32 %v5391_v55, %v16608_v7  ;;  %v16616_v28 = vpack.c.bf16 %v7567_v4, %v7564_v23  ;;  %v7712_v39 = vsub.f32 %v5377_v63, %v7564_v23 }
 0x823   : > { %v7720_v16 = vand.u32 4294901760, %v7719_v62  ;;  %v16619_v1 = vsub.f32 %v5388_v44, %v16611_v52 }
 0x824   : > { %v7713_v25 = vand.u32 4294901760, %v7712_v39  ;;  %v16622_v24 = vand.u32 4294901760, %v16614_v2  ;;  %v16624_v36 = vpack.c.bf16 %v7719_v62, %v7712_v39 }
 0x825   : > { %v16627_v27 = vand.u32 4294901760, %v16619_v1  ;;  %v7721_v59 = vsub.f32 %v7719_v62, %v7720_v16 }
 0x826   : > { %v5475_v49 = vsub.f32 %v16614_v2, %v16622_v24  ;;  %v7714_v14 = vsub.f32 %v7712_v39, %v7713_v25  ;;  %v16631_v3 = vpack.c.bf16 %v7720_v16, %v7713_v25 }
 0x827   : > { %v5465_v60 = vsub.f32 %v16619_v1, %v16627_v27  ;;  %v7722_v46 = vand.u32 4294901760, %v7721_v59 }
 0x828   : > { %v7715_v9 = vand.u32 4294901760, %v7714_v14  ;;  %v16637_v37 = vand.u32 4294901760, %v5475_v49  ;;  %v17211_v49 = vmov 1.0  }
 0x829   : > { %v16635_v50 = vand.u32 4294901760, %v5465_v60  ;;  %v4844_v60 = vld [vmem:[#allocation2] sm:$0xff] }
 0x82a   : > { %v16639_v56 = vpack.c.bf16 %v7722_v46, %v7715_v9  ;;  %v4845_v46 = vld [vmem:[#allocation2 + $0x8] sm:$0xff]  ;;  %v6426_v9 = vand.u32 4294901760, %v4844_v60 }
 0x82b   : > { %13526 = vmatprep.mubr.f32.mxu0 %v16635_v50 }
 0x82c   : > { %13527 = vmatmul.mubr.f32.vlgmr.msra.gmra.mrb[14].mxu0 %v16637_v37 }
 0x82d   : > { %14657 = vmatpush3.bf16.msra.mxu0 %v14654_v10  ;;  %13537 = vmatprep.mubr.f32.mxu0 %v16611_v52 }
 0x82e   : > { %14659 = vmatprep.subr.bf16.mxu0 %v14658_v33 }
 0x831   : > { %14661 = vmatpush3.bf16.msra.mxu0 %v14658_v33 }
 0x832   : > { %14663 = vmatprep.subr.bf16.mxu0 %v14662_v34 }
 0x834   : > { %13538 = vmatmul.mubr.f32.vlgmr.msra.gmra.mrb[14].mxu0 %v16608_v7 }
 0x835   : > { %14665 = vmatpush3.bf16.msra.mxu0 %v14662_v34  ;;  %13548 = vmatprep.mubr.f32.mxu0 %v16619_v1  ;;  %v15456_v34 = vld [vmem:[%s17180_s3] sm:$0xff] }
 0x836   : > { %14667 = vmatprep.subr.bf16.mxu0 %v14666_v5 }
 0x839   : > { %14669 = vmatpush3.bf16.msra.mxu0 %v14666_v5 }
 0x83a   : > { %14671 = vmatprep.subr.bf16.mxu0 %v16599_v6 }
 0x83c   : > { %13549 = vmatmul.mubr.f32.vlgmr.msra.gmra.mrb[14].mxu0 %v16614_v2 }
 0x83d   : > { %14673 = vmatpush3.bf16.msra.mxu0 %v16599_v6  ;;  %13559 = vmatprep.mubr.f32.mxu0 %v16627_v27 }
 0x83e   : > { %14675 = vmatprep.subr.bf16.mxu0 %v16603_v29 }
 0x841   : > { %14677 = vmatpush3.bf16.msra.mxu0 %v16603_v29 }
 0x842   : > { %14679 = vmatprep.subr.bf16.mxu0 %v14678_v41 }
 0x844   : > { %13560 = vmatmul.mubr.f32.vlgmr.msra.gmra.mrb[14].mxu0 %v16622_v24 }
 0x845   : > { %14681 = vmatpush3.bf16.msra.mxu0 %v14678_v41  ;;  %13570 = vmatprep.mubr.f32.mxu0 %v16611_v52 }
 0x846   : > { %14683 = vmatprep.subr.bf16.mxu0 %v14682_v43 }
 0x849   : > { %14685 = vmatpush3.bf16.msra.mxu0 %v14682_v43 }
 0x84a   : > { %14687 = vmatprep.subr.bf16.mxu0 %v16599_v6 }
 0x84c   : > { %13571 = vmatmul.mubr.f32.vlgmr.msra.gmra.mrb[14].mxu0 %v16608_v7 }
 0x84d   : > { %14689 = vmatpush3.bf16.msra.mxu0 %v16599_v6  ;;  %13581 = vmatprep.mubr.f32.mxu0 %v16611_v52 }
 0x84e   : > { %14691 = vmatprep.subr.bf16.mxu0 %v16603_v29 }
 0x851   : > { %14693 = vmatpush3.bf16.msra.mxu0 %v16603_v29  ;;  %v15455_v29 = vld [vmem:[%s17180_s3 + $0x8] sm:$0xff] }
 0x852   : > { %14767 = vmatprep.subr.bf16.mxu0 %v16325_v42 }
 0x854   : > { %13582 = vmatmul.mubr.f32.vlgmr.msra.gmra.mrb[14].mxu0 %v16608_v7 }
 0x855   : > { %14769 = vmatpush3.bf16.msra.mxu0 %v16325_v42 }
 0x856   : > { %14771 = vmatprep.subr.bf16.mxu0 %v16335_v54 }
 0x859   : > { %14773 = vmatpush3.bf16.msra.mxu0 %v16335_v54 }
 0x85a   : > { %14775 = vmatprep.subr.bf16.mxu0 %v16345_v20 }
 0x85d   : > { %14777 = vmatpush3.bf16.msra.mxu0 %v16345_v20 }
 0x85e   : > { %14779 = vmatprep.subr.bf16.mxu0 %v16355_v61 }
 0x861   : > { %14781 = vmatpush3.bf16.msra.mxu0 %v16355_v61 }
 0x862   : > { %14783 = vmatprep.subr.bf16.mxu0 %v16359_v35 }
 0x927   : > { %v13583_v6 = vpop.f32.mrb[14].mxu0 }
 0x928   : > { %v5922_v10 = vmul.f32 %v15455_v29, %v13583_v6  ;;  %v5911_v33 = vpop.f32.mrb[15].mxu0  ;;  %v6429_v6 = vand.u32 4294901760, %v4845_v46  ;;  %v4846_v29 = vld [vmem:[#allocation2 + $0x10] sm:$0xff] }
 0x929   : > { %v5921_v5 = vmul.f32 %v15456_v34, %v5911_v33  ;;  %v6432_v33 = vand.u32 4294901760, %v4846_v29 }
 0x92a   : > { %v5927_v41 = vand.u32 4294901760, %v5922_v10 }
 0x92b   : > { %v5924_v43 = vand.u32 4294901760, %v5921_v5 }
 0x92c   : > { %v6019_v47 = vsub.f32 %v5922_v10, %v5927_v41  ;;  %v4847_v10 = vld [vmem:[#allocation2 + $0x18] sm:$0xff] }
 0x92d   : > { %v14694_v55 = vpack.c.bf16 %v5927_v41, %v5924_v43  ;;  %v6012_v4 = vsub.f32 %v5921_v5, %v5924_v43  ;;  %v6435_v34 = vand.u32 4294901760, %v4847_v10  ;;  %v6516_v5 = vsub.f32 %v4844_v60, %v6426_v9 }
 0x92e   : > { %v6020_v63 = vand.u32 4294901760, %v6019_v47  ;;  %v6523_v41 = vsub.f32 %v4845_v46, %v6429_v6  ;;  %v14718_v43 = vpack.c.bf16 %v6429_v6, %v6426_v9 }
 0x92f   : > { %v6013_v44 = vand.u32 4294901760, %v6012_v4  ;;  %14695 = vmatprep.subr.bf16.mxu1 %v14694_v55  ;;  %v14702_v23 = vpack.c.bf16 %v6019_v47, %v6012_v4 }
 0x930   : > { %14697 = vmatpush3.bf16.msra.mxu1 %v14694_v55  ;;  %v6021_v62 = vsub.f32 %v6019_v47, %v6020_v63  ;;  %v6517_v47 = vand.u32 4294901760, %v6516_v5 }
 0x931   : > { %v6014_v39 = vsub.f32 %v6012_v4, %v6013_v44  ;;  %v14710_v16 = vpack.c.bf16 %v6020_v63, %v6013_v44  ;;  %v6524_v4 = vand.u32 4294901760, %v6523_v41  ;;  %v6530_v63 = vsub.f32 %v4846_v29, %v6432_v33 }
 0x932   : > { %v6022_v25 = vand.u32 4294901760, %v6021_v62  ;;  %v6537_v44 = vsub.f32 %v4847_v10, %v6435_v34  ;;  %v14734_v10 = vpack.c.bf16 %v6523_v41, %v6516_v5 }
 0x933   : > { %13589 = vmatmul.mubr.f32.vlgmr.msra.gmra.mrb[6].mxu1 %v16049_v21  ;;  %v6015_v59 = vand.u32 4294901760, %v6014_v39  ;;  %v6525_v62 = vsub.f32 %v6523_v41, %v6524_v4  ;;  %v6531_v39 = vand.u32 4294901760, %v6530_v63 }
 0x934   : > { %13595 = vmatprep.mubr.msk.f32.mxu1 %vm1809_vm2, %v17211_v49 }
 0x935   : > { %v14698_v14 = vpack.c.bf16 %v6022_v25, %v6015_v59  ;;  %v14722_v25 = vpack.c.bf16 %v6435_v34, %v6432_v33  ;;  %v6532_v60 = vsub.f32 %v6530_v63, %v6531_v39  ;;  %v14738_v33 = vpack.c.bf16 %v6537_v44, %v6530_v63 }
 0x937   : > { %14699 = vmatprep.subr.bf16.mxu1 %v14698_v14  ;;  %v6533_v9 = vand.u32 4294901760, %v6532_v60 }
 0x938   : > { %14701 = vmatpush3.bf16.msra.mxu1 %v14698_v14  ;;  %v6526_v14 = vand.u32 4294901760, %v6525_v62 }
 0x939   : > { %14703 = vmatprep.subr.bf16.mxu1 %v14702_v23 }
 0x93b   : > { %13596 = vmatmul.mubr.msk.f32.vlgmr.msra.gmra.mrb[6].mxu1 %vm1809_vm2, %v17211_v49 }
 0x93c   : > { %14705 = vmatpush3.bf16.msra.mxu1 %v14702_v23  ;;  %13602 = vmatprep.mubr.f32.mxu1 %v16042_v18  ;;  %v6518_v23 = vsub.f32 %v6516_v5, %v6517_v47  ;;  %v15458_v5 = vld [vmem:[%s16307_s19 + $0x8] sm:$0xff] }
 0x93d   : > { %14707 = vmatprep.subr.bf16.mxu1 %v14694_v55 }
 0x93e   : > { %v6519_v59 = vand.u32 4294901760, %v6518_v23  ;;  %v15461_v23 = vld [vmem:[%s17101_s6 + $0x18] sm:$0xff] }
 0x943   : > { %13603 = vmatmul.mubr.f32.vlgmr.msra.gmra.mrb[6].mxu1 %v16042_v18 }
 0x944   : > { %14709 = vmatpush3.bf16.msra.mxu1 %v14694_v55  ;;  %13609 = vmatprep.mubr.f32.mxu1 %v16045_v19 }
 0x945   : > { %14711 = vmatprep.subr.bf16.mxu1 %v14710_v16 }
 0x94b   : > { %13610 = vmatmul.mubr.f32.vlgmr.msra.gmra.mrb[6].mxu1 %v16045_v19 }
 0x94c   : > { %14713 = vmatpush3.bf16.msra.mxu1 %v14710_v16  ;;  %13616 = vmatprep.mubr.msk.f32.mxu1 %vm1809_vm2, %v17211_v49  ;;  %v6538_v16 = vand.u32 4294901760, %v6537_v44 }
 0x94d   : > { %14715 = vmatprep.subr.bf16.mxu1 %v14694_v55 }
 0x94e   : > { %v6539_v46 = vsub.f32 %v6537_v44, %v6538_v16 }
 0x950   : > { %v6540_v6 = vand.u32 4294901760, %v6539_v46  ;;  %v15463_v46 = vld [vmem:[%s17101_s6 + $0x28] sm:$0xff] }
 0x952   : > { %v14730_v29 = vpack.c.bf16 %v6540_v6, %v6533_v9 }
 0x953   : > { %13617 = vmatmul.mubr.msk.f32.vlgmr.msra.gmra.mrb[6].mxu1 %vm1809_vm2, %v17211_v49 }
 0x954   : > { %14717 = vmatpush3.bf16.msra.mxu1 %v14694_v55  ;;  %13623 = vmatprep.mubr.msk.f32.mxu1 %vm1809_vm2, %v17211_v49  ;;  %v14726_v55 = vpack.c.bf16 %v6526_v14, %v6519_v59 }
 0x955   : > { %14719 = vmatprep.subr.bf16.mxu1 %v14718_v43 }
 0x95b   : > { %13624 = vmatmul.mubr.msk.f32.vlgmr.msra.gmra.mrb[6].mxu1 %vm1809_vm2, %v17211_v49 }
 0x95c   : > { %14721 = vmatpush3.bf16.msra.mxu1 %v14718_v43  ;;  %13634 = vmatprep.mubr.f32.mxu1 %v16635_v50  ;;  %v14750_v50 = vpack.c.bf16 %v6524_v4, %v6517_v47  ;;  %v15460_v47 = vld [vmem:[%s17101_s6] sm:$0xff] }
 0x95d   : > { %14723 = vmatprep.subr.bf16.mxu1 %v14722_v25 }
 0x960   : > { %14725 = vmatpush3.bf16.msra.mxu1 %v14722_v25 }
 0x961   : > { %14727 = vmatprep.subr.bf16.mxu1 %v14726_v55 }
 0x963   : > { %13635 = vmatmul.mubr.f32.vlgmr.msra.gmra.mrb[6].mxu1 %v16637_v37  ;;  %v14754_v37 = vpack.c.bf16 %v6538_v16, %v6531_v39 }
 0x964   : > { %14729 = vmatpush3.bf16.msra.mxu1 %v14726_v55  ;;  %13645 = vmatprep.mubr.f32.mxu1 %v16611_v52 }
 0x965   : > { %14731 = vmatprep.subr.bf16.mxu1 %v14730_v29 }
 0x968   : > { %14733 = vmatpush3.bf16.msra.mxu1 %v14730_v29 }
 0x969   : > { %14735 = vmatprep.subr.bf16.mxu1 %v14734_v10 }
 0x96b   : > { %13646 = vmatmul.mubr.f32.vlgmr.msra.gmra.mrb[6].mxu1 %v16608_v7 }
 0x96c   : > { %14737 = vmatpush3.bf16.msra.mxu1 %v14734_v10  ;;  %13656 = vmatprep.mubr.f32.mxu1 %v16619_v1  ;;  %v17224_v1 = vld [vmem:[#allocation28_spill] sm:$0xff] }
 0x96d   : > { %14739 = vmatprep.subr.bf16.mxu1 %v14738_v33  ;;  %v15464_v10 = vld [vmem:[%s17101_s6 + $0x20] sm:$0xff] }
 0x970   : > { %14741 = vmatpush3.bf16.msra.mxu1 %v14738_v33 }
 0x971   : > { %14743 = vmatprep.subr.bf16.mxu1 %v14718_v43 }
 0x973   : > { %13657 = vmatmul.mubr.f32.vlgmr.msra.gmra.mrb[6].mxu1 %v16614_v2  ;;  %v17223_v2 = vld [vmem:[#allocation26_spill] sm:$0xff] }
 0x974   : > { %14745 = vmatpush3.bf16.msra.mxu1 %v14718_v43  ;;  %13667 = vmatprep.mubr.f32.mxu1 %v16627_v27 }
 0x975   : > { %14747 = vmatprep.subr.bf16.mxu1 %v14722_v25 }
 0x978   : > { %14749 = vmatpush3.bf16.msra.mxu1 %v14722_v25 }
 0x979   : > { %14751 = vmatprep.subr.bf16.mxu1 %v14750_v50 }
 0x97b   : > { %13668 = vmatmul.mubr.f32.vlgmr.msra.gmra.mrb[6].mxu1 %v16622_v24  ;;  %v17225_v24 = vld [vmem:[#allocation30_spill] sm:$0xff] }
 0x97c   : > { %14753 = vmatpush3.bf16.msra.mxu1 %v14750_v50  ;;  %13678 = vmatprep.mubr.f32.mxu1 %v16611_v52 }
 0x97d   : > { %14755 = vmatprep.subr.bf16.mxu1 %v14754_v37 }
 0x980   : > { %14757 = vmatpush3.bf16.msra.mxu1 %v14754_v37 }
 0x981   : > { %14759 = vmatprep.subr.bf16.mxu1 %v14718_v43 }
 0x983   : > { %13679 = vmatmul.mubr.f32.vlgmr.msra.gmra.mrb[6].mxu1 %v16608_v7 }
 0x984   : > { %14761 = vmatpush3.bf16.msra.mxu1 %v14718_v43  ;;  %13689 = vmatprep.mubr.f32.mxu1 %v16611_v52  ;;  %v17222_v52 = vld [vmem:[#allocation24_spill] sm:$0xff] }
 0x985   : > { %14763 = vmatprep.subr.bf16.mxu1 %v14722_v25 }
 0x988   : > { %14765 = vmatpush3.bf16.msra.mxu1 %v14722_v25  ;;  %v15462_v25 = vld [vmem:[%s17101_s6 + $0x10] sm:$0xff] }
 0x989   : > { %14863 = vmatprep.subr.bf16.mxu1 %v16616_v28 }
 0x98b   : > { %13690 = vmatmul.mubr.f32.vlgmr.msra.gmra.mrb[6].mxu1 %v16608_v7  ;;  %v17221_v7 = vld [vmem:[#allocation22_spill] sm:$0xff] }
 0x98c   : > { %14865 = vmatpush3.bf16.msra.mxu1 %v16616_v28  ;;  %13810 = vmatprep.mubr.f32.mxu1 %v16196_v57  ;;  %v17212_v57 = vld [vmem:[#allocation18_spill] sm:$0xff] }
 0x98d   : > { %14867 = vmatprep.subr.bf16.mxu1 %v16639_v56 }
 0x98f   : > { %13811 = vmatmul.mubr.f32.vlgmr.msra.gmra.mrb[8].mxu1 %v16208_v0  ;;  %v17213_v0 = vld [vmem:[#allocation19_spill] sm:$0xff] }
 0x990   : > { %14869 = vmatpush3.bf16.msra.mxu1 %v16639_v56  ;;  %13813 = vmatprep.mubr.f32.mxu1 %v16220_v8  ;;  %v17214_v8 = vld [vmem:[#allocation21_spill] sm:$0xff] }
 0x991   : > { %14871 = vmatprep.subr.bf16.mxu1 %v16624_v36 }
 0x993   : > { %13814 = vmatmul.mubr.f32.gmra.mrb[10].mxu1 %v16229_v11  ;;  %v17215_v11 = vld [vmem:[#allocation23_spill] sm:$0xff] }
 0x994   : > { %13816 = vmatprep.mubr.f32.mxu1 %v16238_v17  ;;  %v17216_v17 = vld [vmem:[#allocation25_spill] sm:$0xff] }
 0x997   : > { %13817 = vmatmul.mubr.f32.gmra.mrb[12].mxu1 %v16244_v22  ;;  %v17217_v22 = vld [vmem:[#allocation27_spill] sm:$0xff] }
 0x998   : > { %13819 = vmatprep.mubr.f32.mxu1 %v16249_v13  ;;  %v17218_v13 = vld [vmem:[#allocation29_spill] sm:$0xff] }
 0x99b   : > { %13820 = vmatmul.mubr.f32.gmra.mrb[14].mxu1 %v16252_v15  ;;  %v17219_v15 = vld [vmem:[#allocation17_spill] sm:$0xff] }
 0x99c   : > { %13826 = vmatprep.mubr.f32.mxu1 %v16115_v26 }
 0x99f   : > { %13827 = vmatmul.mubr.f32.vlgmr.msra.gmra.mrb[8].mxu1 %v16130_v31 }
 0x9a0   : > { %14873 = vmatpush3.bf16.msra.mxu1 %v16624_v36  ;;  %13829 = vmatprep.mubr.f32.mxu1 %v16133_v32  ;;  %v17226_v36 = vld [vmem:[#allocation31_spill] sm:$0xff] }
 0x9a1   : > { %14875 = vmatprep.subr.bf16.mxu1 %v16616_v28 }
 0x9a3   : > { %13830 = vmatmul.mubr.f32.gmra.mrb[10].mxu1 %v16149_v38 }
 0x9a4   : > { %13832 = vmatprep.mubr.f32.mxu1 %v16154_v40 }
 0x9a7   : > { %13833 = vmatmul.mubr.f32.gmra.mrb[12].mxu1 %v16171_v48 }
 0x9a8   : > { %13835 = vmatprep.mubr.f32.mxu1 %v16181_v51 }
 0x9ab   : > { %13836 = vmatmul.mubr.f32.gmra.mrb[14].mxu1 %v16193_v53 }
 0x9ac   : > { %13842 = vmatprep.mubr.f32.mxu1 %v16128_v30  ;;  %v17220_v30 = vld [vmem:[#allocation20_spill] sm:$0xff] }
 0x9af   : > { %13843 = vmatmul.mubr.f32.vlgmr.msra.gmra.mrb[8].mxu1 %v17212_v57 }
 0x9b0   : > { %14877 = vmatpush3.bf16.msra.mxu1 %v16616_v28  ;;  %13845 = vmatprep.mubr.f32.mxu1 %v17213_v0  ;;  %v15465_v0 = vld [vmem:[%s17101_s6 + $0x38] sm:$0xff] }
 0x9b1   : > { %14879 = vmatprep.subr.bf16.mxu1 %v16631_v3 }
 0x9b3   : > { %13846 = vmatmul.mubr.f32.gmra.mrb[10].mxu1 %v17214_v8 }
 0x9b4   : > { %13848 = vmatprep.mubr.f32.mxu1 %v17215_v11 }
 0x9b7   : > { %13849 = vmatmul.mubr.f32.gmra.mrb[12].mxu1 %v17216_v17 }
 0x9b8   : > { %13851 = vmatprep.mubr.f32.mxu1 %v17217_v22 }
 0x9bb   : > { %13852 = vmatmul.mubr.f32.gmra.mrb[14].mxu1 %v17218_v13 }
 0x9bc   : > { %13858 = vmatprep.mubr.f32.mxu1 %v17219_v15 }
 0x9bf   : > { %13859 = vmatmul.mubr.f32.vlgmr.msra.gmra.mrb[8].mxu1 %v17220_v30 }
 0x9c0   : > { %14881 = vmatpush3.bf16.msra.mxu1 %v16631_v3  ;;  %13861 = vmatprep.mubr.f32.mxu1 %v17221_v7  ;;  %v15466_v7 = vld [vmem:[%s17101_s6 + $0x30] sm:$0xff] }
 0x9c1   : > { %14883 = vmatprep.subr.bf16.mxu1 %v16616_v28 }
 0x9c3   : > { %13862 = vmatmul.mubr.f32.gmra.mrb[10].mxu1 %v17222_v52 }
 0x9c4   : > { %13864 = vmatprep.mubr.f32.mxu1 %v17223_v2 }
 0x9c7   : > { %13865 = vmatmul.mubr.f32.gmra.mrb[12].mxu1 %v17224_v1 }
 0x9c8   : > { %13867 = vmatprep.mubr.f32.mxu1 %v17225_v24 }
 0x9cb   : > { %13868 = vmatmul.mubr.f32.gmra.mrb[14].mxu1 %v17226_v36 }
 0x9cc   : > { %13874 = vmatprep.mubr.f32.mxu1 %v16115_v26 }
 0x9cf   : > { %13875 = vmatmul.mubr.f32.vlgmr.msra.gmra.mrb[8].mxu1 %v16130_v31 }
 0x9d0   : > { %14885 = vmatpush3.bf16.msra.mxu1 %v16616_v28  ;;  %13877 = vmatprep.mubr.f32.mxu1 %v16133_v32 }
 0x9d3   : > { %13878 = vmatmul.mubr.f32.gmra.mrb[10].mxu1 %v16149_v38 }
 0x9d4   : > { %13880 = vmatprep.mubr.f32.mxu1 %v16154_v40 }
 0x9d7   : > { %13881 = vmatmul.mubr.f32.gmra.mrb[12].mxu1 %v16171_v48 }
 0x9d8   : > { %13883 = vmatprep.mubr.f32.mxu1 %v16181_v51 }
 0x9db   : > { %13884 = vmatmul.mubr.f32.gmra.mrb[14].mxu1 %v16193_v53 }
 0x9dc   : > { %13890 = vmatprep.mubr.f32.mxu1 %v16115_v26 }
 0x9df   : > { %13891 = vmatmul.mubr.f32.vlgmr.msra.gmra.mrb[8].mxu1 %v16130_v31 }
 0x9e0   : > { %13893 = vmatprep.mubr.f32.mxu1 %v16133_v32  ;;  %v15457_v32 = vld [vmem:[%s16307_s19] sm:$0xff] }
 0x9e3   : > { %13894 = vmatmul.mubr.f32.gmra.mrb[10].mxu1 %v16149_v38 }
 0x9e4   : > { %13896 = vmatprep.mubr.f32.mxu1 %v16154_v40 }
 0x9e7   : > { %13897 = vmatmul.mubr.f32.gmra.mrb[12].mxu1 %v16171_v48 }
 0x9e8   : > { %13899 = vmatprep.mubr.f32.mxu1 %v16181_v51 }
 0x9eb   : > { %13900 = vmatmul.mubr.f32.gmra.mrb[14].mxu1 %v16193_v53  ;;  %v15459_v53 = vld [vmem:[%s17101_s6 + $0x8] sm:$0xff] }
 0xa5e   : > { %v13691_v28 = vpop.f32.mrb[6].mxu1 }
 0xa5f   : > { %vm6954_vm6 = vcmp.gt.f32.partialorder %v13691_v28, 0.0  ;;  %v6956_v27 = vmul.f32 0.2, %v13691_v28  ;;  %v6943_v26 = vpop.f32.mrb[7].mxu1 }
 0xa60   : > { %vm6953_vm7 = vcmp.gt.f32.partialorder %v6943_v26, 0.0  ;;  %v6955_v3 = vmul.f32 0.2, %v6943_v26 }
 0xa61   : > { %v6958_v56 = vsel %vm6954_vm6, %v13691_v28, %v6956_v27 }
 0xa62   : > { %v6957_v31 = vsel %vm6953_vm7, %v6943_v26, %v6955_v3  ;;  %v6960_v40 = vadd.f32 %v15458_v5, %v6958_v56 }
 0xa63   : > { %v6959_v34 = vadd.f32 %v15457_v32, %v6957_v31 }
 0xa64   : > { %v6964_v48 = vsel %vm2851_vm5, %v6960_v40, -inf }
 0xa65   : > { %v6961_v38 = vsel %vm2851_vm5, %v6959_v34, -inf }
 0xa66   : > { %6962 = vmax.xlane.f32.xlu1 %v6961_v38 }
 0xa6a   : > { %6965 = vmax.xlane.f32.xlu1 %v6964_v48 }
 0xab2   : > { %v13892_v51 = vpop.f32.mrb[8].mxu1 }
 0xab3   : > { %v16772_v41 = vmul.f32 %v15459_v53, %v13892_v51  ;;  %v8277_v43 = vpop.f32.mrb[9].mxu1 }
 0xab4   : > { %v16777_v4 = vmul.f32 %v15460_v47, %v8277_v43 }
 0xab5   : > { %v8347_v44 = vand.u32 4294901760, %v16772_v41 }
 0xab6   : > { %v13895_v63 = vpop.f32.mrb[10].mxu1  ;;  %v8344_v16 = vand.u32 4294901760, %v16777_v4 }
 0xab7   : > { %v8326_v62 = vmul.f32 %v15461_v23, %v13895_v63  ;;  %v8289_v39 = vpop.f32.mrb[11].mxu1 }
 0xab8   : > { %v8325_v59 = vmul.f32 %v15462_v25, %v8289_v39  ;;  %v16794_v6 = vpack.c.bf16 %v8347_v44, %v8344_v16 }
 0xab9   : > { %v8353_v60 = vand.u32 4294901760, %v8326_v62 }
 0xaba   : > { %v13898_v14 = vpop.f32.mrb[12].mxu1  ;;  %v8350_v29 = vand.u32 4294901760, %v8325_v59 }
 0xabb   : > { %v8328_v55 = vmul.f32 %v15463_v46, %v13898_v14  ;;  %v8301_v9 = vpop.f32.mrb[13].mxu1  ;;  %v16799_v37 = vsub.f32 %v8326_v62, %v8353_v60  ;;  %v17227_v14 = vld [vmem:[#allocation32_spill] sm:$0xff]  ;;  %v17233_v46 = vld [vmem:[#allocation38_spill] sm:$0xff] }
 0xabc   : > { %v8327_v33 = vmul.f32 %v15464_v10, %v8301_v9  ;;  %v16804_v17 = vpack.c.bf16 %v8353_v60, %v8350_v29  ;;  %v16806_v22 = vsub.f32 %v8325_v59, %v8350_v29  ;;  %v17229_v60 = vld [vmem:[#allocation34_spill] sm:$0xff]  ;;  %v16872_v9 = vsub.f32 %v16772_v41, %v8347_v44 }
 0xabd   : > { %v8359_v57 = vand.u32 4294901760, %v8328_v55 }
 0xabe   : > { %v13901_v50 = vpop.f32.mrb[14].mxu1  ;;  %v8356_v13 = vand.u32 4294901760, %v8327_v33  ;;  %v8453_v10 = vand.u32 4294901760, %v16806_v22 }
 0xabf   : > { %v8330_v8 = vmul.f32 %v15465_v0, %v13901_v50  ;;  %v8313_v11 = vpop.f32.mrb[15].mxu1  ;;  %v16808_v15 = vsub.f32 %v8328_v55, %v8359_v57  ;;  %v17234_v55 = vld [vmem:[#allocation39_spill] sm:$0xff] }
 0xac0   : > { %v8329_v52 = vmul.f32 %v15466_v7, %v8313_v11  ;;  %v16813_v2 = vpack.c.bf16 %v8359_v57, %v8356_v13  ;;  %v16815_v1 = vsub.f32 %v8327_v33, %v8356_v13  ;;  %v8454_v57 = vsub.f32 %v16806_v22, %v8453_v10 }
 0xac1   : > { %v8365_v30 = vand.u32 4294901760, %v8330_v8  ;;  %v8474_v33 = vand.u32 4294901760, %v16808_v15 }
 0xac2   : > { %v8362_v36 = vand.u32 4294901760, %v8329_v52  ;;  %v8467_v50 = vand.u32 4294901760, %v16815_v1  ;;  %v8455_v11 = vand.u32 4294901760, %v8454_v57 }
 0xac3   : > { %v16817_v24 = vsub.f32 %v8330_v8, %v8365_v30  ;;  %v14922_v8 = vpack.c.bf16 %v16799_v37, %v16806_v22 }
 0xac4   : > { %v16819_v28 = vpack.c.bf16 %v8365_v30, %v8362_v36  ;;  %v16821_v27 = vsub.f32 %v8329_v52, %v8362_v36 }
 0xac5   : > { %v8488_v7 = vand.u32 4294901760, %v16817_v24 }
 0xac6   : > { %v8481_v52 = vand.u32 4294901760, %v16821_v27 }
 0xac8   : > { %v8482_v22 = vsub.f32 %v16821_v27, %v8481_v52 }
 0xaf3   : > { %v6963_v26 = vpop.xlane.xlu1 %6962 }
 0xaf4   : > { %v6967_v3 = vsub.f32 %v6959_v34, %v6963_v26  ;;  %v8468_v26 = vsub.f32 %v16815_v1, %v8467_v50 }
 0xaf6   : > { %v6969_v31 = vmul.f32 1.442695, %v6967_v3  ;;  %v8475_v3 = vsub.f32 %v16808_v15, %v8474_v33 }
 0xaf7   : > { %v6966_v56 = vpop.xlane.xlu1 %6965 }
 0xaf8   : > { %15439 = vpow2.f32 %v6969_v31  ;;  %v6968_v32 = vsub.f32 %v6960_v40, %v6966_v56  ;;  %v14926_v31 = vpack.c.bf16 %v16808_v15, %v16815_v1  ;;  %v8469_v56 = vand.u32 4294901760, %v8468_v26 }
 0xafa   : > { %v6971_v38 = vmul.f32 1.442695, %v6968_v32  ;;  %v8476_v32 = vand.u32 4294901760, %v8475_v3 }
 0xafc   : > { %15441 = vpow2.f32 %v6971_v38  ;;  %v16912_v38 = vpack.c.bf16 %v8474_v33, %v8467_v50 }
 0xb02   : > { %v16823_v5 = vpop.eup %15439 }
 0xb03   : > { %v6974_v48 = vsel %vm2851_vm5, %v16823_v5, 0 }
 0xb04   : > { %v7052_v51 = vand.u32 4294901760, %v6974_v48 }
 0xb06   : > { %v16827_v53 = vpop.eup %15441  ;;  %v7053_v43 = vsub.f32 %v6974_v48, %v7052_v51  ;;  %v8489_v48 = vsub.f32 %v16817_v24, %v8488_v7 }
 0xb07   : > { %v6977_v47 = vsel %vm2851_vm5, %v16827_v53, 0 }
 0xb08   : > { %v7062_v63 = vand.u32 4294901760, %v6977_v47  ;;  %v7054_v34 = vand.u32 4294901760, %v7053_v43 }
 0xb0a   : > { %v7055_v23 = vsub.f32 %v7053_v43, %v7054_v34  ;;  %v7063_v62 = vsub.f32 %v6977_v47, %v7062_v63  ;;  %v8490_v47 = vand.u32 4294901760, %v8489_v48 }
 0xb0c   : > { %v7056_v39 = vand.u32 4294901760, %v7055_v23  ;;  %v7064_v40 = vand.u32 4294901760, %v7063_v62 }
 0xb0e   : > { %13708 = vmatprep.mubr.f32.mxu0 %v7056_v39  ;;  %v7065_v25 = vsub.f32 %v7063_v62, %v7064_v40 }
 0xb10   : > { %v7066_v59 = vand.u32 4294901760, %v7065_v25 }
 0xb12   : > { %13709 = vmatmul.mubr.f32.vlgmr.msra.gmra.mrb[16].mxu0 %v7066_v59 }
 0xb13   : > { %14785 = vmatpush3.bf16.msra.mxu0 %v16359_v35  ;;  %13727 = vmatprep.mubr.f32.mxu0 %v7052_v51  ;;  %v17228_v35 = vld [vmem:[#allocation33_spill] sm:$0xff] }
 0xb14   : > { %14787 = vmatprep.subr.bf16.mxu0 %v16362_v45 }
 0xb17   : > { %14789 = vmatpush3.bf16.msra.mxu0 %v16362_v45  ;;  %v17230_v45 = vld [vmem:[#allocation35_spill] sm:$0xff] }
 0xb18   : > { %14791 = vmatprep.subr.bf16.mxu0 %v16364_v58 }
 0xb1b   : > { %14793 = vmatpush3.bf16.msra.mxu0 %v16364_v58  ;;  %v17231_v58 = vld [vmem:[#allocation36_spill] sm:$0xff] }
 0xb1c   : > { %14795 = vmatprep.subr.bf16.mxu0 %v16366_v12 }
 0xb1f   : > { %14797 = vmatpush3.bf16.msra.mxu0 %v16366_v12  ;;  %v17232_v12 = vld [vmem:[#allocation37_spill] sm:$0xff] }
 0xb20   : > { %14799 = vmatprep.subr.bf16.mxu0 %v17227_v14 }
 0xb22   : > { %13728 = vmatmul.mubr.f32.vlgmr.msra.gmra.mrb[16].mxu0 %v7062_v63 }
 0xb23   : > { %14801 = vmatpush3.bf16.msra.mxu0 %v17227_v14  ;;  %13746 = vmatprep.mubr.f32.mxu0 %v7053_v43  ;;  %v8483_v43 = vand.u32 4294901760, %v8482_v22 }
 0xb24   : > { %14803 = vmatprep.subr.bf16.mxu0 %v17228_v35 }
 0xb27   : > { %14805 = vmatpush3.bf16.msra.mxu0 %v17228_v35 }
 0xb28   : > { %14807 = vmatprep.subr.bf16.mxu0 %v17229_v60 }
 0xb2b   : > { %14809 = vmatpush3.bf16.msra.mxu0 %v17229_v60 }
 0xb2c   : > { %14811 = vmatprep.subr.bf16.mxu0 %v17230_v45 }
 0xb2f   : > { %14813 = vmatpush3.bf16.msra.mxu0 %v17230_v45 }
 0xb30   : > { %14815 = vmatprep.subr.bf16.mxu0 %v16325_v42 }
 0xb32   : > { %13747 = vmatmul.mubr.f32.vlgmr.msra.gmra.mrb[16].mxu0 %v7063_v62 }
 0xb33   : > { %14817 = vmatpush3.bf16.msra.mxu0 %v16325_v42  ;;  %13765 = vmatprep.mubr.f32.mxu0 %v7054_v34  ;;  %v14914_v34 = vpack.c.bf16 %v8490_v47, %v8483_v43 }
 0xb34   : > { %14819 = vmatprep.subr.bf16.mxu0 %v16335_v54 }
 0xb37   : > { %14821 = vmatpush3.bf16.msra.mxu0 %v16335_v54 }
 0xb38   : > { %14823 = vmatprep.subr.bf16.mxu0 %v16345_v20 }
 0xb3b   : > { %14825 = vmatpush3.bf16.msra.mxu0 %v16345_v20 }
 0xb3c   : > { %14827 = vmatprep.subr.bf16.mxu0 %v16355_v61 }
 0xb3f   : > { %14829 = vmatpush3.bf16.msra.mxu0 %v16355_v61 }
 0xb40   : > { %14831 = vmatprep.subr.bf16.mxu0 %v17231_v58 }
 0xb42   : > { %13766 = vmatmul.mubr.f32.vlgmr.msra.gmra.mrb[16].mxu0 %v7064_v40 }
 0xb43   : > { %14833 = vmatpush3.bf16.msra.mxu0 %v17231_v58  ;;  %13784 = vmatprep.mubr.f32.mxu0 %v7052_v51 }
 0xb44   : > { %14835 = vmatprep.subr.bf16.mxu0 %v17232_v12 }
 0xb47   : > { %14837 = vmatpush3.bf16.msra.mxu0 %v17232_v12 }
 0xb48   : > { %14839 = vmatprep.subr.bf16.mxu0 %v17233_v46 }
 0xb4b   : > { %14841 = vmatpush3.bf16.msra.mxu0 %v17233_v46 }
 0xb4c   : > { %14843 = vmatprep.subr.bf16.mxu0 %v17234_v55 }
 0xb4f   : > { %14845 = vmatpush3.bf16.msra.mxu0 %v17234_v55 }
 0xb50   : > { %14847 = vmatprep.subr.bf16.mxu0 %v16325_v42 }
 0xb52   : > { %13785 = vmatmul.mubr.f32.vlgmr.msra.gmra.mrb[16].mxu0 %v7062_v63 }
 0xb53   : > { %14849 = vmatpush3.bf16.msra.mxu0 %v16325_v42  ;;  %13803 = vmatprep.mubr.f32.mxu0 %v7052_v51  ;;  %v16877_v42 = vsub.f32 %v16777_v4, %v8344_v16  ;;  %v8460_v16 = vand.u32 4294901760, %v16799_v37  ;;  %v14930_v51 = vpack.c.bf16 %v16817_v24, %v16821_v27 }
 0xb54   : > { %14851 = vmatprep.subr.bf16.mxu0 %v16335_v54 }
 0xb55   : > { %v8439_v29 = vand.u32 4294901760, %v16877_v42  ;;  %v8461_v0 = vsub.f32 %v16799_v37, %v8460_v16  ;;  %v16904_v30 = vpack.c.bf16 %v8460_v16, %v8453_v10  ;;  %v14910_v37 = vpack.c.bf16 %v8476_v32, %v8469_v56 }
 0xb57   : > { %14853 = vmatpush3.bf16.msra.mxu0 %v16335_v54  ;;  %v8446_v54 = vand.u32 4294901760, %v16872_v9  ;;  %v8462_v13 = vand.u32 4294901760, %v8461_v0 }
 0xb58   : > { %14855 = vmatprep.subr.bf16.mxu0 %v16345_v20 }
 0xb59   : > { %v8447_v41 = vsub.f32 %v16872_v9, %v8446_v54  ;;  %v14906_v36 = vpack.c.bf16 %v8462_v13, %v8455_v11 }
 0xb5b   : > { %14857 = vmatpush3.bf16.msra.mxu0 %v16345_v20  ;;  %v8440_v20 = vsub.f32 %v16877_v42, %v8439_v29  ;;  %v8448_v4 = vand.u32 4294901760, %v8447_v41 }
 0xb5c   : > { %14859 = vmatprep.subr.bf16.mxu0 %v16355_v61 }
 0xb5f   : > { %14861 = vmatpush3.bf16.msra.mxu0 %v16355_v61  ;;  %v8441_v61 = vand.u32 4294901760, %v8440_v20  ;;  %v8928_v20 = vld [vmem:[%s17235_s1 + $0x18] sm:$0xff] }
 0xb60   : > { %14887 = vmatprep.subr.bf16.mxu0 %v16794_v6 }
 0xb61   : > { %v14902_v44 = vpack.c.bf16 %v8448_v4, %v8441_v61  ;;  %v8948_v61 = vand.u32 4294901760, %v8928_v20 }
 0xb62   : > { %13804 = vmatmul.mubr.f32.vlgmr.msra.gmra.mrb[16].mxu0 %v7062_v63  ;;  %v14962_v63 = vpack.c.bf16 %v8488_v7, %v8481_v52 }
 0xb63   : > { %14889 = vmatpush3.bf16.msra.mxu0 %v16794_v6  ;;  %v9050_v57 = vsub.f32 %v8928_v20, %v8948_v61 }
 0xb64   : > { %14891 = vmatprep.subr.bf16.mxu0 %v16804_v17 }
 0xb65   : > { %v9051_v13 = vand.u32 4294901760, %v9050_v57 }
 0xb67   : > { %14893 = vmatpush3.bf16.msra.mxu0 %v16804_v17  ;;  %v9052_v52 = vsub.f32 %v9050_v57, %v9051_v13 }
 0xb68   : > { %14895 = vmatprep.subr.bf16.mxu0 %v16813_v2 }
 0xb69   : > { %v9053_v26 = vand.u32 4294901760, %v9052_v52 }
 0xb6b   : > { %14897 = vmatpush3.bf16.msra.mxu0 %v16813_v2 }
 0xb6c   : > { %14899 = vmatprep.subr.bf16.mxu0 %v16819_v28 }
 0xb6f   : > { %14901 = vmatpush3.bf16.msra.mxu0 %v16819_v28 }
 0xb70   : > { %14903 = vmatprep.subr.bf16.mxu0 %v14902_v44 }
 0xc35   : > { %v13805_v23 = vpop.f32.mrb[16].mxu0 }
 0xc36   : > { %15443 = vrcp.f32 %v13805_v23  ;;  %v7549_v62 = vpop.f32.mrb[17].mxu0 }
 0xc37   : > { %15445 = vrcp.f32 %v7549_v62 }
 0xc40   : > { %v15444_v15 = vpop.eup %15443 }
 0xc41   : > { %v15446_v1 = vpop.eup %15445  ;;  %v7562_v39 = vmul.f32 %v15444_v15, %v16827_v53  ;;  %v14950_v53 = vpack.c.bf16 %v8446_v54, %v8439_v29 }
 0xc42   : > { %v7560_v40 = vmul.f32 %v15446_v1, %v16823_v5  ;;  %v14918_v5 = vpack.c.bf16 %v16872_v9, %v16877_v42  ;;  %v8926_v9 = vld [vmem:[%s17235_s1 + $0x8] sm:$0xff] }
 0xc43   : > { %v8341_v25 = vsel %vm2851_vm5, %v7562_v39, 0  ;;  %v8942_v42 = vand.u32 4294901760, %v8926_v9 }
 0xc44   : > { %v8338_v59 = vsel %vm2851_vm5, %v7560_v40, 0  ;;  %v8426_v14 = vand.u32 4294901760, %v8341_v25 }
 0xc45   : > { %v8416_v24 = vand.u32 4294901760, %v8338_v59  ;;  %v9036_v29 = vsub.f32 %v8926_v9, %v8942_v42 }
 0xc46   : > { %v8427_v27 = vsub.f32 %v8341_v25, %v8426_v14 }
 0xc47   : > { %v8417_v35 = vsub.f32 %v8338_v59, %v8416_v24 }
 0xc48   : > { %v8428_v60 = vand.u32 4294901760, %v8427_v27 }
 0xc49   : > { %v8418_v45 = vand.u32 4294901760, %v8417_v35 }
 0xc4a   : > { %v8429_v58 = vsub.f32 %v8427_v27, %v8428_v60 }
 0xc4b   : > { %v8419_v12 = vsub.f32 %v8417_v35, %v8418_v45 }
 0xc4c   : > { %v8430_v55 = vand.u32 4294901760, %v8429_v58 }
 0xc4d   : > { %v8420_v46 = vand.u32 4294901760, %v8419_v12 }
 0xc4f   : > { %13918 = vmatprep.mubr.f32.mxu0 %v8420_v46 }
 0xc50   : > { %13919 = vmatmul.mubr.f32.vlgmr.msra.gmra.mrb[18].mxu0 %v8430_v55 }
 0xc51   : > { %14905 = vmatpush3.bf16.msra.mxu0 %v14902_v44  ;;  %13937 = vmatprep.mubr.f32.mxu0 %v8416_v24  ;;  %v9037_v44 = vand.u32 4294901760, %v9036_v29 }
 0xc52   : > { %14907 = vmatprep.subr.bf16.mxu0 %v14906_v36 }
 0xc53   : > { %v9038_v33 = vsub.f32 %v9036_v29, %v9037_v44 }
 0xc55   : > { %14909 = vmatpush3.bf16.msra.mxu0 %v14906_v36 }
 0xc56   : > { %14911 = vmatprep.subr.bf16.mxu0 %v14910_v37 }
 0xc59   : > { %14913 = vmatpush3.bf16.msra.mxu0 %v14910_v37  ;;  %v12163_v37 = vld [vmem:[#allocation6] ss:$0 sm:$0xff] }
 0xc5a   : > { %14915 = vmatprep.subr.bf16.mxu0 %v14914_v34 }
 0xc5d   : > { %14917 = vmatpush3.bf16.msra.mxu0 %v14914_v34 }
 0xc5e   : > { %14919 = vmatprep.subr.bf16.mxu0 %v14918_v5 }
 0xc60   : > { %13938 = vmatmul.mubr.f32.vlgmr.msra.gmra.mrb[18].mxu0 %v8426_v14 }
 0xc61   : > { %14921 = vmatpush3.bf16.msra.mxu0 %v14918_v5  ;;  %13956 = vmatprep.mubr.f32.mxu0 %v8417_v35  ;;  %v8930_v35 = vld [vmem:[#allocation9] sm:$0xf] }
 0xc62   : > { %14923 = vmatprep.subr.bf16.mxu0 %v14922_v8 }
 0xc65   : > { %14925 = vmatpush3.bf16.msra.mxu0 %v14922_v8  ;;  %v9039_v8 = vand.u32 4294901760, %v9038_v33 }
 0xc66   : > { %14927 = vmatprep.subr.bf16.mxu0 %v14926_v31 }
 0xc69   : > { %14929 = vmatpush3.bf16.msra.mxu0 %v14926_v31 }
 0xc6a   : > { %14931 = vmatprep.subr.bf16.mxu0 %v14930_v51 }
 0xc6d   : > { %14933 = vmatpush3.bf16.msra.mxu0 %v14930_v51 }
 0xc6e   : > { %14935 = vmatprep.subr.bf16.mxu0 %v16794_v6 }
 0xc70   : > { %13957 = vmatmul.mubr.f32.vlgmr.msra.gmra.mrb[18].mxu0 %v8427_v27 }
 0xc71   : > { %14937 = vmatpush3.bf16.msra.mxu0 %v16794_v6  ;;  %13975 = vmatprep.mubr.f32.mxu0 %v8418_v45 }
 0xc72   : > { %14939 = vmatprep.subr.bf16.mxu0 %v16804_v17 }
 0xc75   : > { %14941 = vmatpush3.bf16.msra.mxu0 %v16804_v17 }
 0xc76   : > { %14943 = vmatprep.subr.bf16.mxu0 %v16813_v2 }
 0xc79   : > { %14945 = vmatpush3.bf16.msra.mxu0 %v16813_v2 }
 0xc7a   : > { %14947 = vmatprep.subr.bf16.mxu0 %v16819_v28 }
 0xc7d   : > { %14949 = vmatpush3.bf16.msra.mxu0 %v16819_v28 }
 0xc7e   : > { %14951 = vmatprep.subr.bf16.mxu0 %v14950_v53 }
 0xc80   : > { %13976 = vmatmul.mubr.f32.vlgmr.msra.gmra.mrb[18].mxu0 %v8428_v60  ;;  %v9475_v60 = vsel %vm9473_vm8, %v8930_v35, 0  ;;  %v8929_v35 = vld [vmem:[#allocation7] sm:$0xf] }
 0xc81   : > { %14953 = vmatpush3.bf16.msra.mxu0 %v14950_v53  ;;  %13994 = vmatprep.mubr.f32.mxu0 %v8416_v24  ;;  %v9478_v45 = vand.u32 4294901760, %v9475_v60 }
 0xc82   : > { %14955 = vmatprep.subr.bf16.mxu0 %v16904_v30 }
 0xc83   : > { %v9565_v58 = vsub.f32 %v9475_v60, %v9478_v45 }
 0xc85   : > { %14957 = vmatpush3.bf16.msra.mxu0 %v16904_v30  ;;  %v9566_v12 = vand.u32 4294901760, %v9565_v58 }
 0xc86   : > { %14959 = vmatprep.subr.bf16.mxu0 %v16912_v38 }
 0xc87   : > { %v9567_v46 = vsub.f32 %v9565_v58, %v9566_v12 }
 0xc89   : > { %14961 = vmatpush3.bf16.msra.mxu0 %v16912_v38  ;;  %v9568_v55 = vand.u32 4294901760, %v9567_v46 }
 0xc8a   : > { %14963 = vmatprep.subr.bf16.mxu0 %v14962_v63 }
 0xc8d   : > { %14965 = vmatpush3.bf16.msra.mxu0 %v14962_v63 }
 0xc8e   : > { %14967 = vmatprep.subr.bf16.mxu0 %v16794_v6 }
 0xc90   : > { %13995 = vmatmul.mubr.f32.vlgmr.msra.gmra.mrb[18].mxu0 %v8426_v14 }
 0xc91   : > { %14969 = vmatpush3.bf16.msra.mxu0 %v16794_v6  ;;  %14013 = vmatprep.mubr.f32.mxu0 %v8416_v24  ;;  %v8925_v6 = vld [vmem:[%s17235_s1] sm:$0xff] }
 0xc92   : > { %14971 = vmatprep.subr.bf16.mxu0 %v16804_v17 }
 0xc95   : > { %14973 = vmatpush3.bf16.msra.mxu0 %v16804_v17  ;;  %v8939_v17 = vand.u32 4294901760, %v8925_v6 }
 0xc96   : > { %14975 = vmatprep.subr.bf16.mxu0 %v16813_v2 }
 0xc97   : > { %v16955_v54 = vpack.c.bf16 %v8942_v42, %v8939_v17 }
 0xc99   : > { %14977 = vmatpush3.bf16.msra.mxu0 %v16813_v2  ;;  %v9029_v2 = vsub.f32 %v8925_v6, %v8939_v17  ;;  %14983 = vmatprep.subr.bf16.mxu1 %v16955_v54 }
 0xc9a   : > { %14979 = vmatprep.subr.bf16.mxu0 %v16819_v28  ;;  %14985 = vmatpush3.bf16.msra.mxu1 %v16955_v54 }
 0xc9b   : > { %v9030_v4 = vand.u32 4294901760, %v9029_v2  ;;  %v14998_v31 = vpack.c.bf16 %v9036_v29, %v9029_v2 }
 0xc9d   : > { %14981 = vmatpush3.bf16.msra.mxu0 %v16819_v28  ;;  %v8927_v28 = vld [vmem:[%s17235_s1 + $0x10] sm:$0xff]  ;;  %v9031_v10 = vsub.f32 %v9029_v2, %v9030_v4  ;;  %v15014_v32 = vpack.c.bf16 %v9037_v44, %v9030_v4 }
 0xc9e   : > { %v8945_v41 = vand.u32 4294901760, %v8927_v28 }
 0xc9f   : > { %v9032_v0 = vand.u32 4294901760, %v9031_v10 }
 0xca0   : > { %14014 = vmatmul.mubr.f32.vlgmr.msra.gmra.mrb[18].mxu0 %v8426_v14  ;;  %v16965_v16 = vpack.c.bf16 %v8948_v61, %v8945_v41  ;;  %v9043_v50 = vsub.f32 %v8927_v28, %v8945_v41 }
 0xca1   : > { %14116 = vmatprep.mubr.f32.mxu0 %v16049_v21  ;;  %v14990_v30 = vpack.c.bf16 %v9039_v8, %v9032_v0 }
 0xca2   : > { %14987 = vmatprep.subr.bf16.mxu1 %v16965_v16  ;;  %v9044_v11 = vand.u32 4294901760, %v9043_v50  ;;  %v15002_v56 = vpack.c.bf16 %v9050_v57, %v9043_v50 }
 0xca3   : > { %14989 = vmatpush3.bf16.msra.mxu1 %v16965_v16 }
 0xca4   : > { %v9045_v7 = vsub.f32 %v9043_v50, %v9044_v11  ;;  %14991 = vmatprep.subr.bf16.mxu1 %v14990_v30  ;;  %v15018_v38 = vpack.c.bf16 %v9051_v13, %v9044_v11 }
 0xca6   : > { %v9046_v36 = vand.u32 4294901760, %v9045_v7 }
 0xca8   : > { %v14994_v3 = vpack.c.bf16 %v9053_v26, %v9046_v36  ;;  %v723_v26 = vlaneseq }
 0xd73   : > { %v14015_v22 = vpop.f32.mrb[18].mxu0 }
 0xd74   : > { %v15086_v48 = vadd.f32 %v14015_v22, %v12163_v37  ;;  %v8913_v51 = vpop.f32.mrb[19].mxu0 }
 0xd75   : > { %v15087_v43 = vadd.f32 %v12163_v37, %v8913_v51 }
 0xd76   : > { %v8924_v47 = vmax.f32 %v15086_v48, 0.0 }
 0xd77   : > { %v8923_v63 = vmax.f32 %v15087_v43, 0.0 }
 0xd78   : > { %v8936_v34 = vsel %vm1272_vm1, %v8924_v47, 0 }
 0xd79   : > { %v9017_v23 = vand.u32 4294901760, %v8936_v34  ;;  %v8933_v62 = vsel %vm1272_vm1, %v8923_v63, 0 }
 0xd7a   : > { %v9007_v15 = vand.u32 4294901760, %v8933_v62 }
 0xd7b   : > { %v9018_v1 = vsub.f32 %v8936_v34, %v9017_v23 }
 0xd7c   : > { %v9008_v39 = vsub.f32 %v8933_v62, %v9007_v15 }
 0xd7d   : > { %v9019_v40 = vand.u32 4294901760, %v9018_v1 }
 0xd7e   : > { %v9009_v25 = vand.u32 4294901760, %v9008_v39 }
 0xd7f   : > { %v9020_v59 = vsub.f32 %v9018_v1, %v9019_v40 }
 0xd80   : > { %v9010_v14 = vsub.f32 %v9008_v39, %v9009_v25 }
 0xd81   : > { %v9021_v27 = vand.u32 4294901760, %v9020_v59 }
 0xd82   : > { %v9011_v24 = vand.u32 4294901760, %v9010_v14 }
 0xd84   : > { %14024 = vmatprep.mubr.f32.mxu1 %v9011_v24 }
 0xd85   : > { %14025 = vmatmul.mubr.f32.vlgmr.msra.gmra.mrb[16].mxu1 %v9021_v27 }
 0xd86   : > { %14993 = vmatpush3.bf16.msra.mxu1 %v14990_v30  ;;  %14035 = vmatprep.mubr.f32.mxu1 %v9007_v15 }
 0xd87   : > { %14995 = vmatprep.subr.bf16.mxu1 %v14994_v3 }
 0xd8a   : > { %14997 = vmatpush3.bf16.msra.mxu1 %v14994_v3  ;;  %v724_v3 = vshrl.u32 %v723_v26, 7 }
 0xd8b   : > { %14999 = vmatprep.subr.bf16.mxu1 %v14998_v31 }
 0xd8d   : > { %14036 = vmatmul.mubr.f32.vlgmr.msra.gmra.mrb[16].mxu1 %v9017_v23 }
 0xd8e   : > { %15001 = vmatpush3.bf16.msra.mxu1 %v14998_v31  ;;  %14046 = vmatprep.mubr.f32.mxu1 %v9008_v39  ;;  %v725_v31 = vadd.s32 8, %v724_v3 }
 0xd8f   : > { %15003 = vmatprep.subr.bf16.mxu1 %v15002_v56 }
 0xd92   : > { %15005 = vmatpush3.bf16.msra.mxu1 %v15002_v56  ;;  %v727_v56 = vand.u32 127, %v723_v26 }
 0xd93   : > { %15007 = vmatprep.subr.bf16.mxu1 %v16955_v54 }
 0xd94   : > { %vm729_vm10 = vcmp.eq.s32.totalorder %v725_v31, %v727_v56  ;;  %vm728_vm11 = vcmp.eq.s32.totalorder %v724_v3, %v727_v56 }
 0xd95   : > { %14047 = vmatmul.mubr.f32.vlgmr.msra.gmra.mrb[16].mxu1 %v9018_v1 }
 0xd96   : > { %15009 = vmatpush3.bf16.msra.mxu1 %v16955_v54  ;;  %14057 = vmatprep.mubr.f32.mxu1 %v9009_v25 }
 0xd97   : > { %15011 = vmatprep.subr.bf16.mxu1 %v16965_v16 }
 0xd9a   : > { %15013 = vmatpush3.bf16.msra.mxu1 %v16965_v16 }
 0xd9b   : > { %15015 = vmatprep.subr.bf16.mxu1 %v15014_v32 }
 0xd9d   : > { %14058 = vmatmul.mubr.f32.vlgmr.msra.gmra.mrb[16].mxu1 %v9019_v40 }
 0xd9e   : > { %15017 = vmatpush3.bf16.msra.mxu1 %v15014_v32  ;;  %14068 = vmatprep.mubr.f32.mxu1 %v9007_v15  ;;  %v15669_v32 = vmov 0.0  }
 0xd9f   : > { %15019 = vmatprep.subr.bf16.mxu1 %v15018_v38  ;;  %v12148_v37 = vsel %vm728_vm11, 1.0, %v15669_v32 }
 0xda2   : > { %15021 = vmatpush3.bf16.msra.mxu1 %v15018_v38  ;;  %v12149_v38 = vsel %vm729_vm10, 1.0, %v15669_v32 }
 0xda3   : > { %15023 = vmatprep.subr.bf16.mxu1 %v16955_v54 }
 0xda5   : > { %14069 = vmatmul.mubr.f32.vlgmr.msra.gmra.mrb[16].mxu1 %v9017_v23 }
 0xda6   : > { %15025 = vmatpush3.bf16.msra.mxu1 %v16955_v54  ;;  %14079 = vmatprep.mubr.f32.mxu1 %v9007_v15 }
 0xda7   : > { %15027 = vmatprep.subr.bf16.mxu1 %v16965_v16 }
 0xdaa   : > { %15029 = vmatpush3.bf16.msra.mxu1 %v16965_v16 }
 0xdab   : > { %14082 = vmatprep.subr.mxu1 %v9478_v45 }
 0xdad   : > { %14080 = vmatmul.mubr.f32.vlgmr.msra.gmra.mrb[16].mxu1 %v9017_v23 }
 0xdae   : > { %14083 = vmatpush3.msra.mxu1 %v9478_v45 }
 0xdaf   : > { %14087 = vmatprep.subr.mxu1 %v9568_v55 }
 0xe80   : > { %v14081_v5 = vpop.f32.mrb[16].mxu1 }
 0xe81   : > { %v9471_v53 = vsel %vm9466_vm9, %v14081_v5, 0  ;;  %v11484_v6 = vand.u32 4294901760, %v14081_v5  ;;  %v9456_v9 = vpop.f32.mrb[17].mxu1 }
 0xe82   : > { %v16981_v17 = vand.u32 4294901760, %v9471_v53  ;;  %v9468_v42 = vsel %vm9466_vm9, %v9456_v9, 0  ;;  %v11481_v54 = vand.u32 4294901760, %v9456_v9 }
 0xe83   : > { %v11576_v2 = vsub.f32 %v14081_v5, %v11484_v6  ;;  %v16984_v29 = vand.u32 4294901760, %v9468_v42 }
 0xe84   : > { %v16987_v28 = vsub.f32 %v9471_v53, %v16981_v17  ;;  %v16989_v20 = vpack.c.bf16 %v11484_v6, %v11481_v54  ;;  %v11569_v41 = vsub.f32 %v9456_v9, %v11481_v54  ;;  %v738_v53 = vld [vmem:[%s717_s29] sm:$0xff] }
 0xe85   : > { %v11577_v61 = vand.u32 4294901760, %v11576_v2  ;;  %v16992_v4 = vsub.f32 %v9468_v42, %v16984_v29 }
 0xe86   : > { %v11570_v44 = vand.u32 4294901760, %v11569_v41  ;;  %v16995_v16 = vand.u32 4294901760, %v16987_v28  ;;  %v16997_v10 = vpack.c.bf16 %v11576_v2, %v11569_v41 }
 0xe87   : > { %v17000_v33 = vand.u32 4294901760, %v16992_v4  ;;  %v11578_v50 = vsub.f32 %v11576_v2, %v11577_v61 }
 0xe88   : > { %v9556_v57 = vsub.f32 %v16987_v28, %v16995_v16  ;;  %v11571_v0 = vsub.f32 %v11569_v41, %v11570_v44  ;;  %v17004_v8 = vpack.c.bf16 %v11577_v61, %v11570_v44 }
 0xe89   : > { %v9546_v11 = vsub.f32 %v16992_v4, %v17000_v33  ;;  %v11579_v13 = vand.u32 4294901760, %v11578_v50 }
 0xe8a   : > { %v11572_v30 = vand.u32 4294901760, %v11571_v0  ;;  %v17010_v52 = vand.u32 4294901760, %v9556_v57 }
 0xe8b   : > { %v17008_v7 = vand.u32 4294901760, %v9546_v11 }
 0xe8c   : > { %v17012_v36 = vpack.c.bf16 %v11579_v13, %v11572_v30 }
 0xe8d   : > { %14084 = vmatprep.mubr.f32.mxu1 %v17008_v7 }
 0xe8e   : > { %14085 = vmatmul.mubr.f32.vlgmr.msra.gmra.mrb[18].mxu1 %v17010_v52 }
 0xe8f   : > { %14089 = vmatprep.mubr.f32.mxu1 %v16984_v29  ;;  %14088 = vmatpush3.msra.mxu1 %v9568_v55  ;;  %v739_v55 = vld [vmem:[%s717_s29 + $0x8] sm:$0xff] }
 0xe90   : > { %14092 = vmatprep.subr.mxu1 %v9565_v58 }
 0xe96   : > { %14090 = vmatmul.mubr.f32.vlgmr.msra.gmra.mrb[18].mxu1 %v16981_v17 }
 0xe97   : > { %14094 = vmatprep.mubr.f32.mxu1 %v16992_v4  ;;  %14093 = vmatpush3.msra.mxu1 %v9565_v58 }
 0xe98   : > { %14097 = vmatprep.subr.mxu1 %v9478_v45 }
 0xe9e   : > { %14095 = vmatmul.mubr.f32.vlgmr.msra.gmra.mrb[18].mxu1 %v16987_v28 }
 0xe9f   : > { %14099 = vmatprep.mubr.f32.mxu1 %v17000_v33  ;;  %14098 = vmatpush3.msra.mxu1 %v9478_v45 }
 0xea0   : > { %14102 = vmatprep.subr.mxu1 %v9566_v12 }
 0xea6   : > { %14100 = vmatmul.mubr.f32.vlgmr.msra.gmra.mrb[18].mxu1 %v16995_v16 }
 0xea7   : > { %14104 = vmatprep.mubr.f32.mxu1 %v16984_v29  ;;  %14103 = vmatpush3.msra.mxu1 %v9566_v12 }
 0xea8   : > { %14107 = vmatprep.subr.mxu1 %v9478_v45 }
 0xeae   : > { %14105 = vmatmul.mubr.f32.vlgmr.msra.gmra.mrb[18].mxu1 %v16981_v17 }
 0xeaf   : > { %14109 = vmatprep.mubr.f32.mxu1 %v16984_v29  ;;  %14108 = vmatpush3.msra.mxu1 %v9478_v45 }
 0xeb6   : > { %14110 = vmatmul.mubr.f32.vlgmr.msra.gmra.mrb[18].mxu1 %v16981_v17 }
 0xf89   : > { %v14111_v22 = vpop.f32.mrb[18].mxu1 }
 0xf8a   : > { %v9967_v48 = vmul.f32 %v14111_v22, %v12149_v38  ;;  %v9956_v51 = vpop.f32.mrb[19].mxu1 }
 0xf8b   : > { %v9966_v43 = vmul.f32 %v12148_v37, %v9956_v51 }
 0xf8c   : > { %v9972_v47 = vand.u32 4294901760, %v9967_v48 }
 0xf8d   : > { %v9969_v63 = vand.u32 4294901760, %v9966_v43 }
 0xf8e   : > { %v10064_v34 = vsub.f32 %v9967_v48, %v9972_v47 }
 0xf8f   : > { %v15030_v23 = vpack.c.bf16 %v9972_v47, %v9969_v63  ;;  %v10057_v62 = vsub.f32 %v9966_v43, %v9969_v63 }
 0xf90   : > { %v10065_v15 = vand.u32 4294901760, %v10064_v34 }
 0xf91   : > { %v10058_v1 = vand.u32 4294901760, %v10057_v62  ;;  %15031 = vmatprep.subr.bf16.mxu0 %v15030_v23  ;;  %v15038_v39 = vpack.c.bf16 %v10064_v34, %v10057_v62 }
 0xf92   : > { %15033 = vmatpush3.bf16.msra.mxu0 %v15030_v23  ;;  %v10066_v40 = vsub.f32 %v10064_v34, %v10065_v15 }
 0xf93   : > { %v10059_v25 = vsub.f32 %v10057_v62, %v10058_v1  ;;  %v15046_v59 = vpack.c.bf16 %v10065_v15, %v10058_v1 }
 0xf94   : > { %v10067_v14 = vand.u32 4294901760, %v10066_v40 }
 0xf95   : > { %14117 = vmatmul.mubr.f32.vlgmr.msra.gmra.mrb[20].mxu0 %v16049_v21  ;;  %v10060_v24 = vand.u32 4294901760, %v10059_v25  ;;  %v10471_v21 = vsel %vm9473_vm8, %v8929_v35, 0 }
 0xf96   : > { %14123 = vmatprep.mubr.msk.f32.mxu0 %vm1809_vm2, %v17211_v49  ;;  %v10474_v60 = vand.u32 4294901760, %v10471_v21 }
 0xf97   : > { %v15034_v27 = vpack.c.bf16 %v10067_v14, %v10060_v24 }
 0xf98   : > { %v10561_v45 = vsub.f32 %v10471_v21, %v10474_v60 }
 0xf99   : > { %15035 = vmatprep.subr.bf16.mxu0 %v15034_v27 }
 0xf9a   : > { %15037 = vmatpush3.bf16.msra.mxu0 %v15034_v27  ;;  %v10562_v58 = vand.u32 4294901760, %v10561_v45 }
 0xf9b   : > { %15039 = vmatprep.subr.bf16.mxu0 %v15038_v39 }
 0xf9d   : > { %14124 = vmatmul.mubr.msk.f32.vlgmr.msra.gmra.mrb[20].mxu0 %vm1809_vm2, %v17211_v49 }
 0xf9e   : > { %15041 = vmatpush3.bf16.msra.mxu0 %v15038_v39  ;;  %14130 = vmatprep.mubr.f32.mxu0 %v16042_v18 }
 0xf9f   : > { %15043 = vmatprep.subr.bf16.mxu0 %v15030_v23 }
 0xfa5   : > { %14131 = vmatmul.mubr.f32.vlgmr.msra.gmra.mrb[20].mxu0 %v16042_v18  ;;  %v10563_v18 = vsub.f32 %v10561_v45, %v10562_v58 }
 0xfa6   : > { %15045 = vmatpush3.bf16.msra.mxu0 %v15030_v23  ;;  %14137 = vmatprep.mubr.f32.mxu0 %v16045_v19 }
 0xfa7   : > { %15047 = vmatprep.subr.bf16.mxu0 %v15046_v59  ;;  %v10564_v12 = vand.u32 4294901760, %v10563_v18 }
 0xfad   : > { %14138 = vmatmul.mubr.f32.vlgmr.msra.gmra.mrb[20].mxu0 %v16045_v19 }
 0xfae   : > { %15049 = vmatpush3.bf16.msra.mxu0 %v15046_v59  ;;  %14144 = vmatprep.mubr.msk.f32.mxu0 %vm1809_vm2, %v17211_v49 }
 0xfaf   : > { %15051 = vmatprep.subr.bf16.mxu0 %v15030_v23 }
 0xfb5   : > { %14145 = vmatmul.mubr.msk.f32.vlgmr.msra.gmra.mrb[20].mxu0 %vm1809_vm2, %v17211_v49 }
 0xfb6   : > { %15053 = vmatpush3.bf16.msra.mxu0 %v15030_v23  ;;  %14151 = vmatprep.mubr.msk.f32.mxu0 %vm1809_vm2, %v17211_v49 }
 0xfb7   : > { %14154 = vmatprep.subr.mxu0 %v10474_v60 }
 0xfbd   : > { %14152 = vmatmul.mubr.msk.f32.vlgmr.msra.gmra.mrb[20].mxu0 %vm1809_vm2, %v17211_v49 }
 0xfbe   : > { %14156 = vmatprep.mubr.f32.mxu0 %v17008_v7  ;;  %14155 = vmatpush3.msra.mxu0 %v10474_v60 }
 0xfbf   : > { %14159 = vmatprep.subr.mxu0 %v10564_v12 }
 0xfc5   : > { %14157 = vmatmul.mubr.f32.vlgmr.msra.gmra.mrb[20].mxu0 %v17010_v52 }
 0xfc6   : > { %14161 = vmatprep.mubr.f32.mxu0 %v16984_v29  ;;  %14160 = vmatpush3.msra.mxu0 %v10564_v12 }
 0xfc7   : > { %14164 = vmatprep.subr.mxu0 %v10561_v45 }
 0xfcd   : > { %14162 = vmatmul.mubr.f32.vlgmr.msra.gmra.mrb[20].mxu0 %v16981_v17 }
 0xfce   : > { %14166 = vmatprep.mubr.f32.mxu0 %v16992_v4  ;;  %14165 = vmatpush3.msra.mxu0 %v10561_v45 }
 0xfcf   : > { %14169 = vmatprep.subr.mxu0 %v10474_v60 }
 0xfd5   : > { %14167 = vmatmul.mubr.f32.vlgmr.msra.gmra.mrb[20].mxu0 %v16987_v28 }
 0xfd6   : > { %14171 = vmatprep.mubr.f32.mxu0 %v17000_v33  ;;  %14170 = vmatpush3.msra.mxu0 %v10474_v60 }
 0xfd7   : > { %14174 = vmatprep.subr.mxu0 %v10562_v58 }
 0xfdd   : > { %14172 = vmatmul.mubr.f32.vlgmr.msra.gmra.mrb[20].mxu0 %v16995_v16 }
 0xfde   : > { %14176 = vmatprep.mubr.f32.mxu0 %v16984_v29  ;;  %14175 = vmatpush3.msra.mxu0 %v10562_v58 }
 0xfdf   : > { %14179 = vmatprep.subr.mxu0 %v10474_v60 }
 0xfe5   : > { %14177 = vmatmul.mubr.f32.vlgmr.msra.gmra.mrb[20].mxu0 %v16981_v17 }
 0xfe6   : > { %14181 = vmatprep.mubr.f32.mxu0 %v16984_v29  ;;  %14180 = vmatpush3.msra.mxu0 %v10474_v60  ;;  %v15670_v29 = vmov 1.0|1.0  }
 0xfe7   : > { %15054 = vmatprep.subr.bf16.mxu1 %v15670_v29 }
 0xfe8   : > { %15055 = vmatpush3.bf16.msra.mxu1 %v15670_v29 }
 0xfe9   : > { %14191 = vmatprep.subr.mxu1 %v15669_v32 }
 0xfed   : > { %14182 = vmatmul.mubr.f32.vlgmr.msra.gmra.mrb[20].mxu0 %v16981_v17 }
0x10c0   : > { %v14183_v19 = vpop.f32.mrb[20].mxu0 }
0x10c1   : > { %vm10963_vm12 = vcmp.gt.f32.partialorder %v14183_v19, 0.0  ;;  %v10965_v49 = vmul.f32 0.2, %v14183_v19  ;;  %v10952_v46 = vpop.f32.mrb[21].mxu0 }
0x10c2   : > { %vm10962_vm13 = vcmp.gt.f32.partialorder %v10952_v46, 0.0  ;;  %v10964_v5 = vmul.f32 0.2, %v10952_v46 }
0x10c3   : > { %v10967_v6 = vsel %vm10963_vm12, %v14183_v19, %v10965_v49 }
0x10c4   : > { %v10966_v9 = vsel %vm10962_vm13, %v10952_v46, %v10964_v5  ;;  %v10969_v42 = vadd.f32 %v10967_v6, %v739_v55 }
0x10c5   : > { %v10968_v54 = vadd.f32 %v10966_v9, %v738_v53 }
0x10c6   : > { %v10973_v2 = vsel %vm1809_vm2, %v10969_v42, -inf }
0x10c7   : > { %10974 = vmax.xlane.f32.xlu1 %v10973_v2  ;;  %v10970_v17 = vsel %vm1809_vm2, %v10968_v54, -inf }
0x10c8   : > { %10971 = vmax.xlane.f32.xlu0 %v10970_v17 }
0x1154   : > { %v10975_v28 = vpop.xlane.xlu1 %10974 }
0x1155   : > { %v10977_v41 = vsub.f32 %v10969_v42, %v10975_v28  ;;  %v10972_v61 = vpop.xlane.xlu0 %10971 }
0x1156   : > { %v10976_v4 = vsub.f32 %v10968_v54, %v10972_v61 }
0x1157   : > { %v10980_v44 = vmul.f32 1.442695, %v10977_v41 }
0x1158   : > { %v10978_v16 = vmul.f32 1.442695, %v10976_v4 }
0x1159   : > { %15447 = vpow2.f32 %v10980_v44 }
0x115a   : > { %15449 = vpow2.f32 %v10978_v16 }
0x1163   : > { %v15448_v33 = vpop.eup %15447 }
0x1164   : > { %v15450_v50 = vpop.eup %15449  ;;  %v10986_v57 = vsel %vm1809_vm2, %v15448_v33, 0 }
0x1165   : > { %v11063_v0 = vand.u32 4294901760, %v10986_v57  ;;  %v10983_v11 = vsel %vm1809_vm2, %v15450_v50, 0 }
0x1166   : > { %v11053_v13 = vand.u32 4294901760, %v10983_v11 }
0x1167   : > { %v11064_v30 = vsub.f32 %v10986_v57, %v11063_v0 }
0x1168   : > { %v11054_v7 = vsub.f32 %v10983_v11, %v11053_v13 }
0x1169   : > { %v11065_v52 = vand.u32 4294901760, %v11064_v30 }
0x116a   : > { %v11055_v26 = vand.u32 4294901760, %v11054_v7 }
0x116b   : > { %v11066_v3 = vsub.f32 %v11064_v30, %v11065_v52 }
0x116c   : > { %v11056_v31 = vsub.f32 %v11054_v7, %v11055_v26 }
0x116d   : > { %v11067_v38 = vand.u32 4294901760, %v11066_v3 }
0x116e   : > { %v11057_v56 = vand.u32 4294901760, %v11056_v31 }
0x1170   : > { %14188 = vmatprep.mubr.f32.mxu1 %v11057_v56 }
0x1171   : > { %14189 = vmatmul.mubr.f32.vlgmr.msra.gmra.mrb[20].mxu1 %v11067_v38 }
0x1172   : > { %14193 = vmatprep.mubr.f32.mxu1 %v11053_v13  ;;  %14192 = vmatpush3.msra.mxu1 %v15669_v32 }
0x1173   : > { %14196 = vmatprep.subr.mxu1 %v15669_v32 }
0x1179   : > { %14194 = vmatmul.mubr.f32.vlgmr.msra.gmra.mrb[20].mxu1 %v11063_v0 }
0x117a   : > { %14198 = vmatprep.mubr.f32.mxu1 %v11054_v7  ;;  %14197 = vmatpush3.msra.mxu1 %v15669_v32 }
0x117b   : > { %15056 = vmatprep.subr.bf16.mxu1 %v15670_v29 }
0x1181   : > { %14199 = vmatmul.mubr.f32.vlgmr.msra.gmra.mrb[20].mxu1 %v11064_v30 }
0x1182   : > { %14205 = vmatprep.mubr.f32.mxu1 %v11055_v26  ;;  %15057 = vmatpush3.bf16.msra.mxu1 %v15670_v29 }
0x1183   : > { %14208 = vmatprep.subr.mxu1 %v15669_v32 }
0x1189   : > { %14206 = vmatmul.mubr.f32.vlgmr.msra.gmra.mrb[20].mxu1 %v11065_v52 }
0x118a   : > { %14210 = vmatprep.mubr.f32.mxu1 %v11053_v13  ;;  %14209 = vmatpush3.msra.mxu1 %v15669_v32 }
0x118b   : > { %15058 = vmatprep.subr.bf16.mxu1 %v15670_v29 }
0x1191   : > { %14211 = vmatmul.mubr.f32.vlgmr.msra.gmra.mrb[20].mxu1 %v11063_v0 }
0x1192   : > { %15059 = vmatpush3.bf16.msra.mxu1 %v15670_v29  ;;  %14217 = vmatprep.mubr.f32.mxu1 %v11053_v13 }
0x1193   : > { %15061 = vmatprep.subr.bf16.mxu1 %v16989_v20 }
0x1199   : > { %14218 = vmatmul.mubr.f32.vlgmr.msra.gmra.mrb[20].mxu1 %v11063_v0 }
0x119a   : > { %15063 = vmatpush3.bf16.msra.mxu1 %v16989_v20 }
0x119b   : > { %15065 = vmatprep.subr.bf16.mxu1 %v17012_v36 }
0x126c   : > { %v14219_v37 = vpop.f32.mrb[20].mxu1 }
0x126d   : > { %15451 = vrcp.f32 %v14219_v37  ;;  %v11454_v22 = vpop.f32.mrb[21].mxu1 }
0x126e   : > { %15453 = vrcp.f32 %v11454_v22 }
0x1277   : > { %v15452_v48 = vpop.eup %15451 }
0x1278   : > { %v15454_v51 = vpop.eup %15453  ;;  %v11467_v43 = vmul.f32 %v15452_v48, %v15448_v33 }
0x1279   : > { %v11465_v47 = vmul.f32 %v15454_v51, %v15450_v50 }
0x127a   : > { %v11478_v32 = vsel %vm1809_vm2, %v11467_v43, 0 }
0x127b   : > { %v11475_v63 = vsel %vm1809_vm2, %v11465_v47, 0  ;;  %v11557_v34 = vand.u32 4294901760, %v11478_v32 }
0x127c   : > { %v11547_v23 = vand.u32 4294901760, %v11475_v63 }
0x127d   : > { %v11558_v62 = vsub.f32 %v11478_v32, %v11557_v34 }
0x127e   : > { %v11548_v15 = vsub.f32 %v11475_v63, %v11547_v23 }
0x127f   : > { %v11559_v1 = vand.u32 4294901760, %v11558_v62 }
0x1280   : > { %v11549_v39 = vand.u32 4294901760, %v11548_v15 }
0x1281   : > { %v11560_v40 = vsub.f32 %v11558_v62, %v11559_v1 }
0x1282   : > { %v11550_v25 = vsub.f32 %v11548_v15, %v11549_v39 }
0x1283   : > { %v11561_v14 = vand.u32 4294901760, %v11560_v40 }
0x1284   : > { %v11551_v59 = vand.u32 4294901760, %v11550_v25 }
0x1286   : > { %14224 = vmatprep.mubr.f32.mxu1 %v11551_v59 }
0x1287   : > { %14225 = vmatmul.mubr.f32.vlgmr.msra.gmra.mrb[22].mxu1 %v11561_v14 }
0x1288   : > { %15067 = vmatpush3.bf16.msra.mxu1 %v17012_v36  ;;  %14231 = vmatprep.mubr.f32.mxu1 %v11547_v23 }
0x1289   : > { %15069 = vmatprep.subr.bf16.mxu1 %v16997_v10 }
0x128f   : > { %14232 = vmatmul.mubr.f32.vlgmr.msra.gmra.mrb[22].mxu1 %v11557_v34 }
0x1290   : > { %15071 = vmatpush3.bf16.msra.mxu1 %v16997_v10  ;;  %14238 = vmatprep.mubr.f32.mxu1 %v11548_v15  ;;  %v12170_v10 = vld [vmem:[#allocation10] ss:$0 sm:$0xff] }
0x1291   : > { %15073 = vmatprep.subr.bf16.mxu1 %v16989_v20 }
0x1297   : > { %14239 = vmatmul.mubr.f32.vlgmr.msra.gmra.mrb[22].mxu1 %v11558_v62 }
0x1298   : > { %15075 = vmatpush3.bf16.msra.mxu1 %v16989_v20  ;;  %14245 = vmatprep.mubr.f32.mxu1 %v11549_v39 }
0x1299   : > { %15077 = vmatprep.subr.bf16.mxu1 %v17004_v8 }
0x129f   : > { %14246 = vmatmul.mubr.f32.vlgmr.msra.gmra.mrb[22].mxu1 %v11559_v1 }
0x12a0   : > { %15079 = vmatpush3.bf16.msra.mxu1 %v17004_v8  ;;  %14252 = vmatprep.mubr.f32.mxu1 %v11547_v23 }
0x12a1   : > { %15081 = vmatprep.subr.bf16.mxu1 %v16989_v20 }
0x12a7   : > { %14253 = vmatmul.mubr.f32.vlgmr.msra.gmra.mrb[22].mxu1 %v11557_v34 }
0x12a8   : > { %15083 = vmatpush3.bf16.msra.mxu1 %v16989_v20  ;;  %14259 = vmatprep.mubr.f32.mxu1 %v11547_v23 }
0x12af   : > { %14260 = vmatmul.mubr.f32.vlgmr.msra.gmra.mrb[22].mxu1 %v11557_v34 }
0x1382   : > { %v14261_v36 = vpop.f32.mrb[22].mxu1 }
0x1383   : > { %v15088_v24 = vadd.f32 %v14261_v36, %v12170_v10  ;;  %v11972_v27 = vpop.f32.mrb[23].mxu1 }
0x1384   : > { %v15089_v35 = vadd.f32 %v12170_v10, %v11972_v27 }
0x1385   : > { %11983 = vst.msk [vmem:[%s722_s21 + $0x8] sm:$0xff] %vm9466_vm9, %v15088_v24 }
0x1386   : > { %11982 = vst.msk [vmem:[%s722_s21] sm:$0xff] %vm9466_vm9, %v15089_v35 }
0x1387 PF: > { %s17238_s22 = sld [smem:[#allocation16_spill]] }
0x138d   : > { %s33_s0 = sadd.s32 1, %s17238_s22  }
0x138e   : > { %p30_p9 = scmp.ge.s32.totalorder %s33_s0, 4  }
0x1390   :  { %32 = sbr.rel (!%p30_p9) target bundleno = 13 (0xd), region = 157 }
0x1397   :  { %12005 = vsyncpa [#allocation3], 1 }
0x1398   :  { %12007 = vsyncpa [#allocation3 + $0x1], 1 }
0x1399   :  { %12008 = vsyncpa [#allocation5], 1 }
0x139a   :  { %12009 = vsyncpa [#allocation8], 1 }
0x139b   :  { %12010 = vsyncpa [#allocation11], 1 }

</bundles_post_ra>
